<compile_context>
chip_gen: v7x
topology: tpu7x:2x2x1
jax: 0.10.0
libtpu: 0.0.40
codegen_flags: <defaults>
</compile_context>

<pallas_src>
import functools
import math

import jax
import jax.numpy as jnp
import numpy as np
from jax import lax
from jax.experimental import pallas as pl
from jax.experimental.pallas import tpu as pltpu


@functools.lru_cache(maxsize=None)
def _vmem_limit_bytes():
    """Scoped-VMEM budget: generous on v5e/v6e (128 MiB), conservative on v7x (64 MiB)."""
    cap = 64 * 1024 * 1024
    try:
        info = pltpu.get_tpu_info()
        cap = int(getattr(info, "vmem_capacity_bytes", cap))
    except Exception:
        pass
    return max(32 * 1024 * 1024, min(cap - 16 * 1024 * 1024, 96 * 1024 * 1024))


def _pick_tile(dim, target, granules):
    """Largest tile <= target that divides `dim` and is a multiple of a granule.

    Falls back to the full dimension (a full-dim block is always legal)."""
    if dim <= target:
        return dim
    for g in granules:
        t = (target // g) * g
        while t >= g:
            if dim % t == 0:
                return t
            t -= g
    return dim


# ---------------------------------------------------------------------------
# QKV projection: qkv = x @ W + b, written head-major (B, H, T, D) per output.
# Weight block has a constant index_map -> DMA'd once, resident in VMEM.
# ---------------------------------------------------------------------------
def _qkv_proj_kernel(x_ref, w_ref, b_ref, q_ref, k_ref, v_ref, *, n_head, head_dim):
    acc = jnp.dot(x_ref[0], w_ref[...], preferred_element_type=jnp.float32)
    acc = acc + b_ref[...].astype(jnp.float32)                 # (tm, 3C) f32
    c = n_head * head_dim
    # Head split is done with static lane slices inside the kernel (vector
    # copies hidden under the matmul) instead of XLA transposes over HBM.
    for h in range(n_head):
        lo = h * head_dim
        q_ref[0, h] = acc[:, lo:lo + head_dim].astype(q_ref.dtype)
        k_ref[0, h] = acc[:, c + lo:c + lo + head_dim].astype(k_ref.dtype)
        v_ref[0, h] = acc[:, 2 * c + lo:2 * c + lo + head_dim].astype(v_ref.dtype)


def _qkv_proj(x, w, b, *, n_head):
    B, T, C = x.shape
    D = C // n_head
    tm = _pick_tile(T, 256, (16, 8))            # bf16-friendly sublane granule
    kernel = functools.partial(_qkv_proj_kernel, n_head=n_head, head_dim=D)
    q, k, v = pl.pallas_call(
        kernel,
        out_shape=[jax.ShapeDtypeStruct((B, n_head, T, D), x.dtype)] * 3,
        grid_spec=pltpu.PrefetchScalarGridSpec(
            num_scalar_prefetch=0,
            grid=(B, T // tm),
            in_specs=[
                pl.BlockSpec((1, tm, C), lambda bb, i: (bb, i, 0)),
                pl.BlockSpec((C, 3 * C), lambda bb, i: (0, 0)),   # resident weight
                pl.BlockSpec((1, 3 * C), lambda bb, i: (0, 0)),   # resident bias
            ],
            out_specs=[
                pl.BlockSpec((1, n_head, tm, D), lambda bb, i: (bb, 0, i, 0)),
                pl.BlockSpec((1, n_head, tm, D), lambda bb, i: (bb, 0, i, 0)),
                pl.BlockSpec((1, n_head, tm, D), lambda bb, i: (bb, 0, i, 0)),
            ],
        ),
        compiler_params=pltpu.CompilerParams(
            dimension_semantics=("parallel", "parallel"),
            vmem_limit_bytes=_vmem_limit_bytes(),
        ),
    )(x, w, b)
    return q, k, v


# ---------------------------------------------------------------------------
# Output projection: y = x @ W + b (2D), grid over M only, weight resident.
# ---------------------------------------------------------------------------
def _linear_kernel(x_ref, w_ref, b_ref, o_ref):
    acc = jnp.dot(x_ref[...], w_ref[...], preferred_element_type=jnp.float32)
    o_ref[...] = (acc + b_ref[...].astype(jnp.float32)).astype(o_ref.dtype)


def _linear(x, w, b, *, out_dtype):
    M, K = x.shape
    _, N = w.shape
    tm = _pick_tile(M, 512, (16, 8))
    # NOTE: full-N weight block (fine for GPT-2-sized C). For very large C,
    # tile N at 512-1024 instead of keeping the whole weight resident.
    return pl.pallas_call(
        _linear_kernel,
        out_shape=jax.ShapeDtypeStruct((M, N), out_dtype),
        grid_spec=pltpu.PrefetchScalarGridSpec(
            num_scalar_prefetch=0,
            grid=(M // tm,),
            in_specs=[
                pl.BlockSpec((tm, K), lambda i: (i, 0)),
                pl.BlockSpec((K, N), lambda i: (0, 0)),   # resident weight
                pl.BlockSpec((1, N), lambda i: (0, 0)),   # resident bias
            ],
            out_specs=pl.BlockSpec((tm, N), lambda i: (i, 0)),
        ),
        compiler_params=pltpu.CompilerParams(
            dimension_semantics=("parallel",),
            vmem_limit_bytes=_vmem_limit_bytes(),
        ),
    )(x, w, b)


# ---------------------------------------------------------------------------
# Flash attention kernel (causal, all heads batched per tile)
# ---------------------------------------------------------------------------
def _flash_attn_kernel(q_ref, k_ref, v_ref, o_ref, m_ref, l_ref, acc_ref, *,
                       n_head, head_dim, blk):
    qi = pl.program_id(1)
    kj = pl.program_id(2)

    @pl.when(kj == 0)
    def _init():
        m_ref[...] = jnp.full_like(m_ref, -jnp.inf)
        l_ref[...] = jnp.zeros_like(l_ref)
        acc_ref[...] = jnp.zeros_like(acc_ref)

    def _scores():
        # Heads batched; 1/sqrt(D) already folded into the Q weights.
        return jnp.einsum("hqd,hkd->hqk", q_ref[0], k_ref[0],
                          preferred_element_type=jnp.float32)    # (H, blk, blk)

    def _update(s):
        v = v_ref[0]
        m_prev = m_ref[...]
        m_new = jnp.maximum(m_prev, s.max(axis=-1, keepdims=True))
        alpha = jnp.exp(m_prev - m_new)
        p = jnp.exp(s - m_new)
        l_ref[...] = alpha * l_ref[...] + p.sum(axis=-1, keepdims=True)
        acc_ref[...] = alpha * acc_ref[...] + jnp.einsum(
            "hqk,hkd->hqd", p.astype(v.dtype), v,
            preferred_element_type=jnp.float32)
        m_ref[...] = m_new

    # Strictly below the diagonal: no masking work at all.
    @pl.when(kj < qi)
    def _below():
        _update(_scores())

    # Diagonal tile: mask, update, and finalize.  Because kv tiles are visited
    # in ascending j with tq == tk and strictly-above tiles skipped, this is
    # always the LAST processed tile of the q row, so the first processed tile
    # of every row has no fully-masked row (keeps the -1e30 trick safe).
    @pl.when(kj == qi)
    def _diag():
        s = _scores()
        row = lax.broadcasted_iota(jnp.int32, (blk, blk), 0)
        col = lax.broadcasted_iota(jnp.int32, (blk, blk), 1)
        s = jnp.where((row >= col)[None, :, :], s, jnp.float32(-1e30))
        _update(s)
        # Finalize: one approx (EUP) reciprocal, then a lane-dense (blk, C)
        # output block written head-by-head (static lane slices) -> no D=64
        # masked HBM stores and no post-attention XLA transpose.
        inv_l = pl.reciprocal(l_ref[...], approx=True)           # (H, blk, 1)
        out = acc_ref[...] * inv_l                               # (H, blk, D) f32
        for h in range(n_head):
            lo = h * head_dim
            o_ref[0, :, lo:lo + head_dim] = out[h].astype(o_ref.dtype)


def _flash_attention(q, k, v):
    B, H, T, D = q.shape
    C = H * D
    blk = _pick_tile(T, 256, (128, 16, 8))      # tq == tk (required by diag logic)
    kernel = functools.partial(_flash_attn_kernel, n_head=H, head_dim=D, blk=blk)
    return pl.pallas_call(
        kernel,
        out_shape=jax.ShapeDtypeStruct((B, T, C), q.dtype),
        grid_spec=pltpu.PrefetchScalarGridSpec(
            num_scalar_prefetch=0,
            grid=(B, T // blk, T // blk),
            in_specs=[
                pl.BlockSpec((1, H, blk, D), lambda b, i, j: (b, 0, i, 0)),
                # Clamp K/V to the diagonal: above-diagonal steps map to the
                # already-resident block -> no DMA for skipped causal tiles.
                pl.BlockSpec((1, H, blk, D),
                             lambda b, i, j: (b, 0, jnp.minimum(i, j), 0)),
                pl.BlockSpec((1, H, blk, D),
                             lambda b, i, j: (b, 0, jnp.minimum(i, j), 0)),
            ],
            out_specs=pl.BlockSpec((1, blk, C), lambda b, i, j: (b, i, 0)),
            scratch_shapes=[
                pltpu.VMEM((H, blk, 1), jnp.float32),   # running max
                pltpu.VMEM((H, blk, 1), jnp.float32),   # running sum
                pltpu.VMEM((H, blk, D), jnp.float32),   # output accumulator
            ],
        ),
        compiler_params=pltpu.CompilerParams(
            dimension_semantics=("parallel", "parallel", "arbitrary"),
            vmem_limit_bytes=_vmem_limit_bytes(),
        ),
    )(q, k, v)


# ---------------------------------------------------------------------------
# Public wrapper: full CausalSelfAttention forward pass
# ---------------------------------------------------------------------------
def causal_self_attention(x, w_qkv, b_qkv, w_proj, b_proj, *, n_head,
                          compute_dtype=jnp.bfloat16):
    """x: (B, T, C); w_qkv: (C, 3C); b_qkv: (1, 3C); w_proj: (C, C); b_proj: (1, C)."""
    B, T, C = x.shape
    assert C % n_head == 0
    D = C // n_head
    scale = 1.0 / math.sqrt(D)

    # Fold the softmax scale into the Q columns of the QKV projection
    # (one-time, outside the kernels) so the attention kernel never scales.
    col_scale = jnp.concatenate([
        jnp.full((C,), scale, dtype=w_qkv.dtype),
        jnp.ones((2 * C,), dtype=w_qkv.dtype),
    ])
    wq = (w_qkv * col_scale[None, :]).astype(compute_dtype)
    bq = b_qkv * col_scale[None, :]                         # bias kept f32
    wp = w_proj.astype(compute_dtype)
    xc = x.astype(compute_dtype)

    # 1) fused QKV projection -> head-major (B, H, T, D) outputs (no XLA transposes)
    q, k, v = _qkv_proj(xc, wq, bq, n_head=n_head)

    # 2) causal flash attention; output already merged lane-dense as (B, T, C)
    y = _flash_attention(q, k, v)

    # 3) output projection, back to the input dtype (reshape is free)
    out = _linear(y.reshape(B * T, C), wp, b_proj, out_dtype=x.dtype)
    return out.reshape(B, T, C)


def _reference(x, w_qkv, b_qkv, w_proj, b_proj, n_head):
    """Pure-JAX f32 reference mirroring the PyTorch forward."""
    B, T, C = x.shape
    D = C // n_head
    qkv = x @ w_qkv + b_qkv
    q, k, v = jnp.split(qkv, 3, axis=2)
    q = q.reshape(B, T, n_head, D).transpose(0, 2, 1, 3)
    k = k.reshape(B, T, n_head, D).transpose(0, 2, 1, 3)
    v = v.reshape(B, T, n_head, D).transpose(0, 2, 1, 3)
    att = (q @ jnp.swapaxes(k, -2, -1)) * (1.0 / math.sqrt(D))
    mask = jnp.tril(jnp.ones((T, T), dtype=bool))
    att = jnp.where(mask[None, None], att, -jnp.inf)
    att = jax.nn.softmax(att, axis=-1)
    y = att @ v
    y = y.transpose(0, 2, 1, 3).reshape(B, T, C)
    return y @ w_proj + b_proj


if __name__ == "__main__":
    # Small but tiling-realistic config: T=512 (2x2 q/kv tiles -> exercises the
    # causal DMA clamp, the unmasked below-diagonal path and the diagonal
    # mask+finalize path), C=256, 4 heads of D=64 (GPT-2 head_dim).
    B, T, C, n_head = 2, 512, 256, 4

    key = jax.random.PRNGKey(0)
    kx, k1, k2, k3, k4 = jax.random.split(key, 5)

    x = jax.random.normal(kx, (B, T, C), dtype=jnp.float32)

    # Deterministic parameter init (PyTorch Linear default: U(-1/sqrt(fan_in), 1/sqrt(fan_in)))
    bound = 1.0 / math.sqrt(C)
    w_qkv = jax.random.uniform(k1, (C, 3 * C), jnp.float32, -bound, bound)   # pre-transposed
    b_qkv = jax.random.uniform(k2, (1, 3 * C), jnp.float32, -bound, bound)
    w_proj = jax.random.uniform(k3, (C, C), jnp.float32, -bound, bound)      # pre-transposed
    b_proj = jax.random.uniform(k4, (1, C), jnp.float32, -bound, bound)

    out = causal_self_attention(x, w_qkv, b_qkv, w_proj, b_proj, n_head=n_head)
    out = jax.block_until_ready(out)

    ref = _reference(x, w_qkv, b_qkv, w_proj, b_proj, n_head)
    # bf16 matmul operands (+ approx reciprocal) vs f32 reference -> loose tolerance.
    np.testing.assert_allclose(np.asarray(out), np.asarray(ref), rtol=5e-2, atol=5e-2)

    print("KERNEL_OK")
</pallas_src>

<mosaic_0001>
module attributes {stable_mosaic.version = 11 : i64} {
  func.func @_qkv_proj_kernel(%arg0: i32, %arg1: i32, %arg2: memref<1x256x256xbf16, #tpu.memory_space<vmem>>, %arg3: memref<256x768xbf16, #tpu.memory_space<vmem>>, %arg4: memref<1x768xf32, #tpu.memory_space<vmem>>, %arg5: memref<1x4x256x64xbf16, #tpu.memory_space<vmem>>, %arg6: memref<1x4x256x64xbf16, #tpu.memory_space<vmem>>, %arg7: memref<1x4x256x64xbf16, #tpu.memory_space<vmem>>) attributes {dimension_semantics = [#tpu.dimension_semantics<parallel>, #tpu.dimension_semantics<parallel>], iteration_bounds = array<i64: 2, 2>, scalar_prefetch = 0 : i64, scratch_operands = 0 : i64, tpu.core_type = #tpu.core_type<tc>, window_params = [{transform_indices = @transform_0, window_bounds = array<i64: 1, 256, 256>}, {pipeline_mode = #tpu.pipeline_mode<synchronous>, transform_indices = @transform_1, window_bounds = array<i64: 256, 768>}, {pipeline_mode = #tpu.pipeline_mode<synchronous>, transform_indices = @transform_2, window_bounds = array<i64: 1, 768>}, {transform_indices = @transform_3, window_bounds = array<i64: 1, 4, 256, 64>}, {transform_indices = @transform_4, window_bounds = array<i64: 1, 4, 256, 64>}, {transform_indices = @transform_5, window_bounds = array<i64: 1, 4, 256, 64>}]} {
    %c0 = arith.constant 0 : index
    %c0_0 = arith.constant 0 : index
    %c0_1 = arith.constant 0 : index
    %0 = vector.load %arg2[%c0, %c0_0, %c0_1] : memref<1x256x256xbf16, #tpu.memory_space<vmem>>, vector<1x256x256xbf16>
    %1 = vector.shape_cast %0 : vector<1x256x256xbf16> to vector<256x256xbf16>
    %c0_2 = arith.constant 0 : index
    %c0_3 = arith.constant 0 : index
    %2 = vector.load %arg3[%c0_2, %c0_3] : memref<256x768xbf16, #tpu.memory_space<vmem>>, vector<256x768xbf16>
    %cst = arith.constant dense<0.000000e+00> : vector<256x768xf32>
    %3 = tpu.matmul %1, %2, %cst {dimension_numbers = #tpu.dot_dimension_numbers<[1], [0], [0], [1], [0, 0, 1, 1], [], []>} : vector<256x256xbf16>, vector<256x768xbf16>, vector<256x768xf32> -> vector<256x768xf32>
    %c0_4 = arith.constant 0 : index
    %c0_5 = arith.constant 0 : index
    %4 = vector.load %arg4[%c0_4, %c0_5] : memref<1x768xf32, #tpu.memory_space<vmem>>, vector<1x768xf32>
    %5 = vector.broadcast %4 : vector<1x768xf32> to vector<256x768xf32>
    %6 = arith.addf %3, %5 : vector<256x768xf32>
    %7 = vector.extract_strided_slice %6 {offsets = [0, 0], sizes = [256, 64], strides = [1, 1]} : vector<256x768xf32> to vector<256x64xf32>
    %8 = arith.truncf %7 : vector<256x64xf32> to vector<256x64xbf16>
    %c0_6 = arith.constant 0 : index
    %c0_7 = arith.constant 0 : index
    %c0_8 = arith.constant 0 : index
    %c0_9 = arith.constant 0 : index
    %9 = vector.load %arg5[%c0_6, %c0_7, %c0_8, %c0_9] : memref<1x4x256x64xbf16, #tpu.memory_space<vmem>>, vector<1x1x256x64xbf16>
    %10 = vector.shape_cast %9 : vector<1x1x256x64xbf16> to vector<256x64xbf16>
    %11 = vector.shape_cast %8 : vector<256x64xbf16> to vector<1x1x256x64xbf16>
    tpu.vector_store %arg5[%c0_6, %c0_7, %c0_8, %c0_9], %11 {strides = array<i32>} : memref<1x4x256x64xbf16, #tpu.memory_space<vmem>>, vector<1x1x256x64xbf16>,
    %12 = vector.extract_strided_slice %6 {offsets = [0, 256], sizes = [256, 64], strides = [1, 1]} : vector<256x768xf32> to vector<256x64xf32>
    %13 = arith.truncf %12 : vector<256x64xf32> to vector<256x64xbf16>
    %c0_10 = arith.constant 0 : index
    %c0_11 = arith.constant 0 : index
    %c0_12 = arith.constant 0 : index
    %c0_13 = arith.constant 0 : index
    %14 = vector.load %arg6[%c0_10, %c0_11, %c0_12, %c0_13] : memref<1x4x256x64xbf16, #tpu.memory_space<vmem>>, vector<1x1x256x64xbf16>
    %15 = vector.shape_cast %14 : vector<1x1x256x64xbf16> to vector<256x64xbf16>
    %16 = vector.shape_cast %13 : vector<256x64xbf16> to vector<1x1x256x64xbf16>
    tpu.vector_store %arg6[%c0_10, %c0_11, %c0_12, %c0_13], %16 {strides = array<i32>} : memref<1x4x256x64xbf16, #tpu.memory_space<vmem>>, vector<1x1x256x64xbf16>,
    %17 = vector.extract_strided_slice %6 {offsets = [0, 512], sizes = [256, 64], strides = [1, 1]} : vector<256x768xf32> to vector<256x64xf32>
    %18 = arith.truncf %17 : vector<256x64xf32> to vector<256x64xbf16>
    %c0_14 = arith.constant 0 : index
    %c0_15 = arith.constant 0 : index
    %c0_16 = arith.constant 0 : index
    %c0_17 = arith.constant 0 : index
    %19 = vector.load %arg7[%c0_14, %c0_15, %c0_16, %c0_17] : memref<1x4x256x64xbf16, #tpu.memory_space<vmem>>, vector<1x1x256x64xbf16>
    %20 = vector.shape_cast %19 : vector<1x1x256x64xbf16> to vector<256x64xbf16>
    %21 = vector.shape_cast %18 : vector<256x64xbf16> to vector<1x1x256x64xbf16>
    tpu.vector_store %arg7[%c0_14, %c0_15, %c0_16, %c0_17], %21 {strides = array<i32>} : memref<1x4x256x64xbf16, #tpu.memory_space<vmem>>, vector<1x1x256x64xbf16>,
    %22 = vector.extract_strided_slice %6 {offsets = [0, 64], sizes = [256, 64], strides = [1, 1]} : vector<256x768xf32> to vector<256x64xf32>
    %23 = arith.truncf %22 : vector<256x64xf32> to vector<256x64xbf16>
    %c0_18 = arith.constant 0 : index
    %c1 = arith.constant 1 : index
    %c0_19 = arith.constant 0 : index
    %c0_20 = arith.constant 0 : index
    %24 = vector.load %arg5[%c0_18, %c1, %c0_19, %c0_20] : memref<1x4x256x64xbf16, #tpu.memory_space<vmem>>, vector<1x1x256x64xbf16>
    %25 = vector.shape_cast %24 : vector<1x1x256x64xbf16> to vector<256x64xbf16>
    %26 = vector.shape_cast %23 : vector<256x64xbf16> to vector<1x1x256x64xbf16>
    tpu.vector_store %arg5[%c0_18, %c1, %c0_19, %c0_20], %26 {strides = array<i32>} : memref<1x4x256x64xbf16, #tpu.memory_space<vmem>>, vector<1x1x256x64xbf16>,
    %27 = vector.extract_strided_slice %6 {offsets = [0, 320], sizes = [256, 64], strides = [1, 1]} : vector<256x768xf32> to vector<256x64xf32>
    %28 = arith.truncf %27 : vector<256x64xf32> to vector<256x64xbf16>
    %c0_21 = arith.constant 0 : index
    %c1_22 = arith.constant 1 : index
    %c0_23 = arith.constant 0 : index
    %c0_24 = arith.constant 0 : index
    %29 = vector.load %arg6[%c0_21, %c1_22, %c0_23, %c0_24] : memref<1x4x256x64xbf16, #tpu.memory_space<vmem>>, vector<1x1x256x64xbf16>
    %30 = vector.shape_cast %29 : vector<1x1x256x64xbf16> to vector<256x64xbf16>
    %31 = vector.shape_cast %28 : vector<256x64xbf16> to vector<1x1x256x64xbf16>
    tpu.vector_store %arg6[%c0_21, %c1_22, %c0_23, %c0_24], %31 {strides = array<i32>} : memref<1x4x256x64xbf16, #tpu.memory_space<vmem>>, vector<1x1x256x64xbf16>,
    %32 = vector.extract_strided_slice %6 {offsets = [0, 576], sizes = [256, 64], strides = [1, 1]} : vector<256x768xf32> to vector<256x64xf32>
    %33 = arith.truncf %32 : vector<256x64xf32> to vector<256x64xbf16>
    %c0_25 = arith.constant 0 : index
    %c1_26 = arith.constant 1 : index
    %c0_27 = arith.constant 0 : index
    %c0_28 = arith.constant 0 : index
    %34 = vector.load %arg7[%c0_25, %c1_26, %c0_27, %c0_28] : memref<1x4x256x64xbf16, #tpu.memory_space<vmem>>, vector<1x1x256x64xbf16>
    %35 = vector.shape_cast %34 : vector<1x1x256x64xbf16> to vector<256x64xbf16>
    %36 = vector.shape_cast %33 : vector<256x64xbf16> to vector<1x1x256x64xbf16>
    tpu.vector_store %arg7[%c0_25, %c1_26, %c0_27, %c0_28], %36 {strides = array<i32>} : memref<1x4x256x64xbf16, #tpu.memory_space<vmem>>, vector<1x1x256x64xbf16>,
    %37 = vector.extract_strided_slice %6 {offsets = [0, 128], sizes = [256, 64], strides = [1, 1]} : vector<256x768xf32> to vector<256x64xf32>
    %38 = arith.truncf %37 : vector<256x64xf32> to vector<256x64xbf16>
    %c0_29 = arith.constant 0 : index
    %c2 = arith.constant 2 : index
    %c0_30 = arith.constant 0 : index
    %c0_31 = arith.constant 0 : index
    %39 = vector.load %arg5[%c0_29, %c2, %c0_30, %c0_31] : memref<1x4x256x64xbf16, #tpu.memory_space<vmem>>, vector<1x1x256x64xbf16>
    %40 = vector.shape_cast %39 : vector<1x1x256x64xbf16> to vector<256x64xbf16>
    %41 = vector.shape_cast %38 : vector<256x64xbf16> to vector<1x1x256x64xbf16>
    tpu.vector_store %arg5[%c0_29, %c2, %c0_30, %c0_31], %41 {strides = array<i32>} : memref<1x4x256x64xbf16, #tpu.memory_space<vmem>>, vector<1x1x256x64xbf16>,
    %42 = vector.extract_strided_slice %6 {offsets = [0, 384], sizes = [256, 64], strides = [1, 1]} : vector<256x768xf32> to vector<256x64xf32>
    %43 = arith.truncf %42 : vector<256x64xf32> to vector<256x64xbf16>
    %c0_32 = arith.constant 0 : index
    %c2_33 = arith.constant 2 : index
    %c0_34 = arith.constant 0 : index
    %c0_35 = arith.constant 0 : index
    %44 = vector.load %arg6[%c0_32, %c2_33, %c0_34, %c0_35] : memref<1x4x256x64xbf16, #tpu.memory_space<vmem>>, vector<1x1x256x64xbf16>
    %45 = vector.shape_cast %44 : vector<1x1x256x64xbf16> to vector<256x64xbf16>
    %46 = vector.shape_cast %43 : vector<256x64xbf16> to vector<1x1x256x64xbf16>
    tpu.vector_store %arg6[%c0_32, %c2_33, %c0_34, %c0_35], %46 {strides = array<i32>} : memref<1x4x256x64xbf16, #tpu.memory_space<vmem>>, vector<1x1x256x64xbf16>,
    %47 = vector.extract_strided_slice %6 {offsets = [0, 640], sizes = [256, 64], strides = [1, 1]} : vector<256x768xf32> to vector<256x64xf32>
    %48 = arith.truncf %47 : vector<256x64xf32> to vector<256x64xbf16>
    %c0_36 = arith.constant 0 : index
    %c2_37 = arith.constant 2 : index
    %c0_38 = arith.constant 0 : index
    %c0_39 = arith.constant 0 : index
    %49 = vector.load %arg7[%c0_36, %c2_37, %c0_38, %c0_39] : memref<1x4x256x64xbf16, #tpu.memory_space<vmem>>, vector<1x1x256x64xbf16>
    %50 = vector.shape_cast %49 : vector<1x1x256x64xbf16> to vector<256x64xbf16>
    %51 = vector.shape_cast %48 : vector<256x64xbf16> to vector<1x1x256x64xbf16>
    tpu.vector_store %arg7[%c0_36, %c2_37, %c0_38, %c0_39], %51 {strides = array<i32>} : memref<1x4x256x64xbf16, #tpu.memory_space<vmem>>, vector<1x1x256x64xbf16>,
    %52 = vector.extract_strided_slice %6 {offsets = [0, 192], sizes = [256, 64], strides = [1, 1]} : vector<256x768xf32> to vector<256x64xf32>
    %53 = arith.truncf %52 : vector<256x64xf32> to vector<256x64xbf16>
    %c0_40 = arith.constant 0 : index
    %c3 = arith.constant 3 : index
    %c0_41 = arith.constant 0 : index
    %c0_42 = arith.constant 0 : index
    %54 = vector.load %arg5[%c0_40, %c3, %c0_41, %c0_42] : memref<1x4x256x64xbf16, #tpu.memory_space<vmem>>, vector<1x1x256x64xbf16>
    %55 = vector.shape_cast %54 : vector<1x1x256x64xbf16> to vector<256x64xbf16>
    %56 = vector.shape_cast %53 : vector<256x64xbf16> to vector<1x1x256x64xbf16>
    tpu.vector_store %arg5[%c0_40, %c3, %c0_41, %c0_42], %56 {strides = array<i32>} : memref<1x4x256x64xbf16, #tpu.memory_space<vmem>>, vector<1x1x256x64xbf16>,
    %57 = vector.extract_strided_slice %6 {offsets = [0, 448], sizes = [256, 64], strides = [1, 1]} : vector<256x768xf32> to vector<256x64xf32>
    %58 = arith.truncf %57 : vector<256x64xf32> to vector<256x64xbf16>
    %c0_43 = arith.constant 0 : index
    %c3_44 = arith.constant 3 : index
    %c0_45 = arith.constant 0 : index
    %c0_46 = arith.constant 0 : index
    %59 = vector.load %arg6[%c0_43, %c3_44, %c0_45, %c0_46] : memref<1x4x256x64xbf16, #tpu.memory_space<vmem>>, vector<1x1x256x64xbf16>
    %60 = vector.shape_cast %59 : vector<1x1x256x64xbf16> to vector<256x64xbf16>
    %61 = vector.shape_cast %58 : vector<256x64xbf16> to vector<1x1x256x64xbf16>
    tpu.vector_store %arg6[%c0_43, %c3_44, %c0_45, %c0_46], %61 {strides = array<i32>} : memref<1x4x256x64xbf16, #tpu.memory_space<vmem>>, vector<1x1x256x64xbf16>,
    %62 = vector.extract_strided_slice %6 {offsets = [0, 704], sizes = [256, 64], strides = [1, 1]} : vector<256x768xf32> to vector<256x64xf32>
    %63 = arith.truncf %62 : vector<256x64xf32> to vector<256x64xbf16>
    %c0_47 = arith.constant 0 : index
    %c3_48 = arith.constant 3 : index
    %c0_49 = arith.constant 0 : index
    %c0_50 = arith.constant 0 : index
    %64 = vector.load %arg7[%c0_47, %c3_48, %c0_49, %c0_50] : memref<1x4x256x64xbf16, #tpu.memory_space<vmem>>, vector<1x1x256x64xbf16>
    %65 = vector.shape_cast %64 : vector<1x1x256x64xbf16> to vector<256x64xbf16>
    %66 = vector.shape_cast %63 : vector<256x64xbf16> to vector<1x1x256x64xbf16>
    tpu.vector_store %arg7[%c0_47, %c3_48, %c0_49, %c0_50], %66 {strides = array<i32>} : memref<1x4x256x64xbf16, #tpu.memory_space<vmem>>, vector<1x1x256x64xbf16>,
    return
  }
  func.func @transform_0(%arg0: i32, %arg1: i32) -> (i32, i32, i32) {
    %c0_i32 = arith.constant 0 : i32
    %c0_i32_0 = arith.constant 0 : i32
    return %arg0, %arg1, %c0_i32 : i32, i32, i32
  }
  func.func @transform_1(%arg0: i32, %arg1: i32) -> (i32, i32) {
    %c0_i32 = arith.constant 0 : i32
    %c0_i32_0 = arith.constant 0 : i32
    %c0_i32_1 = arith.constant 0 : i32
    return %c0_i32, %c0_i32_0 : i32, i32
  }
  func.func @transform_2(%arg0: i32, %arg1: i32) -> (i32, i32) {
    %c0_i32 = arith.constant 0 : i32
    %c0_i32_0 = arith.constant 0 : i32
    %c0_i32_1 = arith.constant 0 : i32
    return %c0_i32, %c0_i32_0 : i32, i32
  }
  func.func @transform_3(%arg0: i32, %arg1: i32) -> (i32, i32, i32, i32) {
    %c0_i32 = arith.constant 0 : i32
    %c0_i32_0 = arith.constant 0 : i32
    %c0_i32_1 = arith.constant 0 : i32
    return %arg0, %c0_i32, %arg1, %c0_i32_0 : i32, i32, i32, i32
  }
  func.func @transform_4(%arg0: i32, %arg1: i32) -> (i32, i32, i32, i32) {
    %c0_i32 = arith.constant 0 : i32
    %c0_i32_0 = arith.constant 0 : i32
    %c0_i32_1 = arith.constant 0 : i32
    return %arg0, %c0_i32, %arg1, %c0_i32_0 : i32, i32, i32, i32
  }
  func.func @transform_5(%arg0: i32, %arg1: i32) -> (i32, i32, i32, i32) {
    %c0_i32 = arith.constant 0 : i32
    %c0_i32_0 = arith.constant 0 : i32
    %c0_i32_1 = arith.constant 0 : i32
    return %arg0, %c0_i32, %arg1, %c0_i32_0 : i32, i32, i32, i32
  }
}

</mosaic_0001>

<bundles_post_ra>
// kernel: tpu_custom_call.1
= control target key start
LH: loop header
LB: loop body
LE: loop exit
PB: predicated region body
PF: predicated region fallthrough
CT: control target
= control target key end

     0   :  { %s9265_s0 = inlined_call_operand.hbm [shape: bf16[2,512,256], index: 0, kind: input, shape index: {}]   ;;  %s9266_s1 = inlined_call_operand.hbm [shape: bf16[256,768], index: 1, kind: input, shape index: {}]   ;;  %s9267_s2 = inlined_call_operand.vmem [shape: f32[1,768], index: 2, kind: input, shape index: {}]   ;;  %s9268_s3 = inlined_call_operand.vmem [shape: bf16[2,4,512,64], index: 3, kind: output, shape index: {0}]   ;;  %s9269_s4 = inlined_call_operand.vmem [shape: bf16[2,4,512,64], index: 4, kind: output, shape index: {1}]   ;;  %s9270_s5 = inlined_call_operand.vmem [shape: bf16[2,4,512,64], index: 5, kind: output, shape index: {2}]  }
   0x1   :  { %9305 = sst [smem:[#allocation33_spill]] %s9266_s1 }
   0x2   :  { %9306 = sst [smem:[#allocation34_spill]] %s9268_s3 }
   0x3   :  { %9307 = sst [smem:[#allocation35_spill]] %s9269_s4 }
   0x4   :  { %9308 = sst [smem:[#allocation36_spill]] %s9270_s5 }
   0x5   :  { %11 = vsyncpa [#allocation3], 0 }
   0x6   :  { %13 = vsyncpa [#allocation3 + $0x1], 0 }
   0x7   :  { %14 = vsyncpa [#allocation5], 0  ;;  %s6548_s18 = smov 0   ;;  %s6550_s19 = smov 0  }
   0x8   :  { %s6552_s20 = smov 0   ;;  %s6554_s21 = smov 0  }
   0x9   :  { %s6556_s22 = smov 0   ;;  %s6558_s23 = smov 0  }
   0xa   :  { %s6560_s24 = smov 0   ;;  %s6562_s25 = smov 0  }
   0xb LB: > { %s5239_s26 = sadd.s32 4294967295, %s6509_s25   ;;  %p54_p0 = scmp.ne.s32.totalorder %s6485_s19, %s6481_s18  ;;  %s6509_s25 = sphi %s6562_s25, %s20_s25   ;;  %s6505_s24 = sphi %s6560_s24, %s9391_s24   ;;  %s6501_s23 = sphi %s6558_s23, %s9390_s23   ;;  %s6497_s22 = sphi %s6556_s22, %s9389_s22   ;;  %s6493_s21 = sphi %s6554_s21, %s9388_s21   ;;  %s6489_s20 = sphi %s6552_s20, %s9387_s20   ;;  %s6485_s19 = sphi %s6550_s19, %s9386_s19   ;;  %s6481_s18 = sphi %s6548_s18, %s9385_s18  }
   0xc   : > { %p6588_p1 = scmp.eq.s32.totalorder %s5239_s26, 0  ;;  %p6592_p2 = scmp.eq.s32.totalorder %s5239_s26, 3 }
   0xd   : > { %p5241_p3 = scmp.ge.s32.totalorder %s6509_s25, 1  ;;  %p191_p4 = scmp.lt.s32.totalorder %s6509_s25, 5 }
   0xe   : > { %s9309_s27 = scalar_select %p6588_p1, 1, 0 }
   0xf   : > { %s9310_s28 = scalar_select %p6592_p2, 1, 0 }
  0x10   : > { %p6600_p5 = por %p6588_p1, %p54_p0  ;;  %p6604_p6 = pnand %p5241_p3, %p191_p4 }
  0x11   : > { %s6511_s6 = smov [#allocation4]   ;;  %s9314_s1 = sld [smem:[#allocation33_spill]] }
  0x12   : > { %s9311_s29 = scalar_select %p6600_p5, 1, 0 }
  0x13   : > { %s9312_s30 = scalar_select %p6604_p6, 1, 0 }
  0x14   : > { %s203_s7 = sshll.u32 %s6511_s6, 4  ;;  %p6108_p7 = pneg %p6604_p6  ;;  %s204_s7 = int_to_ptr.vmem [resolvable:$true] %s203_s7 }
  0x16   : > { %p6612_p8 = pnand %p6108_p7, %p6588_p1 }
  0x17   : > { %s6381_s11 = scalar_lea.hbm %s9314_s1, 12288 }
  0x18   : > { %p6382_p9 = scmp.ne.s32.totalorder %s9314_s1, %s6381_s11  ;;  %p6383_p10 = pneg %p6612_p8 }
  0x19   : > { %p6388_p13 = scmp.lt.u32.totalorder %s6381_s11, %s9314_s1 }
  0x1a   : > { %p6384_p11 = pnand %p6383_p10, %p6382_p9 }
  0x1c   : > { %p6385_p12 = pneg %p6384_p11 }
  0x1e   : > { %p6390_p0 = pnand %p6388_p13, %p6385_p12 }
  0x20   : > { %6393 = shalt.err (!%p6390_p0)
}
  0x21   : > { %s6394_s16 = scalar_lea.vmem %s204_s7, 12288  ;;  %p6402_p1 = scmp.lt.s32.totalorder %s204_s7, %s204_s7 }
  0x22   : > { %p6395_p3 = scmp.ne.s32.totalorder %s204_s7, %s6394_s16  ;;  %p6403_p5 = scmp.lt.s32.totalorder %s6394_s16, %s6394_s16 }
  0x24   : > { %p6397_p4 = pnand %p6395_p3, %p6383_p10  ;;  %p6404_p6 = por %p6403_p5, %p6402_p1 }
  0x26   : > { %p6398_p7 = pneg %p6397_p4 }
  0x28   : > { %p6405_p2 = pnand %p6404_p6, %p6398_p7 }
  0x2a   : > { %6408 = shalt.err (!%p6405_p2)
}
  0x2b   : > { %s6512_s17 = smov 384   ;;  %s6513_s18 = smov 24  }
  0x2c   : > { %6111 = dma.hbm_to_vmem [thread:$0]  (!%p6612_p8), %s9314_s1, 12288, %s204_s7, [#allocation5], %s6512_s17, %s6512_s17, %s6513_s18  }
  0x2d   : > { %s29_s9 = sadd.s32 1, %s6501_s23  ;;  %s32_s10 = sadd.s32 1, %s6505_s24 }
  0x2e   : > { %p30_p1 = scmp.ge.s32.totalorder %s29_s9, 2  ;;  %s41_s11 = sadd.s32 1, %s6489_s20 }
  0x2f   : > { %p48_p2 = scmp.ne.s32.totalorder %s6489_s20, %s6485_s19  ;;  %p49_p5 = scmp.eq.s32.totalorder %s6509_s25, 0 }
  0x30   : > { %s9393_s9 = smov (%p30_p1, %s29_s9), 0  ;;  %s9395_s10 = smov (!%p30_p1, %s32_s10), %s6505_s24 }
  0x31   : > { %9315 = sst [smem:[#allocation11_spill]] %s9393_s9  ;;  %s37_s12 = ssub.s32 %s6501_s23, %s9393_s9 }
  0x32   : > { %p6643_p6 = por %p49_p5, %p48_p2  ;;  %p34_p8 = scmp.ge.s32.totalorder %s9395_s10, 2 }
  0x33   : > { %p9317_p9 = scmp.ne.s32.totalorder %s9310_s28, 0  ;;  %p6117_p11 = scmp.lt.s32.totalorder %s6509_s25, 4 }
  0x34   : > { %s220_s13 = sand.u32 1, %s6489_s20   ;;  %s9397_s10 = smov (%p34_p8, %s9395_s10), 0 }
  0x35   : > { %p6649_p10 = por %p9317_p9, %p48_p2  ;;  %s5244_s14 = sshll.u32 %s220_s13, 8 }
  0x36   : > { %s36_s15 = ssub.s32 %s6505_s24, %s9397_s10  ;;  %s5877_s17 = sshll.u32 %s6501_s23, 6 }
  0x37   : > { %s38_s16 = sor.u32 %s37_s12, %s36_s15  ;;  %s5247_s18 = sshll.u32 %s6505_s24, 7 }
  0x38   : > { %p39_p12 = scmp.eq.s32.totalorder %s38_s16, 0  ;;  %s231_s26 = sadd.s32 %s5877_s17, %s5247_s18 }
  0x39   : > { %s224_s6 = scalar_lea.vmem [#allocation2], %s5244_s14  ;;  %s5248_s9 = sshll.u32 %s231_s26, 6 }
  0x3a   : > { %s234_s28 = sshll.u32 %s224_s6, 4  ;;  %s6669_s3 = scalar_lea.hbm %s9265_s0, %s5248_s9  ;;  %s6664_s28 = int_to_ptr.vmem [resolvable:$true] %s234_s28 }
  0x3b   : > { %s6662_s1 = scalar_select %p39_p12, %s6489_s20, %s41_s11  }
  0x3c   : > { %p6675_p13 = pnand %p6117_p11, %p6643_p6  ;;  %s6679_s11 = scalar_lea.sflag [#allocation3], %s220_s13 }
  0x3d   : > { %s6409_s14 = scalar_lea.hbm %s6669_s3, 4096  ;;  %s6414_s9 = scalar_lea.hbm %s9265_s0, 16384 }
  0x3e   : > { %p6410_p0 = scmp.ne.s32.totalorder %s6669_s3, %s6409_s14  ;;  %p6411_p3 = pneg %p6675_p13 }
  0x3f   : > { %p6415_p1 = scmp.lt.u32.totalorder %s6669_s3, %s9265_s0  ;;  %p6416_p2 = scmp.lt.u32.totalorder %s6414_s9, %s6409_s14 }
  0x40   : > { %p6412_p4 = pnand %p6411_p3, %p6410_p0  ;;  %p6418_p6 = scmp.lt.u32.totalorder %s6409_s14, %s6669_s3 }
  0x41   : > { %p6417_p5 = por %p6416_p2, %p6415_p1 }
  0x42   : > { %p6413_p7 = pneg %p6412_p4 }
  0x43   : > { %p6419_p8 = por %p6418_p6, %p6417_p5 }
  0x45   : > { %p6420_p9 = pnand %p6419_p8, %p6413_p7 }
  0x47   : > { %6423 = shalt.err (!%p6420_p9)
}
  0x48   : > { %s6424_s13 = scalar_lea.vmem %s6664_s28, 4096  ;;  %s6514_s16 = smov [#allocation2]  }
  0x49   : > { %p6425_p11 = scmp.ne.s32.totalorder %s6664_s28, %s6424_s13  ;;  %s6429_s17 = sshll.u32 %s6514_s16, 4  ;;  %s6430_s17 = int_to_ptr.vmem [resolvable:$false] %s6429_s17 }
  0x4a   : > { %s6431_s18 = scalar_lea.vmem %s6430_s17, 8192  ;;  %p6432_p4 = scmp.lt.s32.totalorder %s6664_s28, %s6430_s17 }
  0x4b   : > { %p6427_p12 = pnand %p6425_p11, %p6411_p3  ;;  %p6433_p1 = scmp.lt.s32.totalorder %s6431_s18, %s6424_s13 }
  0x4d   : > { %p6428_p0 = pneg %p6427_p12  ;;  %p6434_p2 = por %p6433_p1, %p6432_p4 }
  0x4f   : > { %p6435_p5 = pnand %p6434_p2, %p6428_p0 }
  0x51   : > { %6438 = shalt.err (!%p6435_p5)
}
  0x52   : > { %s6515_s26 = smov 128   ;;  %s6516_s6 = smov 8  }
  0x53   : > { %6115 = dma.hbm_to_vmem [thread:$0]  (!%p6675_p13), %s6669_s3, 4096, %s6664_s28, %s6679_s11, %s6515_s26, %s6515_s26, %s6516_s6  }
  0x54   : > { %p9320_p3 = scmp.ne.s32.totalorder %s9312_s30, 0 }
  0x56   : > { %246 = sbr.rel (%p9320_p3) target bundleno = 960 (0x3c0), region = 32 }
  0x5d   : > { %s6710_s14 = sand.u32 1, %s6485_s19   ;;  %p9321_p7 = scmp.ne.s32.totalorder %s9311_s29, 0 }
  0x5e   : > { %s5250_s4 = sshll.u32 %s6710_s14, 8  ;;  %s249_s5 = scalar_lea.sflag [#allocation3], %s6710_s14 }
  0x5f   : > { %s6714_s9 = scalar_lea.vmem [#allocation2], %s5250_s4 }
  0x60   : > { %6472 = dma.done.wait (%p9321_p7), %s249_s5, 4096  }
  0x61   : > { %6474 = vsyncadd (%p9321_p7), %s249_s5, 4294963200  ;;  %p9322_p13 = scmp.ne.s32.totalorder %s9309_s27, 0 }
  0x63   : > { %6476 = dma.done.wait (%p9322_p13), [#allocation5], 12288  }
  0x64   : > { %6478 = vsyncadd (%p9322_p13), [#allocation5], 4294955008  ;;  %v6189_v0 = vld [vmem:[#allocation4 + $0x4] ss:$24 sps:$4 sm:$0xff]   ;;  %v6191_v1 = vld [vmem:[#allocation4] ss:$24 sps:$4 sm:$0xff]  }
  0x65   : > { %1094 = vmatprep.subr.bf16.mxu0 %v6189_v0  ;;  %6070 = vmatprep.subr.bf16.mxu1 %v6189_v0  ;;  %v6192_v2 = vld [vmem:[#allocation4 + $0x34] ss:$24 sps:$4 sm:$0xff]   ;;  %v6194_v3 = vld [vmem:[#allocation4 + $0x30] ss:$24 sps:$4 sm:$0xff]   ;;  %v6195_v4 = vld [vmem:[#allocation4 + $0x64] ss:$24 sps:$4 sm:$0xff]  }
  0x66   : > { %1095 = vmatpush1.bf16.msra.mxu0 %v6191_v1  ;;  %6086 = vmatpush1.bf16.msra.mxu1 %v6191_v1  ;;  %v6197_v5 = vld [vmem:[#allocation4 + $0x60] ss:$24 sps:$4 sm:$0xff]   ;;  %v6198_v6 = vld [vmem:[#allocation4 + $0x94] ss:$24 sps:$4 sm:$0xff]   ;;  %v6200_v7 = vld [vmem:[#allocation4 + $0x90] ss:$24 sps:$4 sm:$0xff]  }
  0x67   : > { %1096 = vmatprep.subr.bf16.mxu0 %v6192_v2  ;;  %6071 = vmatprep.subr.bf16.mxu1 %v6192_v2  ;;  %v6201_v8 = vld [vmem:[#allocation4 + $0xc4] ss:$24 sps:$4 sm:$0xff]   ;;  %v6203_v9 = vld [vmem:[#allocation4 + $0xc0] ss:$24 sps:$4 sm:$0xff]   ;;  %v6204_v10 = vld [vmem:[#allocation4 + $0xf4] ss:$24 sps:$4 sm:$0xff]  }
  0x68   : > { %v6206_v11 = vld [vmem:[#allocation4 + $0xf0] ss:$24 sps:$4 sm:$0xff]   ;;  %v6207_v12 = vld [vmem:[#allocation4 + $0x124] ss:$24 sps:$4 sm:$0xff]   ;;  %v6209_v14 = vld [vmem:[#allocation4 + $0x120] ss:$24 sps:$4 sm:$0xff]  }
  0x69   : > { %v6725_v13 = vld [vmem:[%s6714_s9 + $0x4] ss:$8 sps:$4 sm:$0xff]   ;;  %v6212_v17 = vld [vmem:[#allocation4 + $0x150] ss:$24 sps:$4 sm:$0xff]   ;;  %v6215_v19 = vld [vmem:[#allocation4 + $0x180] ss:$24 sps:$4 sm:$0xff]  }
  0x6a   : > { %1097 = vmatpush1.bf16.msra.mxu0 %v6194_v3  ;;  %6087 = vmatpush1.bf16.msra.mxu1 %v6194_v3  ;;  %v6728_v15 = vld [vmem:[%s6714_s9 + $0x84] ss:$8 sps:$4 sm:$0xff]   ;;  %v6218_v21 = vld [vmem:[#allocation4 + $0x1b0] ss:$24 sps:$4 sm:$0xff]   ;;  %v6221_v23 = vld [vmem:[#allocation4 + $0x1e0] ss:$24 sps:$4 sm:$0xff]  }
  0x6b   : > { %1098 = vmatprep.subr.bf16.mxu0 %v6195_v4  ;;  %6072 = vmatprep.subr.bf16.mxu1 %v6195_v4  ;;  %v6210_v16 = vld [vmem:[#allocation4 + $0x154] ss:$24 sps:$4 sm:$0xff]   ;;  %v6213_v18 = vld [vmem:[#allocation4 + $0x184] ss:$24 sps:$4 sm:$0xff]   ;;  %v6224_v25 = vld [vmem:[#allocation4 + $0x210] ss:$24 sps:$4 sm:$0xff]  }
  0x6c   : > { %1126 = vmatprep.mubr.bf16.mxu0 %v6725_v13  ;;  %1206 = vmatprep.mubr.bf16.mxu1 %v6728_v15  ;;  %v6216_v20 = vld [vmem:[#allocation4 + $0x1b4] ss:$24 sps:$4 sm:$0xff]   ;;  %v6219_v22 = vld [vmem:[#allocation4 + $0x1e4] ss:$24 sps:$4 sm:$0xff]   ;;  %v6227_v27 = vld [vmem:[#allocation4 + $0x240] ss:$24 sps:$4 sm:$0xff]  }
  0x6d   : > { %v6222_v24 = vld [vmem:[#allocation4 + $0x214] ss:$24 sps:$4 sm:$0xff]   ;;  %v6225_v26 = vld [vmem:[#allocation4 + $0x244] ss:$24 sps:$4 sm:$0xff]   ;;  %v6230_v29 = vld [vmem:[#allocation4 + $0x270] ss:$24 sps:$4 sm:$0xff]  }
  0x6e   : > { %1099 = vmatpush1.bf16.msra.mxu0 %v6197_v5  ;;  %6088 = vmatpush1.bf16.msra.mxu1 %v6197_v5  ;;  %v6228_v28 = vld [vmem:[#allocation4 + $0x274] ss:$24 sps:$4 sm:$0xff]   ;;  %v6231_v30 = vld [vmem:[#allocation4 + $0x2a4] ss:$24 sps:$4 sm:$0xff]   ;;  %v6233_v31 = vld [vmem:[#allocation4 + $0x2a0] ss:$24 sps:$4 sm:$0xff]  }
  0x6f   : > { %1100 = vmatprep.subr.bf16.mxu0 %v6198_v6  ;;  %6073 = vmatprep.subr.bf16.mxu1 %v6198_v6  ;;  %v6234_v32 = vld [vmem:[#allocation4 + $0x2d4] ss:$24 sps:$4 sm:$0xff]   ;;  %v6236_v33 = vld [vmem:[#allocation4 + $0x2d0] ss:$24 sps:$4 sm:$0xff]   ;;  %v6281_v43 = vld [vmem:[#allocation4 + $0x44] ss:$24 sps:$4 sm:$0xff]  }
  0x70   : > { %v6266_v34 = vld [vmem:[#allocation4 + $0xc] ss:$24 sps:$4 sm:$0xff]   ;;  %v6733_v35 = vld [vmem:[%s6714_s9] ss:$8 sps:$4 sm:$0xff]   ;;  %v6739_v38 = vld [vmem:[%s6714_s9 + $0x14] ss:$8 sps:$4 sm:$0xff]  }
  0x71   : > { %v6275_v36 = vld [vmem:[#allocation4 + $0x14] ss:$24 sps:$4 sm:$0xff]   ;;  %v6736_v37 = vld [vmem:[%s6714_s9 + $0x80] ss:$8 sps:$4 sm:$0xff]   ;;  %v6270_v44 = vld [vmem:[#allocation4 + $0x38] ss:$24 sps:$4 sm:$0xff]  }
  0x72   : > { %1101 = vmatpush1.bf16.msra.mxu0 %v6200_v7  ;;  %6089 = vmatpush1.bf16.msra.mxu1 %v6200_v7  ;;  %v6742_v39 = vld [vmem:[%s6714_s9 + $0x94] ss:$8 sps:$4 sm:$0xff]   ;;  %v6264_v40 = vld [vmem:[#allocation4 + $0x8] ss:$24 sps:$4 sm:$0xff]   ;;  %v6278_v45 = vld [vmem:[#allocation4 + $0x6c] ss:$24 sps:$4 sm:$0xff]  }
  0x73   : > { %1102 = vmatprep.subr.bf16.mxu0 %v6201_v8  ;;  %6074 = vmatprep.subr.bf16.mxu1 %v6201_v8  ;;  %v6272_v41 = vld [vmem:[#allocation4 + $0x3c] ss:$24 sps:$4 sm:$0xff]   ;;  %v6273_v42 = vld [vmem:[#allocation4 + $0x10] ss:$24 sps:$4 sm:$0xff]   ;;  %v6279_v48 = vld [vmem:[#allocation4 + $0x40] ss:$24 sps:$4 sm:$0xff]  }
  0x74   : > { %v6749_v46 = vld [vmem:[%s6714_s9 + $0x10] ss:$8 sps:$4 sm:$0xff]   ;;  %v6287_v49 = vld [vmem:[#allocation4 + $0x74] ss:$24 sps:$4 sm:$0xff]   ;;  %v6276_v52 = vld [vmem:[#allocation4 + $0x68] ss:$24 sps:$4 sm:$0xff]  }
  0x75   : > { %v6752_v47 = vld [vmem:[%s6714_s9 + $0x90] ss:$8 sps:$4 sm:$0xff]   ;;  %v6755_v50 = vld [vmem:[%s6714_s9 + $0x24] ss:$8 sps:$4 sm:$0xff]   ;;  %v6284_v53 = vld [vmem:[#allocation4 + $0x9c] ss:$24 sps:$4 sm:$0xff]  }
  0x76   : > { %1103 = vmatpush1.bf16.msra.mxu0 %v6203_v9  ;;  %6090 = vmatpush1.bf16.msra.mxu1 %v6203_v9  ;;  %v6758_v51 = vld [vmem:[%s6714_s9 + $0xa4] ss:$8 sps:$4 sm:$0xff]   ;;  %v6285_v54 = vld [vmem:[#allocation4 + $0x70] ss:$24 sps:$4 sm:$0xff]   ;;  %v6294_v60 = vld [vmem:[#allocation4 + $0xa0] ss:$24 sps:$4 sm:$0xff]  }
  0x77   : > { %1104 = vmatprep.subr.bf16.mxu0 %v6204_v10  ;;  %6075 = vmatprep.subr.bf16.mxu1 %v6204_v10  ;;  %v6296_v55 = vld [vmem:[#allocation4 + $0xa4] ss:$24 sps:$4 sm:$0xff]   ;;  %v6282_v56 = vld [vmem:[#allocation4 + $0x98] ss:$24 sps:$4 sm:$0xff]   ;;  %v6765_v58 = vld [vmem:[%s6714_s9 + $0x20] ss:$8 sps:$4 sm:$0xff]  }
  0x78   : > { %v6293_v57 = vld [vmem:[#allocation4 + $0xcc] ss:$24 sps:$4 sm:$0xff]   ;;  %v6768_v59 = vld [vmem:[%s6714_s9 + $0xa0] ss:$8 sps:$4 sm:$0xff]   ;;  %v6771_v62 = vld [vmem:[%s6714_s9 + $0x34] ss:$8 sps:$4 sm:$0xff]  }
  0x79   : > { %v6305_v61 = vld [vmem:[#allocation4 + $0xd4] ss:$24 sps:$4 sm:$0xff]   ;;  %v6291_v0 = vld [vmem:[#allocation4 + $0xc8] ss:$24 sps:$4 sm:$0xff]   ;;  %v6311_v3 = vld [vmem:[#allocation4 + $0x104] ss:$24 sps:$4 sm:$0xff]  }
  0x7a   : > { %1105 = vmatpush1.bf16.msra.mxu0 %v6206_v11  ;;  %6091 = vmatpush1.bf16.msra.mxu1 %v6206_v11  ;;  %v6774_v63 = vld [vmem:[%s6714_s9 + $0xb4] ss:$8 sps:$4 sm:$0xff]   ;;  %v6303_v2 = vld [vmem:[#allocation4 + $0xd0] ss:$24 sps:$4 sm:$0xff]   ;;  %v6309_v5 = vld [vmem:[#allocation4 + $0x100] ss:$24 sps:$4 sm:$0xff]  }
  0x7b   : > { %1106 = vmatprep.subr.bf16.mxu0 %v6207_v12  ;;  %6076 = vmatprep.subr.bf16.mxu1 %v6207_v12  ;;  %v6302_v1 = vld [vmem:[#allocation4 + $0xfc] ss:$24 sps:$4 sm:$0xff]   ;;  %v6300_v4 = vld [vmem:[#allocation4 + $0xf8] ss:$24 sps:$4 sm:$0xff]   ;;  %v6308_v6 = vld [vmem:[#allocation4 + $0x12c] ss:$24 sps:$4 sm:$0xff]  }
  0x7c   : > { %v6317_v7 = vld [vmem:[#allocation4 + $0x134] ss:$24 sps:$4 sm:$0xff]   ;;  %v6781_v8 = vld [vmem:[%s6714_s9 + $0x30] ss:$8 sps:$4 sm:$0xff]   ;;  %v6306_v12 = vld [vmem:[#allocation4 + $0x128] ss:$24 sps:$4 sm:$0xff]  }
  0x7d   : > { %v6784_v9 = vld [vmem:[%s6714_s9 + $0xb0] ss:$8 sps:$4 sm:$0xff]   ;;  %v6787_v10 = vld [vmem:[%s6714_s9 + $0x44] ss:$8 sps:$4 sm:$0xff]   ;;  %s6927_s29 = sshll.u32 %s6710_s14, 9  ;;  %vm1801_vm0 = vcmask 519168  }
  0x7e   : > { %1107 = vmatpush1.bf16.msra.mxu0 %v6209_v14  ;;  %6092 = vmatpush1.bf16.msra.mxu1 %v6209_v14  ;;  %v6790_v11 = vld [vmem:[%s6714_s9 + $0xc4] ss:$8 sps:$4 sm:$0xff]   ;;  %v6315_v14 = vld [vmem:[#allocation4 + $0x130] ss:$24 sps:$4 sm:$0xff]   ;;  %s6938_s30 = scalar_lea.vmem [#allocation6], %s6927_s29  ;;  %s6517_s28 = smov 64  }
  0x7f   : > { %1108 = vmatprep.subr.bf16.mxu0 %v6210_v16  ;;  %6077 = vmatprep.subr.bf16.mxu1 %v6210_v16  ;;  %v6314_v16 = vld [vmem:[#allocation4 + $0x15c] ss:$24 sps:$4 sm:$0xff]   ;;  %s7371_s12 = scalar_lea.vmem [#allocation7], %s6927_s29  ;;  %s7379_s11 = scalar_lea.vmem [#allocation8], %s6927_s29 }
  0x80   : > { %s5866_s8 = sshll.u32 (%p6649_p10), %s6493_s21, 5  ;;  %s5867_s15 = sshll.u32 (%p6649_p10), %s6497_s22, 8 }
  0x81   : > { %s3428_s13 = sadd.s32 (%p6649_p10), %s5867_s15, %s5866_s8  ;;  %s9381_s26 = sld [smem:[#allocation34_spill]] (%p6649_p10) }
  0x82   : > { %1109 = vmatpush1.bf16.msra.mxu0 %v6212_v17  ;;  %6093 = vmatpush1.bf16.msra.mxu1 %v6212_v17  ;;  %v6326_v17 = vld [vmem:[#allocation4 + $0x164] ss:$24 sps:$4 sm:$0xff]   ;;  %s5868_s16 = sshll.u32 (%p6649_p10), %s3428_s13, 2 }
  0x83   : > { %1110 = vmatprep.subr.bf16.mxu0 %v6213_v18  ;;  %6078 = vmatprep.subr.bf16.mxu1 %v6213_v18  ;;  %v6312_v18 = vld [vmem:[#allocation4 + $0x158] ss:$24 sps:$4 sm:$0xff]  }
  0x86   : > { %1111 = vmatpush1.bf16.msra.mxu0 %v6215_v19  ;;  %6094 = vmatpush1.bf16.msra.mxu1 %v6215_v19  ;;  %v6324_v19 = vld [vmem:[#allocation4 + $0x160] ss:$24 sps:$4 sm:$0xff]  }
  0x87   : > { %1112 = vmatprep.subr.bf16.mxu0 %v6216_v20  ;;  %6079 = vmatprep.subr.bf16.mxu1 %v6216_v20  ;;  %v6323_v20 = vld [vmem:[#allocation4 + $0x18c] ss:$24 sps:$4 sm:$0xff]   ;;  %s8846_s6 = scalar_lea.vmem (%p6649_p10), %s9381_s26, %s5868_s16 }
  0x8a   : > { %1113 = vmatpush1.bf16.msra.mxu0 %v6218_v21  ;;  %6095 = vmatpush1.bf16.msra.mxu1 %v6218_v21  ;;  %v6335_v21 = vld [vmem:[#allocation4 + $0x194] ss:$24 sps:$4 sm:$0xff]  }
  0x8b   : > { %1114 = vmatprep.subr.bf16.mxu0 %v6219_v22  ;;  %6080 = vmatprep.subr.bf16.mxu1 %v6219_v22  ;;  %v6797_v22 = vld [vmem:[%s6714_s9 + $0x40] ss:$8 sps:$4 sm:$0xff]  }
  0x8e   : > { %1115 = vmatpush1.bf16.msra.mxu0 %v6221_v23  ;;  %6096 = vmatpush1.bf16.msra.mxu1 %v6221_v23  ;;  %v6800_v23 = vld [vmem:[%s6714_s9 + $0xc0] ss:$8 sps:$4 sm:$0xff]  }
  0x8f   : > { %1116 = vmatprep.subr.bf16.mxu0 %v6222_v24  ;;  %6081 = vmatprep.subr.bf16.mxu1 %v6222_v24  ;;  %v6803_v24 = vld [vmem:[%s6714_s9 + $0x54] ss:$8 sps:$4 sm:$0xff]  }
  0x92   : > { %1117 = vmatpush1.bf16.msra.mxu0 %v6224_v25  ;;  %6097 = vmatpush1.bf16.msra.mxu1 %v6224_v25  ;;  %v6806_v25 = vld [vmem:[%s6714_s9 + $0xd4] ss:$8 sps:$4 sm:$0xff]  }
  0x93   : > { %1118 = vmatprep.subr.bf16.mxu0 %v6225_v26  ;;  %6082 = vmatprep.subr.bf16.mxu1 %v6225_v26  ;;  %v6321_v26 = vld [vmem:[#allocation4 + $0x188] ss:$24 sps:$4 sm:$0xff]  }
  0x96   : > { %1119 = vmatpush1.bf16.msra.mxu0 %v6227_v27  ;;  %6098 = vmatpush1.bf16.msra.mxu1 %v6227_v27  ;;  %v6333_v27 = vld [vmem:[#allocation4 + $0x190] ss:$24 sps:$4 sm:$0xff]  }
  0x97   : > { %1120 = vmatprep.subr.bf16.mxu0 %v6228_v28  ;;  %6083 = vmatprep.subr.bf16.mxu1 %v6228_v28  ;;  %v6332_v28 = vld [vmem:[#allocation4 + $0x1bc] ss:$24 sps:$4 sm:$0xff]  }
  0x9a   : > { %1121 = vmatpush1.bf16.msra.mxu0 %v6230_v29  ;;  %6099 = vmatpush1.bf16.msra.mxu1 %v6230_v29  ;;  %v6341_v29 = vld [vmem:[#allocation4 + $0x1c4] ss:$24 sps:$4 sm:$0xff]  }
  0x9b   : > { %1122 = vmatprep.subr.bf16.mxu0 %v6231_v30  ;;  %6084 = vmatprep.subr.bf16.mxu1 %v6231_v30  ;;  %v6330_v30 = vld [vmem:[#allocation4 + $0x1b8] ss:$24 sps:$4 sm:$0xff]  }
  0x9e   : > { %1123 = vmatpush1.bf16.msra.mxu0 %v6233_v31  ;;  %6100 = vmatpush1.bf16.msra.mxu1 %v6233_v31  ;;  %v6339_v31 = vld [vmem:[#allocation4 + $0x1c0] ss:$24 sps:$4 sm:$0xff]  }
  0x9f   : > { %1124 = vmatprep.subr.bf16.mxu0 %v6234_v32  ;;  %6085 = vmatprep.subr.bf16.mxu1 %v6234_v32  ;;  %v6338_v32 = vld [vmem:[#allocation4 + $0x1ec] ss:$24 sps:$4 sm:$0xff]  }
  0xa2   : > { %1125 = vmatpush1.bf16.msra.mxu0 %v6236_v33  ;;  %6101 = vmatpush1.bf16.msra.mxu1 %v6236_v33  ;;  %v6347_v33 = vld [vmem:[#allocation4 + $0x1f4] ss:$24 sps:$4 sm:$0xff]  }
  0xa3   : > { %1287 = vmatprep.subr.bf16.mxu1 %v6266_v34  ;;  %1480 = vmatprep.subr.bf16.mxu0 %v6275_v36  ;;  %v6813_v34 = vld [vmem:[%s6714_s9 + $0x50] ss:$8 sps:$4 sm:$0xff]  }
  0xa4   : > { %v6816_v36 = vld [vmem:[%s6714_s9 + $0xd0] ss:$8 sps:$4 sm:$0xff]  }
  0xa5   : > { %1127 = vmatmul.mubr.bf16.vlgmr.msra.gmra.mrb[0].mxu0 %v6733_v35  ;;  %1207 = vmatmul.mubr.bf16.vlgmr.msra.gmra.mrb[0].mxu1 %v6736_v37 }
  0xa6   : > { %1136 = vmatprep.mubr.bf16.mxu0 %v6739_v38  ;;  %1216 = vmatprep.mubr.bf16.mxu1 %v6742_v39 }
  0xa7   : > { %1288 = vmatpush1.bf16.msra.mxu1 %v6264_v40  ;;  %1481 = vmatpush1.bf16.msra.mxu0 %v6273_v42  ;;  %v6819_v40 = vld [vmem:[%s6714_s9 + $0x64] ss:$8 sps:$4 sm:$0xff]   ;;  %v6336_v42 = vld [vmem:[#allocation4 + $0x1e8] ss:$24 sps:$4 sm:$0xff]  }
  0xa8   : > { %1289 = vmatprep.subr.bf16.mxu1 %v6272_v41  ;;  %1482 = vmatprep.subr.bf16.mxu0 %v6281_v43  ;;  %v6822_v41 = vld [vmem:[%s6714_s9 + $0xe4] ss:$8 sps:$4 sm:$0xff]   ;;  %v6345_v43 = vld [vmem:[#allocation4 + $0x1f0] ss:$24 sps:$4 sm:$0xff]  }
  0xab   : > { %1290 = vmatpush1.bf16.msra.mxu1 %v6270_v44  ;;  %1483 = vmatpush1.bf16.msra.mxu0 %v6279_v48  ;;  %v6344_v44 = vld [vmem:[#allocation4 + $0x21c] ss:$24 sps:$4 sm:$0xff]   ;;  %v6342_v48 = vld [vmem:[#allocation4 + $0x218] ss:$24 sps:$4 sm:$0xff]  }
  0xac   : > { %1291 = vmatprep.subr.bf16.mxu1 %v6278_v45  ;;  %1484 = vmatprep.subr.bf16.mxu0 %v6287_v49  ;;  %v6356_v45 = vld [vmem:[#allocation4 + $0x224] ss:$24 sps:$4 sm:$0xff]   ;;  %v6354_v49 = vld [vmem:[#allocation4 + $0x220] ss:$24 sps:$4 sm:$0xff]  }
  0xad   : > { %1137 = vmatmul.mubr.bf16.gmra.mrb[4].mxu0 %v6749_v46  ;;  %1217 = vmatmul.mubr.bf16.gmra.mrb[4].mxu1 %v6752_v47 }
  0xae   : > { %1146 = vmatprep.mubr.bf16.mxu0 %v6755_v50  ;;  %1226 = vmatprep.mubr.bf16.mxu1 %v6758_v51 }
  0xaf   : > { %1292 = vmatpush1.bf16.msra.mxu1 %v6276_v52  ;;  %1485 = vmatpush1.bf16.msra.mxu0 %v6285_v54  ;;  %v6353_v52 = vld [vmem:[#allocation4 + $0x24c] ss:$24 sps:$4 sm:$0xff]   ;;  %v6829_v54 = vld [vmem:[%s6714_s9 + $0x60] ss:$8 sps:$4 sm:$0xff]  }
  0xb0   : > { %1293 = vmatprep.subr.bf16.mxu1 %v6284_v53  ;;  %1486 = vmatprep.subr.bf16.mxu0 %v6296_v55  ;;  %v6365_v53 = vld [vmem:[#allocation4 + $0x254] ss:$24 sps:$4 sm:$0xff]   ;;  %v6832_v55 = vld [vmem:[%s6714_s9 + $0xe0] ss:$8 sps:$4 sm:$0xff]  }
  0xb3   : > { %1294 = vmatpush1.bf16.msra.mxu1 %v6282_v56  ;;  %1487 = vmatpush1.bf16.msra.mxu0 %v6294_v60  ;;  %v6835_v56 = vld [vmem:[%s6714_s9 + $0x74] ss:$8 sps:$4 sm:$0xff]   ;;  %v6351_v60 = vld [vmem:[#allocation4 + $0x248] ss:$24 sps:$4 sm:$0xff]  }
  0xb4   : > { %1295 = vmatprep.subr.bf16.mxu1 %v6293_v57  ;;  %1488 = vmatprep.subr.bf16.mxu0 %v6305_v61  ;;  %v6838_v57 = vld [vmem:[%s6714_s9 + $0xf4] ss:$8 sps:$4 sm:$0xff]   ;;  %v6363_v61 = vld [vmem:[#allocation4 + $0x250] ss:$24 sps:$4 sm:$0xff]  }
  0xb5   : > { %1147 = vmatmul.mubr.bf16.gmra.mrb[8].mxu0 %v6765_v58  ;;  %1227 = vmatmul.mubr.bf16.gmra.mrb[8].mxu1 %v6768_v59 }
  0xb6   : > { %1156 = vmatprep.mubr.bf16.mxu0 %v6771_v62  ;;  %1236 = vmatprep.mubr.bf16.mxu1 %v6774_v63 }
  0xb7   : > { %1296 = vmatpush1.bf16.msra.mxu1 %v6291_v0  ;;  %1489 = vmatpush1.bf16.msra.mxu0 %v6303_v2  ;;  %v6362_v0 = vld [vmem:[#allocation4 + $0x27c] ss:$24 sps:$4 sm:$0xff]   ;;  %v6360_v2 = vld [vmem:[#allocation4 + $0x278] ss:$24 sps:$4 sm:$0xff]  }
  0xb8   : > { %1297 = vmatprep.subr.bf16.mxu1 %v6302_v1  ;;  %1490 = vmatprep.subr.bf16.mxu0 %v6311_v3  ;;  %v6371_v1 = vld [vmem:[#allocation4 + $0x284] ss:$24 sps:$4 sm:$0xff]   ;;  %v6369_v3 = vld [vmem:[#allocation4 + $0x280] ss:$24 sps:$4 sm:$0xff]  }
  0xbb   : > { %1298 = vmatpush1.bf16.msra.mxu1 %v6300_v4  ;;  %1491 = vmatpush1.bf16.msra.mxu0 %v6309_v5  ;;  %v6368_v4 = vld [vmem:[#allocation4 + $0x2ac] ss:$24 sps:$4 sm:$0xff]  }
  0xbc   : > { %1299 = vmatprep.subr.bf16.mxu1 %v6308_v6  ;;  %1492 = vmatprep.subr.bf16.mxu0 %v6317_v7  ;;  %v6377_v5 = vld [vmem:[#allocation4 + $0x2b4] ss:$24 sps:$4 sm:$0xff]   ;;  %v6350_v6 = vld [vmem:[%s6714_s9 + $0x70] ss:$8 sps:$4 sm:$0xff]  }
  0xbd   : > { %1157 = vmatmul.mubr.bf16.gmra.mrb[12].mxu0 %v6781_v8  ;;  %1237 = vmatmul.mubr.bf16.gmra.mrb[12].mxu1 %v6784_v9  ;;  %v6846_v7 = vld [vmem:[%s6714_s9 + $0xf0] ss:$8 sps:$4 sm:$0xff]  }
  0xbe   : > { %1166 = vmatprep.mubr.bf16.mxu0 %v6787_v10  ;;  %1246 = vmatprep.mubr.bf16.mxu1 %v6790_v11 }
  0xbf   : > { %1300 = vmatpush1.bf16.msra.mxu1 %v6306_v12  ;;  %1493 = vmatpush1.bf16.msra.mxu0 %v6315_v14  ;;  %v6366_v12 = vld [vmem:[#allocation4 + $0x2a8] ss:$24 sps:$4 sm:$0xff]  }
  0xc0   : > { %1301 = vmatprep.subr.bf16.mxu1 %v6314_v16  ;;  %1494 = vmatprep.subr.bf16.mxu0 %v6326_v17  ;;  %v6375_v14 = vld [vmem:[#allocation4 + $0x2b0] ss:$24 sps:$4 sm:$0xff]   ;;  %v6374_v16 = vld [vmem:[#allocation4 + $0x2dc] ss:$24 sps:$4 sm:$0xff]  }
  0xc1   : > { %v6380_v17 = vld [vmem:[#allocation4 + $0x2e4] ss:$24 sps:$4 sm:$0xff]  }
  0xc3   : > { %1302 = vmatpush1.bf16.msra.mxu1 %v6312_v18  ;;  %1495 = vmatpush1.bf16.msra.mxu0 %v6324_v19  ;;  %v6372_v18 = vld [vmem:[#allocation4 + $0x2d8] ss:$24 sps:$4 sm:$0xff]  }
  0xc4   : > { %1303 = vmatprep.subr.bf16.mxu1 %v6323_v20  ;;  %1496 = vmatprep.subr.bf16.mxu0 %v6335_v21  ;;  %v6378_v19 = vld [vmem:[#allocation4 + $0x2e0] ss:$24 sps:$4 sm:$0xff]  }
  0xc5   : > { %1167 = vmatmul.mubr.bf16.gmra.mrb[16].mxu0 %v6797_v22  ;;  %1247 = vmatmul.mubr.bf16.gmra.mrb[16].mxu1 %v6800_v23 }
  0xc6   : > { %1176 = vmatprep.mubr.bf16.mxu0 %v6803_v24  ;;  %1256 = vmatprep.mubr.bf16.mxu1 %v6806_v25 }
  0xc7   : > { %1304 = vmatpush1.bf16.msra.mxu1 %v6321_v26  ;;  %1497 = vmatpush1.bf16.msra.mxu0 %v6333_v27 }
  0xc8   : > { %1305 = vmatprep.subr.bf16.mxu1 %v6332_v28  ;;  %1498 = vmatprep.subr.bf16.mxu0 %v6341_v29 }
  0xcb   : > { %1306 = vmatpush1.bf16.msra.mxu1 %v6330_v30  ;;  %1499 = vmatpush1.bf16.msra.mxu0 %v6339_v31 }
  0xcc   : > { %1307 = vmatprep.subr.bf16.mxu1 %v6338_v32  ;;  %1500 = vmatprep.subr.bf16.mxu0 %v6347_v33 }
  0xcd   : > { %1177 = vmatmul.mubr.bf16.gmra.mrb[20].mxu0 %v6813_v34  ;;  %1257 = vmatmul.mubr.bf16.gmra.mrb[20].mxu1 %v6816_v36 }
  0xce   : > { %1186 = vmatprep.mubr.bf16.mxu0 %v6819_v40  ;;  %1266 = vmatprep.mubr.bf16.mxu1 %v6822_v41 }
  0xcf   : > { %1308 = vmatpush1.bf16.msra.mxu1 %v6336_v42  ;;  %1501 = vmatpush1.bf16.msra.mxu0 %v6345_v43 }
  0xd0   : > { %1309 = vmatprep.subr.bf16.mxu1 %v6344_v44  ;;  %1502 = vmatprep.subr.bf16.mxu0 %v6356_v45 }
  0xd3   : > { %1310 = vmatpush1.bf16.msra.mxu1 %v6342_v48  ;;  %1503 = vmatpush1.bf16.msra.mxu0 %v6354_v49 }
  0xd4   : > { %1311 = vmatprep.subr.bf16.mxu1 %v6353_v52  ;;  %1504 = vmatprep.subr.bf16.mxu0 %v6365_v53 }
  0xd5   : > { %1187 = vmatmul.mubr.bf16.gmra.mrb[24].mxu0 %v6829_v54  ;;  %1267 = vmatmul.mubr.bf16.gmra.mrb[24].mxu1 %v6832_v55 }
  0xd6   : > { %1196 = vmatprep.mubr.bf16.mxu0 %v6835_v56  ;;  %1276 = vmatprep.mubr.bf16.mxu1 %v6838_v57 }
  0xd7   : > { %1312 = vmatpush1.bf16.msra.mxu1 %v6351_v60  ;;  %1505 = vmatpush1.bf16.msra.mxu0 %v6363_v61 }
  0xd8   : > { %1313 = vmatprep.subr.bf16.mxu1 %v6362_v0  ;;  %1506 = vmatprep.subr.bf16.mxu0 %v6371_v1 }
  0xdb   : > { %1314 = vmatpush1.bf16.msra.mxu1 %v6360_v2  ;;  %1507 = vmatpush1.bf16.msra.mxu0 %v6369_v3 }
  0xdc   : > { %1315 = vmatprep.subr.bf16.mxu1 %v6368_v4  ;;  %1508 = vmatprep.subr.bf16.mxu0 %v6377_v5 }
  0xdd   : > { %1197 = vmatmul.mubr.bf16.gmra.mrb[28].mxu0 %v6350_v6  ;;  %1277 = vmatmul.mubr.bf16.gmra.mrb[28].mxu1 %v6846_v7 }
  0xde   : > { %1319 = vmatprep.mubr.bf16.mxu1 %v6725_v13  ;;  %1512 = vmatprep.mubr.bf16.mxu0 %v6725_v13  ;;  %v424_v13 = vlaneseq }
  0xdf   : > { %1316 = vmatpush1.bf16.msra.mxu1 %v6366_v12  ;;  %1509 = vmatpush1.bf16.msra.mxu0 %v6375_v14 }
  0xe0   : > { %1317 = vmatprep.subr.bf16.mxu1 %v6374_v16  ;;  %1510 = vmatprep.subr.bf16.mxu0 %v6380_v17 }
  0xe3   : > { %1318 = vmatpush1.bf16.msra.mxu1 %v6372_v18  ;;  %1511 = vmatpush1.bf16.msra.mxu0 %v6378_v19 }
  0xe6   : > { %1320 = vmatmul.mubr.bf16.vlgmr.msra.gmra.mrb[32].mxu1 %v6733_v35  ;;  %1513 = vmatmul.mubr.bf16.vlgmr.msra.gmra.mrb[32].mxu0 %v6733_v35 }
  0xe7   : > { %1329 = vmatprep.mubr.bf16.mxu1 %v6739_v38  ;;  %1522 = vmatprep.mubr.bf16.mxu0 %v6739_v38 }
  0xee   : > { %1330 = vmatmul.mubr.bf16.gmra.mrb[36].mxu1 %v6749_v46  ;;  %1523 = vmatmul.mubr.bf16.gmra.mrb[36].mxu0 %v6749_v46 }
  0xef   : > { %1339 = vmatprep.mubr.bf16.mxu1 %v6755_v50  ;;  %1532 = vmatprep.mubr.bf16.mxu0 %v6755_v50 }
  0xf6   : > { %1340 = vmatmul.mubr.bf16.gmra.mrb[40].mxu1 %v6765_v58  ;;  %1533 = vmatmul.mubr.bf16.gmra.mrb[40].mxu0 %v6765_v58 }
  0xf7   : > { %1349 = vmatprep.mubr.bf16.mxu1 %v6771_v62  ;;  %1542 = vmatprep.mubr.bf16.mxu0 %v6771_v62 }
  0xfe   : > { %1350 = vmatmul.mubr.bf16.gmra.mrb[44].mxu1 %v6781_v8  ;;  %1543 = vmatmul.mubr.bf16.gmra.mrb[44].mxu0 %v6781_v8 }
  0xff   : > { %1359 = vmatprep.mubr.bf16.mxu1 %v6787_v10  ;;  %1552 = vmatprep.mubr.bf16.mxu0 %v6787_v10 }
 0x106   : > { %1360 = vmatmul.mubr.bf16.gmra.mrb[48].mxu1 %v6797_v22  ;;  %1553 = vmatmul.mubr.bf16.gmra.mrb[48].mxu0 %v6797_v22 }
 0x107   : > { %1369 = vmatprep.mubr.bf16.mxu1 %v6803_v24  ;;  %1562 = vmatprep.mubr.bf16.mxu0 %v6803_v24 }
 0x10e   : > { %1370 = vmatmul.mubr.bf16.gmra.mrb[52].mxu1 %v6813_v34  ;;  %1563 = vmatmul.mubr.bf16.gmra.mrb[52].mxu0 %v6813_v34 }
 0x10f   : > { %1379 = vmatprep.mubr.bf16.mxu1 %v6819_v40  ;;  %1572 = vmatprep.mubr.bf16.mxu0 %v6819_v40 }
 0x116   : > { %1380 = vmatmul.mubr.bf16.gmra.mrb[56].mxu1 %v6829_v54  ;;  %1573 = vmatmul.mubr.bf16.gmra.mrb[56].mxu0 %v6829_v54 }
 0x117   : > { %1389 = vmatprep.mubr.bf16.mxu1 %v6835_v56  ;;  %1582 = vmatprep.mubr.bf16.mxu0 %v6835_v56 }
 0x11e   : > { %1390 = vmatmul.mubr.bf16.gmra.mrb[60].mxu1 %v6350_v6  ;;  %1583 = vmatmul.mubr.bf16.gmra.mrb[60].mxu0 %v6350_v6 }
 0x11f   : > { %1399 = vmatprep.mubr.bf16.mxu1 %v6728_v15  ;;  %1592 = vmatprep.mubr.bf16.mxu0 %v6728_v15  ;;  %v6911_v15 = vshrl.u32 %v424_v13, 7 }
 0x121   : > { %v426_v35 = vsub.s32 0, %v6911_v15  ;;  %v430_v38 = vsub.s32 1, %v6911_v15 }
 0x126   : > { %1400 = vmatmul.mubr.bf16.gmra.mrb[64].mxu1 %v6736_v37  ;;  %1593 = vmatmul.mubr.bf16.gmra.mrb[64].mxu0 %v6736_v37  ;;  %v6917_v37 = vld [vmem:[%s9267_s2] sm:$0x3f] }
 0x127   : > { %1409 = vmatprep.mubr.bf16.mxu1 %v6742_v39  ;;  %1602 = vmatprep.mubr.bf16.mxu0 %v6742_v39  ;;  %v6921_v39 = vrot.slane %v6917_v37, %v426_v35  ;;  %v6924_v46 = vrot.slane %v6917_v37, %v430_v38 }
 0x12e   : > { %1410 = vmatmul.mubr.bf16.gmra.mrb[68].mxu1 %v6752_v47  ;;  %1603 = vmatmul.mubr.bf16.gmra.mrb[68].mxu0 %v6752_v47 }
 0x12f   : > { %1419 = vmatprep.mubr.bf16.mxu1 %v6758_v51  ;;  %1612 = vmatprep.mubr.bf16.mxu0 %v6758_v51 }
 0x136   : > { %1420 = vmatmul.mubr.bf16.gmra.mrb[72].mxu1 %v6768_v59  ;;  %1613 = vmatmul.mubr.bf16.gmra.mrb[72].mxu0 %v6768_v59 }
 0x137   : > { %1429 = vmatprep.mubr.bf16.mxu1 %v6774_v63  ;;  %1622 = vmatprep.mubr.bf16.mxu0 %v6774_v63 }
 0x13e   : > { %1430 = vmatmul.mubr.bf16.gmra.mrb[76].mxu1 %v6784_v9  ;;  %1623 = vmatmul.mubr.bf16.gmra.mrb[76].mxu0 %v6784_v9 }
 0x13f   : > { %1439 = vmatprep.mubr.bf16.mxu1 %v6790_v11  ;;  %1632 = vmatprep.mubr.bf16.mxu0 %v6790_v11 }
 0x146   : > { %1440 = vmatmul.mubr.bf16.gmra.mrb[80].mxu1 %v6800_v23  ;;  %1633 = vmatmul.mubr.bf16.gmra.mrb[80].mxu0 %v6800_v23 }
 0x147   : > { %1449 = vmatprep.mubr.bf16.mxu1 %v6806_v25  ;;  %1642 = vmatprep.mubr.bf16.mxu0 %v6806_v25 }
 0x14e   : > { %1450 = vmatmul.mubr.bf16.gmra.mrb[84].mxu1 %v6816_v36  ;;  %1643 = vmatmul.mubr.bf16.gmra.mrb[84].mxu0 %v6816_v36 }
 0x14f   : > { %1459 = vmatprep.mubr.bf16.mxu1 %v6822_v41  ;;  %1652 = vmatprep.mubr.bf16.mxu0 %v6822_v41 }
 0x156   : > { %1460 = vmatmul.mubr.bf16.gmra.mrb[88].mxu1 %v6832_v55  ;;  %1653 = vmatmul.mubr.bf16.gmra.mrb[88].mxu0 %v6832_v55 }
 0x157   : > { %1469 = vmatprep.mubr.bf16.mxu1 %v6838_v57  ;;  %1662 = vmatprep.mubr.bf16.mxu0 %v6838_v57 }
 0x15e   : > { %1470 = vmatmul.mubr.bf16.gmra.mrb[92].mxu1 %v6846_v7  ;;  %1663 = vmatmul.mubr.bf16.gmra.mrb[92].mxu0 %v6846_v7 }
 0x178   : > { %v1128_v47 = vpop.f32.mrb[0].mxu0  ;;  %v1208_v50 = vpop.f32.mrb[0].mxu1 }
 0x179   : > { %v1129_v51 = vadd.f32 %v1128_v47, %v6921_v39  ;;  %v1209_v58 = vadd.f32 %v1208_v50, %v6921_v39  ;;  %v1130_v59 = vpop.f32.mrb[1].mxu0  ;;  %v1210_v62 = vpop.f32.mrb[1].mxu1 }
 0x17a   : > { %v1131_v63 = vadd.f32 %v1130_v59, %v6924_v46  ;;  %v1211_v8 = vadd.f32 %v1210_v62, %v6924_v46  ;;  %v1132_v9 = vpop.f32.mrb[2].mxu0  ;;  %v1212_v10 = vpop.f32.mrb[2].mxu1 }
 0x17b   : > { %v5878_v11 = vpack.c.bf16 %v1129_v51, %v1129_v51  ;;  %v5894_v20 = vpack.c.bf16 %v1209_v58, %v1209_v58  ;;  %v1133_v21 = vadd.f32 %v1132_v9, %v6921_v39  ;;  %v1213_v22 = vadd.f32 %v1212_v10, %v6921_v39  ;;  %v1134_v23 = vpop.f32.mrb[3].mxu0  ;;  %v1214_v24 = vpop.f32.mrb[3].mxu1 }
 0x17c   : > { %v5974_v25 = vpack.c.bf16 %v1131_v63, %v1131_v63  ;;  %v5990_v26 = vpack.c.bf16 %v1211_v8, %v1211_v8  ;;  %v1135_v27 = vadd.f32 %v1134_v23, %v6924_v46  ;;  %v1215_v28 = vadd.f32 %v1214_v24, %v6924_v46 }
 0x17d   : > { %1802 = vst.msk [vmem:[%s6938_s30] sm:$0xf] %vm1801_vm0, %v5878_v11  ;;  %1818 = vst.msk [vmem:[%s6938_s30 + $0x40] sm:$0xf] %vm1801_vm0, %v5894_v20  ;;  %v6944_v29 = vpack.c.bf16 %v1133_v21, %v1133_v21  ;;  %v5895_v30 = vpack.c.bf16 %v1213_v22, %v1213_v22  ;;  %2154 = vrot.lane.b32.xlu0 %v5878_v11, %s6517_s28 }
 0x17e   : > { %5607 = vst.msk [vmem:[%s6938_s30 + $0x100] sm:$0xf] %vm1801_vm0, %v5974_v25  ;;  %5623 = vst.msk [vmem:[%s6938_s30 + $0x140] sm:$0xf] %vm1801_vm0, %v5990_v26  ;;  %v5975_v31 = vpack.c.bf16 %v1135_v27, %v1135_v27  ;;  %v5991_v32 = vpack.c.bf16 %v1215_v28, %v1215_v28 }
 0x17f   : > { %1803 = vst.msk [vmem:[%s6938_s30 + $0x4] sm:$0xf] %vm1801_vm0, %v6944_v29  ;;  %1819 = vst.msk [vmem:[%s6938_s30 + $0x44] sm:$0xf] %vm1801_vm0, %v5895_v30  ;;  %2188 = vrot.lane.b32.xlu1 %v5895_v30, %s6517_s28 }
 0x180   : > { %5608 = vst.msk [vmem:[%s6938_s30 + $0x104] sm:$0xf] %vm1801_vm0, %v5975_v31  ;;  %5624 = vst.msk [vmem:[%s6938_s30 + $0x144] sm:$0xf] %vm1801_vm0, %v5991_v32  ;;  %v1138_v33 = vpop.f32.mrb[4].mxu0  ;;  %v1218_v34 = vpop.f32.mrb[4].mxu1 }
 0x181   : > { %2186 = vrot.lane.b32.xlu0 %v5894_v20, %s6517_s28  ;;  %v1139_v36 = vadd.f32 %v1138_v33, %v6921_v39  ;;  %v1140_v40 = vpop.f32.mrb[5].mxu0  ;;  %v1219_v41 = vadd.f32 %v1218_v34, %v6921_v39  ;;  %v1220_v42 = vpop.f32.mrb[5].mxu1 }
 0x182   : > { %v1141_v43 = vadd.f32 %v1140_v40, %v6924_v46  ;;  %v1142_v44 = vpop.f32.mrb[6].mxu0  ;;  %v1221_v45 = vadd.f32 %v1220_v42, %v6924_v46  ;;  %v1222_v48 = vpop.f32.mrb[6].mxu1 }
 0x183   : > { %v5880_v49 = vpack.c.bf16 %v1139_v36, %v1139_v36  ;;  %3026 = vrot.lane.b32.xlu1 %v5975_v31, %s6517_s28  ;;  %v1143_v52 = vadd.f32 %v1142_v44, %v6921_v39  ;;  %v1144_v53 = vpop.f32.mrb[7].mxu0  ;;  %v5896_v54 = vpack.c.bf16 %v1219_v41, %v1219_v41  ;;  %v1223_v55 = vadd.f32 %v1222_v48, %v6921_v39  ;;  %v1224_v56 = vpop.f32.mrb[7].mxu1 }
 0x184   : > { %v6969_v57 = vpack.c.bf16 %v1141_v43, %v1141_v43  ;;  %v1145_v60 = vadd.f32 %v1144_v53, %v6924_v46  ;;  %v6972_v61 = vpack.c.bf16 %v1221_v45, %v1221_v45  ;;  %v1225_v0 = vadd.f32 %v1224_v56, %v6924_v46 }
 0x185   : > { %1804 = vst.msk [vmem:[%s6938_s30 + $0x8] sm:$0xf] %vm1801_vm0, %v5880_v49  ;;  %v5881_v1 = vpack.c.bf16 %v1143_v52, %v1143_v52  ;;  %3024 = vrot.lane.b32.xlu0 %v5974_v25, %s6517_s28  ;;  %1820 = vst.msk [vmem:[%s6938_s30 + $0x48] sm:$0xf] %vm1801_vm0, %v5896_v54  ;;  %v5897_v2 = vpack.c.bf16 %v1223_v55, %v1223_v55 }
 0x186   : > { %5609 = vst.msk [vmem:[%s6938_s30 + $0x108] sm:$0xf] %vm1801_vm0, %v6969_v57  ;;  %v6983_v3 = vpack.c.bf16 %v1145_v60, %v1145_v60  ;;  %5625 = vst.msk [vmem:[%s6938_s30 + $0x148] sm:$0xf] %vm1801_vm0, %v6972_v61  ;;  %v6988_v4 = vpack.c.bf16 %v1225_v0, %v1225_v0 }
 0x187   : > { %1805 = vst.msk [vmem:[%s6938_s30 + $0xc] sm:$0xf] %vm1801_vm0, %v5881_v1  ;;  %3058 = vrot.lane.b32.xlu1 %v5991_v32, %s6517_s28  ;;  %1821 = vst.msk [vmem:[%s6938_s30 + $0x4c] sm:$0xf] %vm1801_vm0, %v5897_v2 }
 0x188   : > { %5610 = vst.msk [vmem:[%s6938_s30 + $0x10c] sm:$0xf] %vm1801_vm0, %v6983_v3  ;;  %5626 = vst.msk [vmem:[%s6938_s30 + $0x14c] sm:$0xf] %vm1801_vm0, %v6988_v4  ;;  %v1148_v5 = vpop.f32.mrb[8].mxu0  ;;  %v1228_v6 = vpop.f32.mrb[8].mxu1 }
 0x189   : > { %3056 = vrot.lane.b32.xlu0 %v5990_v26, %s6517_s28  ;;  %v1149_v7 = vadd.f32 %v1148_v5, %v6921_v39  ;;  %v1150_v12 = vpop.f32.mrb[9].mxu0  ;;  %v1229_v14 = vadd.f32 %v1228_v6, %v6921_v39  ;;  %v1230_v16 = vpop.f32.mrb[9].mxu1 }
 0x18a   : > { %v1151_v17 = vadd.f32 %v1150_v12, %v6924_v46  ;;  %v1152_v18 = vpop.f32.mrb[10].mxu0  ;;  %v1231_v19 = vadd.f32 %v1230_v16, %v6924_v46  ;;  %v1232_v13 = vpop.f32.mrb[10].mxu1 }
 0x18b   : > { %2158 = vrot.lane.b32.xlu1 %v5880_v49, %s6517_s28  ;;  %v7007_v35 = vpack.c.bf16 %v1149_v7, %v1149_v7  ;;  %v1153_v38 = vadd.f32 %v1152_v18, %v6921_v39  ;;  %v1154_v47 = vpop.f32.mrb[11].mxu0  ;;  %v7010_v50 = vpack.c.bf16 %v1229_v14, %v1229_v14  ;;  %v1233_v51 = vadd.f32 %v1232_v13, %v6921_v39  ;;  %v1234_v58 = vpop.f32.mrb[11].mxu1 }
 0x18c   : > { %v7013_v59 = vpack.c.bf16 %v1151_v17, %v1151_v17  ;;  %v1155_v62 = vadd.f32 %v1154_v47, %v6924_v46  ;;  %v7016_v63 = vpack.c.bf16 %v1231_v19, %v1231_v19  ;;  %v1235_v8 = vadd.f32 %v1234_v58, %v6924_v46 }
 0x18d   : > { %2156 = vrot.lane.b32.xlu0 %v6944_v29, %s6517_s28  ;;  %1806 = vst.msk [vmem:[%s6938_s30 + $0x10] sm:$0xf] %vm1801_vm0, %v7007_v35  ;;  %v7024_v9 = vpack.c.bf16 %v1153_v38, %v1153_v38  ;;  %1822 = vst.msk [vmem:[%s6938_s30 + $0x50] sm:$0xf] %vm1801_vm0, %v7010_v50  ;;  %v7029_v10 = vpack.c.bf16 %v1233_v51, %v1233_v51 }
 0x18e   : > { %5611 = vst.msk [vmem:[%s6938_s30 + $0x110] sm:$0xf] %vm1801_vm0, %v7013_v59  ;;  %v7034_v11 = vpack.c.bf16 %v1155_v62, %v1155_v62  ;;  %5627 = vst.msk [vmem:[%s6938_s30 + $0x150] sm:$0xf] %vm1801_vm0, %v7016_v63  ;;  %v7039_v20 = vpack.c.bf16 %v1235_v8, %v1235_v8 }
 0x18f   : > { %2160 = vrot.lane.b32.xlu1 %v5881_v1, %s6517_s28  ;;  %1807 = vst.msk [vmem:[%s6938_s30 + $0x14] sm:$0xf] %vm1801_vm0, %v7024_v9  ;;  %1823 = vst.msk [vmem:[%s6938_s30 + $0x54] sm:$0xf] %vm1801_vm0, %v7029_v10 }
 0x190   : > { %5612 = vst.msk [vmem:[%s6938_s30 + $0x114] sm:$0xf] %vm1801_vm0, %v7034_v11  ;;  %5628 = vst.msk [vmem:[%s6938_s30 + $0x154] sm:$0xf] %vm1801_vm0, %v7039_v20  ;;  %v1158_v21 = vpop.f32.mrb[12].mxu0  ;;  %v1238_v22 = vpop.f32.mrb[12].mxu1 }
 0x191   : > { %2190 = vrot.lane.b32.xlu0 %v5896_v54, %s6517_s28  ;;  %v1159_v23 = vadd.f32 %v1158_v21, %v6921_v39  ;;  %v1160_v24 = vpop.f32.mrb[13].mxu0  ;;  %v1239_v25 = vadd.f32 %v1238_v22, %v6921_v39  ;;  %v1240_v26 = vpop.f32.mrb[13].mxu1 }
 0x192   : > { %v1161_v27 = vadd.f32 %v1160_v24, %v6924_v46  ;;  %v1162_v28 = vpop.f32.mrb[14].mxu0  ;;  %v1241_v29 = vadd.f32 %v1240_v26, %v6924_v46  ;;  %v1242_v30 = vpop.f32.mrb[14].mxu1 }
 0x193   : > { %2192 = vrot.lane.b32.xlu1 %v5897_v2, %s6517_s28  ;;  %v7060_v31 = vpack.c.bf16 %v1159_v23, %v1159_v23  ;;  %v1163_v32 = vadd.f32 %v1162_v28, %v6921_v39  ;;  %v1164_v33 = vpop.f32.mrb[15].mxu0  ;;  %v7063_v34 = vpack.c.bf16 %v1239_v25, %v1239_v25  ;;  %v1243_v36 = vadd.f32 %v1242_v30, %v6921_v39  ;;  %v1244_v40 = vpop.f32.mrb[15].mxu1 }
 0x194   : > { %v7066_v41 = vpack.c.bf16 %v1161_v27, %v1161_v27  ;;  %v1165_v42 = vadd.f32 %v1164_v33, %v6924_v46  ;;  %v7069_v43 = vpack.c.bf16 %v1241_v29, %v1241_v29  ;;  %v1245_v44 = vadd.f32 %v1244_v40, %v6924_v46 }
 0x195   : > { %3028 = vrot.lane.b32.xlu0 %v6969_v57, %s6517_s28  ;;  %1808 = vst.msk [vmem:[%s6938_s30 + $0x18] sm:$0xf] %vm1801_vm0, %v7060_v31  ;;  %v7077_v45 = vpack.c.bf16 %v1163_v32, %v1163_v32  ;;  %1824 = vst.msk [vmem:[%s6938_s30 + $0x58] sm:$0xf] %vm1801_vm0, %v7063_v34  ;;  %v7082_v48 = vpack.c.bf16 %v1243_v36, %v1243_v36 }
 0x196   : > { %5613 = vst.msk [vmem:[%s6938_s30 + $0x118] sm:$0xf] %vm1801_vm0, %v7066_v41  ;;  %v7087_v49 = vpack.c.bf16 %v1165_v42, %v1165_v42  ;;  %5629 = vst.msk [vmem:[%s6938_s30 + $0x158] sm:$0xf] %vm1801_vm0, %v7069_v43  ;;  %v7092_v52 = vpack.c.bf16 %v1245_v44, %v1245_v44 }
 0x197   : > { %3030 = vrot.lane.b32.xlu1 %v6983_v3, %s6517_s28  ;;  %1809 = vst.msk [vmem:[%s6938_s30 + $0x1c] sm:$0xf] %vm1801_vm0, %v7077_v45  ;;  %1825 = vst.msk [vmem:[%s6938_s30 + $0x5c] sm:$0xf] %vm1801_vm0, %v7082_v48 }
 0x198   : > { %5614 = vst.msk [vmem:[%s6938_s30 + $0x11c] sm:$0xf] %vm1801_vm0, %v7087_v49  ;;  %5630 = vst.msk [vmem:[%s6938_s30 + $0x15c] sm:$0xf] %vm1801_vm0, %v7092_v52  ;;  %v1168_v53 = vpop.f32.mrb[16].mxu0  ;;  %v1248_v54 = vpop.f32.mrb[16].mxu1 }
 0x199   : > { %3060 = vrot.lane.b32.xlu0 %v6972_v61, %s6517_s28  ;;  %v1169_v55 = vadd.f32 %v1168_v53, %v6921_v39  ;;  %v1170_v56 = vpop.f32.mrb[17].mxu0  ;;  %v1249_v57 = vadd.f32 %v1248_v54, %v6921_v39  ;;  %v1250_v60 = vpop.f32.mrb[17].mxu1 }
 0x19a   : > { %v1171_v0 = vadd.f32 %v1170_v56, %v6924_v46  ;;  %v1172_v1 = vpop.f32.mrb[18].mxu0  ;;  %v1251_v2 = vadd.f32 %v1250_v60, %v6924_v46  ;;  %v1252_v3 = vpop.f32.mrb[18].mxu1 }
 0x19b   : > { %3062 = vrot.lane.b32.xlu1 %v6988_v4, %s6517_s28  ;;  %v7116_v5 = vpack.c.bf16 %v1169_v55, %v1169_v55  ;;  %v1173_v61 = vadd.f32 %v1172_v1, %v6921_v39  ;;  %v1174_v6 = vpop.f32.mrb[19].mxu0  ;;  %v7119_v7 = vpack.c.bf16 %v1249_v57, %v1249_v57  ;;  %v1253_v12 = vadd.f32 %v1252_v3, %v6921_v39  ;;  %v1254_v14 = vpop.f32.mrb[19].mxu1 }
 0x19c   : > { %v7122_v16 = vpack.c.bf16 %v1171_v0, %v1171_v0  ;;  %v1175_v17 = vadd.f32 %v1174_v6, %v6924_v46  ;;  %v7125_v4 = vpack.c.bf16 %v1251_v2, %v1251_v2  ;;  %v1255_v18 = vadd.f32 %v1254_v14, %v6924_v46 }
 0x19d   : > { %2162 = vrot.lane.b32.xlu0 %v7007_v35, %s6517_s28  ;;  %1810 = vst.msk [vmem:[%s6938_s30 + $0x20] sm:$0xf] %vm1801_vm0, %v7116_v5  ;;  %v7133_v19 = vpack.c.bf16 %v1173_v61, %v1173_v61  ;;  %1826 = vst.msk [vmem:[%s6938_s30 + $0x60] sm:$0xf] %vm1801_vm0, %v7119_v7  ;;  %v7138_v13 = vpack.c.bf16 %v1253_v12, %v1253_v12 }
 0x19e   : > { %5615 = vst.msk [vmem:[%s6938_s30 + $0x120] sm:$0xf] %vm1801_vm0, %v7122_v16  ;;  %v7143_v38 = vpack.c.bf16 %v1175_v17, %v1175_v17  ;;  %5631 = vst.msk [vmem:[%s6938_s30 + $0x160] sm:$0xf] %vm1801_vm0, %v7125_v4  ;;  %v7148_v47 = vpack.c.bf16 %v1255_v18, %v1255_v18 }
 0x19f   : > { %2164 = vrot.lane.b32.xlu1 %v7024_v9, %s6517_s28  ;;  %1811 = vst.msk [vmem:[%s6938_s30 + $0x24] sm:$0xf] %vm1801_vm0, %v7133_v19  ;;  %1827 = vst.msk [vmem:[%s6938_s30 + $0x64] sm:$0xf] %vm1801_vm0, %v7138_v13 }
 0x1a0   : > { %5616 = vst.msk [vmem:[%s6938_s30 + $0x124] sm:$0xf] %vm1801_vm0, %v7143_v38  ;;  %5632 = vst.msk [vmem:[%s6938_s30 + $0x164] sm:$0xf] %vm1801_vm0, %v7148_v47  ;;  %v1178_v35 = vpop.f32.mrb[20].mxu0  ;;  %v1258_v51 = vpop.f32.mrb[20].mxu1 }
 0x1a1   : > { %2194 = vrot.lane.b32.xlu0 %v7010_v50, %s6517_s28  ;;  %v1179_v58 = vadd.f32 %v1178_v35, %v6921_v39  ;;  %v1180_v62 = vpop.f32.mrb[21].mxu0  ;;  %v1259_v8 = vadd.f32 %v1258_v51, %v6921_v39  ;;  %v1260_v9 = vpop.f32.mrb[21].mxu1 }
 0x1a2   : > { %v1181_v21 = vadd.f32 %v1180_v62, %v6924_v46  ;;  %v1182_v22 = vpop.f32.mrb[22].mxu0  ;;  %v1261_v23 = vadd.f32 %v1260_v9, %v6924_v46  ;;  %v1262_v24 = vpop.f32.mrb[22].mxu1 }
 0x1a3   : > { %2196 = vrot.lane.b32.xlu1 %v7029_v10, %s6517_s28  ;;  %v7172_v25 = vpack.c.bf16 %v1179_v58, %v1179_v58  ;;  %v1183_v50 = vadd.f32 %v1182_v22, %v6921_v39  ;;  %v1184_v26 = vpop.f32.mrb[23].mxu0  ;;  %v7175_v27 = vpack.c.bf16 %v1259_v8, %v1259_v8  ;;  %v1263_v28 = vadd.f32 %v1262_v24, %v6921_v39  ;;  %v1264_v29 = vpop.f32.mrb[23].mxu1 }
 0x1a4   : > { %v7178_v30 = vpack.c.bf16 %v1181_v21, %v1181_v21  ;;  %v1185_v32 = vadd.f32 %v1184_v26, %v6924_v46  ;;  %v7181_v10 = vpack.c.bf16 %v1261_v23, %v1261_v23  ;;  %v1265_v33 = vadd.f32 %v1264_v29, %v6924_v46 }
 0x1a5   : > { %3032 = vrot.lane.b32.xlu0 %v7013_v59, %s6517_s28  ;;  %1812 = vst.msk [vmem:[%s6938_s30 + $0x28] sm:$0xf] %vm1801_vm0, %v7172_v25  ;;  %v7189_v36 = vpack.c.bf16 %v1183_v50, %v1183_v50  ;;  %1828 = vst.msk [vmem:[%s6938_s30 + $0x68] sm:$0xf] %vm1801_vm0, %v7175_v27  ;;  %v7194_v40 = vpack.c.bf16 %v1263_v28, %v1263_v28  ;;  %v434_v23 = vsub.s32 2, %v6911_v15  ;;  %v438_v24 = vsub.s32 3, %v6911_v15 }
 0x1a6   : > { %5617 = vst.msk [vmem:[%s6938_s30 + $0x128] sm:$0xf] %vm1801_vm0, %v7178_v30  ;;  %v7199_v42 = vpack.c.bf16 %v1185_v32, %v1185_v32  ;;  %5633 = vst.msk [vmem:[%s6938_s30 + $0x168] sm:$0xf] %vm1801_vm0, %v7181_v10  ;;  %v7204_v44 = vpack.c.bf16 %v1265_v33, %v1265_v33  ;;  %v442_v32 = vsub.s32 4, %v6911_v15 }
 0x1a7   : > { %3034 = vrot.lane.b32.xlu1 %v7034_v11, %s6517_s28  ;;  %1813 = vst.msk [vmem:[%s6938_s30 + $0x2c] sm:$0xf] %vm1801_vm0, %v7189_v36  ;;  %1829 = vst.msk [vmem:[%s6938_s30 + $0x6c] sm:$0xf] %vm1801_vm0, %v7194_v40 }
 0x1a8   : > { %5618 = vst.msk [vmem:[%s6938_s30 + $0x12c] sm:$0xf] %vm1801_vm0, %v7199_v42  ;;  %5634 = vst.msk [vmem:[%s6938_s30 + $0x16c] sm:$0xf] %vm1801_vm0, %v7204_v44  ;;  %v1188_v59 = vpop.f32.mrb[24].mxu0  ;;  %v1268_v53 = vpop.f32.mrb[24].mxu1 }
 0x1a9   : > { %3064 = vrot.lane.b32.xlu0 %v7016_v63, %s6517_s28  ;;  %v1189_v54 = vadd.f32 %v1188_v59, %v6921_v39  ;;  %v1190_v11 = vpop.f32.mrb[25].mxu0  ;;  %v1269_v55 = vadd.f32 %v1268_v53, %v6921_v39  ;;  %v1270_v56 = vpop.f32.mrb[25].mxu1 }
 0x1aa   : > { %v1191_v57 = vadd.f32 %v1190_v11, %v6924_v46  ;;  %v1192_v60 = vpop.f32.mrb[26].mxu0  ;;  %v1271_v0 = vadd.f32 %v1270_v56, %v6924_v46  ;;  %v1272_v1 = vpop.f32.mrb[26].mxu1 }
 0x1ab   : > { %3066 = vrot.lane.b32.xlu1 %v7039_v20, %s6517_s28  ;;  %v7228_v2 = vpack.c.bf16 %v1189_v54, %v1189_v54  ;;  %v1193_v63 = vadd.f32 %v1192_v60, %v6921_v39  ;;  %v1194_v3 = vpop.f32.mrb[27].mxu0  ;;  %v7231_v61 = vpack.c.bf16 %v1269_v55, %v1269_v55  ;;  %v1273_v6 = vadd.f32 %v1272_v1, %v6921_v39  ;;  %v1274_v12 = vpop.f32.mrb[27].mxu1 }
 0x1ac   : > { %v7234_v14 = vpack.c.bf16 %v1191_v57, %v1191_v57  ;;  %v1195_v17 = vadd.f32 %v1194_v3, %v6924_v46  ;;  %v7237_v20 = vpack.c.bf16 %v1271_v0, %v1271_v0  ;;  %v1275_v18 = vadd.f32 %v1274_v12, %v6924_v46 }
 0x1ad   : > { %2166 = vrot.lane.b32.xlu0 %v7060_v31, %s6517_s28  ;;  %1814 = vst.msk [vmem:[%s6938_s30 + $0x30] sm:$0xf] %vm1801_vm0, %v7228_v2  ;;  %v7245_v35 = vpack.c.bf16 %v1193_v63, %v1193_v63  ;;  %1830 = vst.msk [vmem:[%s6938_s30 + $0x70] sm:$0xf] %vm1801_vm0, %v7231_v61  ;;  %v7250_v51 = vpack.c.bf16 %v1273_v6, %v1273_v6  ;;  %v7326_v1 = vrot.slane %v6917_v37, %v442_v32 }
 0x1ae   : > { %5619 = vst.msk [vmem:[%s6938_s30 + $0x130] sm:$0xf] %vm1801_vm0, %v7234_v14  ;;  %v7255_v58 = vpack.c.bf16 %v1195_v17, %v1195_v17  ;;  %5635 = vst.msk [vmem:[%s6938_s30 + $0x170] sm:$0xf] %vm1801_vm0, %v7237_v20  ;;  %v7260_v62 = vpack.c.bf16 %v1275_v18, %v1275_v18  ;;  %v7337_v63 = vrot.slane %v6917_v37, %v438_v24 }
 0x1af   : > { %2168 = vrot.lane.b32.xlu1 %v7077_v45, %s6517_s28  ;;  %1815 = vst.msk [vmem:[%s6938_s30 + $0x34] sm:$0xf] %vm1801_vm0, %v7245_v35  ;;  %1831 = vst.msk [vmem:[%s6938_s30 + $0x74] sm:$0xf] %vm1801_vm0, %v7250_v51 }
 0x1b0   : > { %5620 = vst.msk [vmem:[%s6938_s30 + $0x134] sm:$0xf] %vm1801_vm0, %v7255_v58  ;;  %5636 = vst.msk [vmem:[%s6938_s30 + $0x174] sm:$0xf] %vm1801_vm0, %v7260_v62  ;;  %v1198_v31 = vpop.f32.mrb[28].mxu0  ;;  %v1278_v8 = vpop.f32.mrb[28].mxu1 }
 0x1b1   : > { %2198 = vrot.lane.b32.xlu0 %v7063_v34, %s6517_s28  ;;  %v1199_v9 = vadd.f32 %v1198_v31, %v6921_v39  ;;  %v1200_v45 = vpop.f32.mrb[29].mxu0  ;;  %v1279_v21 = vadd.f32 %v1278_v8, %v6921_v39  ;;  %v1280_v22 = vpop.f32.mrb[29].mxu1  ;;  %v446_v34 = vsub.s32 5, %v6911_v15 }
 0x1b2   : > { %v1201_v50 = vadd.f32 %v1200_v45, %v6924_v46  ;;  %v1202_v26 = vpop.f32.mrb[30].mxu0  ;;  %v1281_v28 = vadd.f32 %v1280_v22, %v6924_v46  ;;  %v1282_v29 = vpop.f32.mrb[30].mxu1 }
 0x1b3   : > { %2200 = vrot.lane.b32.xlu1 %v7082_v48, %s6517_s28  ;;  %v7288_v33 = vpack.c.bf16 %v1199_v9, %v1199_v9  ;;  %v1203_v59 = vadd.f32 %v1202_v26, %v6921_v39  ;;  %v1204_v53 = vpop.f32.mrb[31].mxu0  ;;  %v7291_v54 = vpack.c.bf16 %v1279_v21, %v1279_v21  ;;  %v1283_v11 = vadd.f32 %v1282_v29, %v6921_v39  ;;  %v1284_v55 = vpop.f32.mrb[31].mxu1 }
 0x1b4   : > { %v7294_v56 = vpack.c.bf16 %v1201_v50, %v1201_v50  ;;  %v1205_v15 = vadd.f32 %v1204_v53, %v6924_v46  ;;  %v7297_v57 = vpack.c.bf16 %v1281_v28, %v1281_v28  ;;  %v1285_v48 = vadd.f32 %v1284_v55, %v6924_v46 }
 0x1b5   : > { %3036 = vrot.lane.b32.xlu0 %v7066_v41, %s6517_s28  ;;  %1816 = vst.msk [vmem:[%s6938_s30 + $0x38] sm:$0xf] %vm1801_vm0, %v7288_v33  ;;  %v7305_v39 = vpack.c.bf16 %v1203_v59, %v1203_v59  ;;  %1832 = vst.msk [vmem:[%s6938_s30 + $0x78] sm:$0xf] %vm1801_vm0, %v7291_v54  ;;  %v7310_v60 = vpack.c.bf16 %v1283_v11, %v1283_v11  ;;  %v7323_v41 = vrot.slane %v6917_v37, %v434_v23 }
 0x1b6   : > { %5621 = vst.msk [vmem:[%s6938_s30 + $0x138] sm:$0xf] %vm1801_vm0, %v7294_v56  ;;  %v7315_v0 = vpack.c.bf16 %v1205_v15, %v1205_v15  ;;  %5637 = vst.msk [vmem:[%s6938_s30 + $0x178] sm:$0xf] %vm1801_vm0, %v7297_v57  ;;  %v7320_v46 = vpack.c.bf16 %v1285_v48, %v1285_v48  ;;  %v7340_v3 = vrot.slane %v6917_v37, %v446_v34 }
 0x1b7   : > { %3038 = vrot.lane.b32.xlu1 %v7087_v49, %s6517_s28  ;;  %1817 = vst.msk [vmem:[%s6938_s30 + $0x3c] sm:$0xf] %vm1801_vm0, %v7305_v39  ;;  %1833 = vst.msk [vmem:[%s6938_s30 + $0x7c] sm:$0xf] %vm1801_vm0, %v7310_v60 }
 0x1b8   : > { %5622 = vst.msk [vmem:[%s6938_s30 + $0x13c] sm:$0xf] %vm1801_vm0, %v7315_v0  ;;  %5638 = vst.msk [vmem:[%s6938_s30 + $0x17c] sm:$0xf] %vm1801_vm0, %v7320_v46 }
 0x1b9   : > { %3068 = vrot.lane.b32.xlu0 %v7069_v43, %s6517_s28  ;;  %v1321_v49 = vpop.f32.mrb[32].mxu1  ;;  %v1514_v6 = vpop.f32.mrb[32].mxu0 }
 0x1ba   : > { %v1322_v12 = vadd.f32 %v1321_v49, %v7323_v41  ;;  %v1323_v17 = vpop.f32.mrb[33].mxu1  ;;  %v1515_v18 = vadd.f32 %v1514_v6, %v7326_v1  ;;  %v1516_v31 = vpop.f32.mrb[33].mxu0 }
 0x1bb   : > { %3070 = vrot.lane.b32.xlu1 %v7092_v52, %s6517_s28  ;;  %v1324_v37 = vadd.f32 %v1323_v17, %v7337_v63  ;;  %v1325_v8 = vpop.f32.mrb[34].mxu1  ;;  %v1517_v9 = vadd.f32 %v1516_v31, %v7340_v3  ;;  %v1518_v45 = vpop.f32.mrb[34].mxu0 }
 0x1bc   : > { %v7356_v43 = vpack.c.bf16 %v1322_v12, %v1322_v12  ;;  %v1326_v21 = vadd.f32 %v1325_v8, %v7323_v41  ;;  %v1327_v22 = vpop.f32.mrb[35].mxu1  ;;  %v7359_v23 = vpack.c.bf16 %v1515_v18, %v1515_v18  ;;  %v1519_v24 = vadd.f32 %v1518_v45, %v7326_v1  ;;  %v1520_v50 = vpop.f32.mrb[35].mxu0 }
 0x1bd   : > { %2170 = vrot.lane.b32.xlu0 %v7116_v5, %s6517_s28  ;;  %v7364_v52 = vpack.c.bf16 %v1324_v37, %v1324_v37  ;;  %v1328_v26 = vadd.f32 %v1327_v22, %v7337_v63  ;;  %v7367_v28 = vpack.c.bf16 %v1517_v9, %v1517_v9  ;;  %v1521_v29 = vadd.f32 %v1520_v50, %v7340_v3 }
 0x1be   : > { %1962 = vst.msk [vmem:[%s7371_s12] sm:$0xf] %vm1801_vm0, %v7356_v43  ;;  %v7376_v32 = vpack.c.bf16 %v1326_v21, %v1326_v21  ;;  %2122 = vst.msk [vmem:[%s7379_s11] sm:$0xf] %vm1801_vm0, %v7359_v23  ;;  %v7384_v5 = vpack.c.bf16 %v1519_v24, %v1519_v24 }
 0x1bf   : > { %2172 = vrot.lane.b32.xlu1 %v7133_v19, %s6517_s28  ;;  %5671 = vst.msk [vmem:[%s7371_s12 + $0x100] sm:$0xf] %vm1801_vm0, %v7364_v52  ;;  %v7391_v34 = vpack.c.bf16 %v1328_v26, %v1328_v26  ;;  %5735 = vst.msk [vmem:[%s7379_s11 + $0x100] sm:$0xf] %vm1801_vm0, %v7367_v28  ;;  %v7396_v59 = vpack.c.bf16 %v1521_v29, %v1521_v29 }
 0x1c0   : > { %1963 = vst.msk [vmem:[%s7371_s12 + $0x4] sm:$0xf] %vm1801_vm0, %v7376_v32  ;;  %2123 = vst.msk [vmem:[%s7379_s11 + $0x4] sm:$0xf] %vm1801_vm0, %v7384_v5 }
 0x1c1   : > { %2202 = vrot.lane.b32.xlu0 %v7119_v7, %s6517_s28  ;;  %5672 = vst.msk [vmem:[%s7371_s12 + $0x104] sm:$0xf] %vm1801_vm0, %v7391_v34  ;;  %5736 = vst.msk [vmem:[%s7379_s11 + $0x104] sm:$0xf] %vm1801_vm0, %v7396_v59  ;;  %v1331_v19 = vpop.f32.mrb[36].mxu1  ;;  %v1524_v53 = vpop.f32.mrb[36].mxu0 }
 0x1c2   : > { %v1332_v11 = vadd.f32 %v1331_v19, %v7323_v41  ;;  %v1333_v55 = vpop.f32.mrb[37].mxu1  ;;  %v1525_v15 = vadd.f32 %v1524_v53, %v7326_v1  ;;  %v1526_v48 = vpop.f32.mrb[37].mxu0 }
 0x1c3   : > { %2204 = vrot.lane.b32.xlu1 %v7138_v13, %s6517_s28  ;;  %v1334_v7 = vadd.f32 %v1333_v55, %v7337_v63  ;;  %v1335_v49 = vpop.f32.mrb[38].mxu1  ;;  %v1527_v6 = vadd.f32 %v1526_v48, %v7340_v3  ;;  %v1528_v12 = vpop.f32.mrb[38].mxu0 }
 0x1c4   : > { %v7418_v17 = vpack.c.bf16 %v1332_v11, %v1332_v11  ;;  %v1336_v18 = vadd.f32 %v1335_v49, %v7323_v41  ;;  %v1337_v31 = vpop.f32.mrb[39].mxu1  ;;  %v7421_v37 = vpack.c.bf16 %v1525_v15, %v1525_v15  ;;  %v1529_v8 = vadd.f32 %v1528_v12, %v7326_v1  ;;  %v1530_v13 = vpop.f32.mrb[39].mxu0 }
 0x1c5   : > { %3040 = vrot.lane.b32.xlu0 %v7122_v16, %s6517_s28  ;;  %v7426_v9 = vpack.c.bf16 %v1334_v7, %v1334_v7  ;;  %v1338_v45 = vadd.f32 %v1337_v31, %v7337_v63  ;;  %v7429_v21 = vpack.c.bf16 %v1527_v6, %v1527_v6  ;;  %v1531_v22 = vadd.f32 %v1530_v13, %v7340_v3 }
 0x1c6   : > { %1964 = vst.msk [vmem:[%s7371_s12 + $0x8] sm:$0xf] %vm1801_vm0, %v7418_v17  ;;  %v7435_v24 = vpack.c.bf16 %v1336_v18, %v1336_v18  ;;  %2124 = vst.msk [vmem:[%s7379_s11 + $0x8] sm:$0xf] %vm1801_vm0, %v7421_v37  ;;  %v7440_v50 = vpack.c.bf16 %v1529_v8, %v1529_v8 }
 0x1c7   : > { %3042 = vrot.lane.b32.xlu1 %v7143_v38, %s6517_s28  ;;  %5673 = vst.msk [vmem:[%s7371_s12 + $0x108] sm:$0xf] %vm1801_vm0, %v7426_v9  ;;  %v7447_v16 = vpack.c.bf16 %v1338_v45, %v1338_v45  ;;  %5737 = vst.msk [vmem:[%s7379_s11 + $0x108] sm:$0xf] %vm1801_vm0, %v7429_v21  ;;  %v7452_v26 = vpack.c.bf16 %v1531_v22, %v1531_v22 }
 0x1c8   : > { %1965 = vst.msk [vmem:[%s7371_s12 + $0xc] sm:$0xf] %vm1801_vm0, %v7435_v24  ;;  %2125 = vst.msk [vmem:[%s7379_s11 + $0xc] sm:$0xf] %vm1801_vm0, %v7440_v50 }
 0x1c9   : > { %3072 = vrot.lane.b32.xlu0 %v7125_v4, %s6517_s28  ;;  %5674 = vst.msk [vmem:[%s7371_s12 + $0x10c] sm:$0xf] %vm1801_vm0, %v7447_v16  ;;  %5738 = vst.msk [vmem:[%s7379_s11 + $0x10c] sm:$0xf] %vm1801_vm0, %v7452_v26  ;;  %v1341_v38 = vpop.f32.mrb[40].mxu1  ;;  %v1534_v29 = vpop.f32.mrb[40].mxu0 }
 0x1ca   : > { %v1342_v19 = vadd.f32 %v1341_v38, %v7323_v41  ;;  %v1343_v53 = vpop.f32.mrb[41].mxu1  ;;  %v1535_v11 = vadd.f32 %v1534_v29, %v7326_v1  ;;  %v1536_v55 = vpop.f32.mrb[41].mxu0 }
 0x1cb   : > { %3074 = vrot.lane.b32.xlu1 %v7148_v47, %s6517_s28  ;;  %v1344_v4 = vadd.f32 %v1343_v53, %v7337_v63  ;;  %v1345_v15 = vpop.f32.mrb[42].mxu1  ;;  %v1537_v48 = vadd.f32 %v1536_v55, %v7340_v3  ;;  %v1538_v7 = vpop.f32.mrb[42].mxu0 }
 0x1cc   : > { %v7474_v49 = vpack.c.bf16 %v1342_v19, %v1342_v19  ;;  %v1346_v6 = vadd.f32 %v1345_v15, %v7323_v41  ;;  %v1347_v12 = vpop.f32.mrb[43].mxu1  ;;  %v7477_v18 = vpack.c.bf16 %v1535_v11, %v1535_v11  ;;  %v1539_v31 = vadd.f32 %v1538_v7, %v7326_v1  ;;  %v1540_v47 = vpop.f32.mrb[43].mxu0 }
 0x1cd   : > { %2174 = vrot.lane.b32.xlu0 %v7172_v25, %s6517_s28  ;;  %v7482_v8 = vpack.c.bf16 %v1344_v4, %v1344_v4  ;;  %v1348_v13 = vadd.f32 %v1347_v12, %v7337_v63  ;;  %v7485_v45 = vpack.c.bf16 %v1537_v48, %v1537_v48  ;;  %v1541_v22 = vadd.f32 %v1540_v47, %v7340_v3 }
 0x1ce   : > { %1966 = vst.msk [vmem:[%s7371_s12 + $0x10] sm:$0xf] %vm1801_vm0, %v7474_v49  ;;  %v7491_v38 = vpack.c.bf16 %v1346_v6, %v1346_v6  ;;  %2126 = vst.msk [vmem:[%s7379_s11 + $0x10] sm:$0xf] %vm1801_vm0, %v7477_v18  ;;  %v7496_v29 = vpack.c.bf16 %v1539_v31, %v1539_v31 }
 0x1cf   : > { %2176 = vrot.lane.b32.xlu1 %v7189_v36, %s6517_s28  ;;  %5675 = vst.msk [vmem:[%s7371_s12 + $0x110] sm:$0xf] %vm1801_vm0, %v7482_v8  ;;  %v7503_v25 = vpack.c.bf16 %v1348_v13, %v1348_v13  ;;  %5739 = vst.msk [vmem:[%s7379_s11 + $0x110] sm:$0xf] %vm1801_vm0, %v7485_v45  ;;  %v7508_v19 = vpack.c.bf16 %v1541_v22, %v1541_v22 }
 0x1d0   : > { %1967 = vst.msk [vmem:[%s7371_s12 + $0x14] sm:$0xf] %vm1801_vm0, %v7491_v38  ;;  %2127 = vst.msk [vmem:[%s7379_s11 + $0x14] sm:$0xf] %vm1801_vm0, %v7496_v29 }
 0x1d1   : > { %2206 = vrot.lane.b32.xlu0 %v7175_v27, %s6517_s28  ;;  %5676 = vst.msk [vmem:[%s7371_s12 + $0x114] sm:$0xf] %vm1801_vm0, %v7503_v25  ;;  %5740 = vst.msk [vmem:[%s7379_s11 + $0x114] sm:$0xf] %vm1801_vm0, %v7508_v19  ;;  %v1351_v36 = vpop.f32.mrb[44].mxu1  ;;  %v1544_v53 = vpop.f32.mrb[44].mxu0 }
 0x1d2   : > { %v1352_v11 = vadd.f32 %v1351_v36, %v7323_v41  ;;  %v1353_v55 = vpop.f32.mrb[45].mxu1  ;;  %v1545_v4 = vadd.f32 %v1544_v53, %v7326_v1  ;;  %v1546_v15 = vpop.f32.mrb[45].mxu0 }
 0x1d3   : > { %2208 = vrot.lane.b32.xlu1 %v7194_v40, %s6517_s28  ;;  %v1354_v27 = vadd.f32 %v1353_v55, %v7337_v63  ;;  %v1355_v48 = vpop.f32.mrb[46].mxu1  ;;  %v1547_v7 = vadd.f32 %v1546_v15, %v7340_v3  ;;  %v1548_v6 = vpop.f32.mrb[46].mxu0 }
 0x1d4   : > { %v7530_v12 = vpack.c.bf16 %v1352_v11, %v1352_v11  ;;  %v1356_v31 = vadd.f32 %v1355_v48, %v7323_v41  ;;  %v1357_v47 = vpop.f32.mrb[47].mxu1  ;;  %v7533_v13 = vpack.c.bf16 %v1545_v4, %v1545_v4  ;;  %v1549_v22 = vadd.f32 %v1548_v6, %v7326_v1  ;;  %v1550_v40 = vpop.f32.mrb[47].mxu0 }
 0x1d5   : > { %3044 = vrot.lane.b32.xlu0 %v7178_v30, %s6517_s28  ;;  %v7538_v36 = vpack.c.bf16 %v1354_v27, %v1354_v27  ;;  %v1358_v53 = vadd.f32 %v1357_v47, %v7337_v63  ;;  %v7541_v11 = vpack.c.bf16 %v1547_v7, %v1547_v7  ;;  %v1551_v55 = vadd.f32 %v1550_v40, %v7340_v3 }
 0x1d6   : > { %1968 = vst.msk [vmem:[%s7371_s12 + $0x18] sm:$0xf] %vm1801_vm0, %v7530_v12  ;;  %v7547_v4 = vpack.c.bf16 %v1356_v31, %v1356_v31  ;;  %2128 = vst.msk [vmem:[%s7379_s11 + $0x18] sm:$0xf] %vm1801_vm0, %v7533_v13  ;;  %v7552_v15 = vpack.c.bf16 %v1549_v22, %v1549_v22 }
 0x1d7   : > { %9323 = vst [vmem:[#allocation12_spill] sm:$0xff] %v7541_v11  ;;  %3046 = vrot.lane.b32.xlu1 %v7199_v42, %s6517_s28  ;;  %5677 = vst.msk [vmem:[%s7371_s12 + $0x118] sm:$0xf] %vm1801_vm0, %v7538_v36  ;;  %v7559_v30 = vpack.c.bf16 %v1358_v53, %v1358_v53  ;;  %v7564_v27 = vpack.c.bf16 %v1551_v55, %v1551_v55 }
 0x1d8   : > { %5741 = vst.msk [vmem:[%s7379_s11 + $0x118] sm:$0xf] %vm1801_vm0, %v7541_v11  ;;  %1969 = vst.msk [vmem:[%s7371_s12 + $0x1c] sm:$0xf] %vm1801_vm0, %v7547_v4 }
 0x1d9   : > { %9324 = vst [vmem:[#allocation13_spill] sm:$0xff] %v7564_v27  ;;  %2129 = vst.msk [vmem:[%s7379_s11 + $0x1c] sm:$0xf] %vm1801_vm0, %v7552_v15  ;;  %3076 = vrot.lane.b32.xlu0 %v7181_v10, %s6517_s28  ;;  %v1361_v42 = vpop.f32.mrb[48].mxu1  ;;  %v1554_v48 = vpop.f32.mrb[48].mxu0 }
 0x1da   : > { %5678 = vst.msk [vmem:[%s7371_s12 + $0x11c] sm:$0xf] %vm1801_vm0, %v7559_v30  ;;  %5742 = vst.msk [vmem:[%s7379_s11 + $0x11c] sm:$0xf] %vm1801_vm0, %v7564_v27  ;;  %v1362_v7 = vadd.f32 %v1361_v42, %v7323_v41  ;;  %v1363_v6 = vpop.f32.mrb[49].mxu1  ;;  %v1555_v31 = vadd.f32 %v1554_v48, %v7326_v1  ;;  %v1556_v47 = vpop.f32.mrb[49].mxu0 }
 0x1db   : > { %3078 = vrot.lane.b32.xlu1 %v7204_v44, %s6517_s28  ;;  %v1364_v10 = vadd.f32 %v1363_v6, %v7337_v63  ;;  %v1365_v22 = vpop.f32.mrb[50].mxu1  ;;  %v1557_v40 = vadd.f32 %v1556_v47, %v7340_v3  ;;  %v1558_v53 = vpop.f32.mrb[50].mxu0 }
 0x1dc   : > { %v7586_v55 = vpack.c.bf16 %v1362_v7, %v1362_v7  ;;  %v1366_v42 = vadd.f32 %v1365_v22, %v7323_v41  ;;  %v1367_v27 = vpop.f32.mrb[51].mxu1  ;;  %v7589_v48 = vpack.c.bf16 %v1555_v31, %v1555_v31  ;;  %v1559_v11 = vadd.f32 %v1558_v53, %v7326_v1  ;;  %v1560_v44 = vpop.f32.mrb[51].mxu0 }
 0x1dd   : > { %2178 = vrot.lane.b32.xlu0 %v7228_v2, %s6517_s28  ;;  %v7594_v6 = vpack.c.bf16 %v1364_v10, %v1364_v10  ;;  %v1368_v7 = vadd.f32 %v1367_v27, %v7337_v63  ;;  %v7597_v47 = vpack.c.bf16 %v1557_v40, %v1557_v40  ;;  %v1561_v22 = vadd.f32 %v1560_v44, %v7340_v3 }
 0x1de   : > { %1970 = vst.msk [vmem:[%s7371_s12 + $0x20] sm:$0xf] %vm1801_vm0, %v7586_v55  ;;  %v7603_v31 = vpack.c.bf16 %v1366_v42, %v1366_v42  ;;  %2130 = vst.msk [vmem:[%s7379_s11 + $0x20] sm:$0xf] %vm1801_vm0, %v7589_v48  ;;  %v7608_v53 = vpack.c.bf16 %v1559_v11, %v1559_v11 }
 0x1df   : > { %9325 = vst [vmem:[#allocation14_spill] sm:$0xff] %v7594_v6  ;;  %9326 = vst [vmem:[#allocation15_spill] sm:$0xff] %v7597_v47  ;;  %2180 = vrot.lane.b32.xlu1 %v7245_v35, %s6517_s28  ;;  %v7615_v2 = vpack.c.bf16 %v1368_v7, %v1368_v7  ;;  %v7620_v27 = vpack.c.bf16 %v1561_v22, %v1561_v22 }
 0x1e0   : > { %5679 = vst.msk [vmem:[%s7371_s12 + $0x120] sm:$0xf] %vm1801_vm0, %v7594_v6  ;;  %5743 = vst.msk [vmem:[%s7379_s11 + $0x120] sm:$0xf] %vm1801_vm0, %v7597_v47 }
 0x1e1   : > { %9327 = vst [vmem:[#allocation16_spill] sm:$0xff] %v7615_v2  ;;  %9328 = vst [vmem:[#allocation17_spill] sm:$0xff] %v7620_v27  ;;  %2210 = vrot.lane.b32.xlu0 %v7231_v61, %s6517_s28  ;;  %v1371_v35 = vpop.f32.mrb[52].mxu1  ;;  %v1564_v11 = vpop.f32.mrb[52].mxu0 }
 0x1e2   : > { %1971 = vst.msk [vmem:[%s7371_s12 + $0x24] sm:$0xf] %vm1801_vm0, %v7603_v31  ;;  %2131 = vst.msk [vmem:[%s7379_s11 + $0x24] sm:$0xf] %vm1801_vm0, %v7608_v53  ;;  %v1372_v10 = vadd.f32 %v1371_v35, %v7323_v41  ;;  %v1373_v40 = vpop.f32.mrb[53].mxu1  ;;  %v1565_v42 = vadd.f32 %v1564_v11, %v7326_v1  ;;  %v1566_v44 = vpop.f32.mrb[53].mxu0 }
 0x1e3   : > { %5680 = vst.msk [vmem:[%s7371_s12 + $0x124] sm:$0xf] %vm1801_vm0, %v7615_v2  ;;  %5744 = vst.msk [vmem:[%s7379_s11 + $0x124] sm:$0xf] %vm1801_vm0, %v7620_v27  ;;  %2212 = vrot.lane.b32.xlu1 %v7250_v51, %s6517_s28  ;;  %v1374_v61 = vadd.f32 %v1373_v40, %v7337_v63  ;;  %v1375_v7 = vpop.f32.mrb[54].mxu1  ;;  %v1567_v22 = vadd.f32 %v1566_v44, %v7340_v3  ;;  %v1568_v47 = vpop.f32.mrb[54].mxu0 }
 0x1e4   : > { %v7642_v27 = vpack.c.bf16 %v1372_v10, %v1372_v10  ;;  %v1376_v35 = vadd.f32 %v1375_v7, %v7323_v41  ;;  %v1377_v2 = vpop.f32.mrb[55].mxu1  ;;  %v7645_v11 = vpack.c.bf16 %v1565_v42, %v1565_v42  ;;  %v1569_v6 = vadd.f32 %v1568_v47, %v7326_v1  ;;  %v1570_v51 = vpop.f32.mrb[55].mxu0 }
 0x1e5   : > { %3048 = vrot.lane.b32.xlu0 %v7234_v14, %s6517_s28  ;;  %v7650_v40 = vpack.c.bf16 %v1374_v61, %v1374_v61  ;;  %v1378_v10 = vadd.f32 %v1377_v2, %v7337_v63  ;;  %v7653_v44 = vpack.c.bf16 %v1567_v22, %v1567_v22  ;;  %v1571_v7 = vadd.f32 %v1570_v51, %v7340_v3 }
 0x1e6   : > { %1972 = vst.msk [vmem:[%s7371_s12 + $0x28] sm:$0xf] %vm1801_vm0, %v7642_v27  ;;  %v7659_v47 = vpack.c.bf16 %v1376_v35, %v1376_v35  ;;  %2132 = vst.msk [vmem:[%s7379_s11 + $0x28] sm:$0xf] %vm1801_vm0, %v7645_v11  ;;  %v7664_v42 = vpack.c.bf16 %v1569_v6, %v1569_v6 }
 0x1e7   : > { %9329 = vst [vmem:[#allocation18_spill] sm:$0xff] %v7650_v40  ;;  %9330 = vst [vmem:[#allocation19_spill] sm:$0xff] %v7653_v44  ;;  %3050 = vrot.lane.b32.xlu1 %v7255_v58, %s6517_s28  ;;  %v7671_v14 = vpack.c.bf16 %v1378_v10, %v1378_v10  ;;  %v7676_v2 = vpack.c.bf16 %v1571_v7, %v1571_v7 }
 0x1e8   : > { %5681 = vst.msk [vmem:[%s7371_s12 + $0x128] sm:$0xf] %vm1801_vm0, %v7650_v40  ;;  %5745 = vst.msk [vmem:[%s7379_s11 + $0x128] sm:$0xf] %vm1801_vm0, %v7653_v44 }
 0x1e9   : > { %9331 = vst [vmem:[#allocation20_spill] sm:$0xff] %v7671_v14  ;;  %9332 = vst [vmem:[#allocation21_spill] sm:$0xff] %v7676_v2  ;;  %3080 = vrot.lane.b32.xlu0 %v7237_v20, %s6517_s28  ;;  %v1381_v58 = vpop.f32.mrb[56].mxu1  ;;  %v1574_v6 = vpop.f32.mrb[56].mxu0 }
 0x1ea   : > { %1973 = vst.msk [vmem:[%s7371_s12 + $0x2c] sm:$0xf] %vm1801_vm0, %v7659_v47  ;;  %2133 = vst.msk [vmem:[%s7379_s11 + $0x2c] sm:$0xf] %vm1801_vm0, %v7664_v42  ;;  %v1382_v61 = vadd.f32 %v1381_v58, %v7323_v41  ;;  %v1383_v22 = vpop.f32.mrb[57].mxu1  ;;  %v1575_v35 = vadd.f32 %v1574_v6, %v7326_v1  ;;  %v1576_v51 = vpop.f32.mrb[57].mxu0 }
 0x1eb   : > { %5682 = vst.msk [vmem:[%s7371_s12 + $0x12c] sm:$0xf] %vm1801_vm0, %v7671_v14  ;;  %5746 = vst.msk [vmem:[%s7379_s11 + $0x12c] sm:$0xf] %vm1801_vm0, %v7676_v2  ;;  %3082 = vrot.lane.b32.xlu1 %v7260_v62, %s6517_s28  ;;  %v1384_v20 = vadd.f32 %v1383_v22, %v7337_v63  ;;  %v1385_v10 = vpop.f32.mrb[58].mxu1  ;;  %v1577_v7 = vadd.f32 %v1576_v51, %v7340_v3  ;;  %v1578_v44 = vpop.f32.mrb[58].mxu0 }
 0x1ec   : > { %v7698_v2 = vpack.c.bf16 %v1382_v61, %v1382_v61  ;;  %v1386_v14 = vadd.f32 %v1385_v10, %v7323_v41  ;;  %v1387_v58 = vpop.f32.mrb[59].mxu1  ;;  %v7701_v40 = vpack.c.bf16 %v1575_v35, %v1575_v35  ;;  %v1579_v6 = vadd.f32 %v1578_v44, %v7326_v1  ;;  %v1580_v62 = vpop.f32.mrb[59].mxu0 }
 0x1ed   : > { %2182 = vrot.lane.b32.xlu0 %v7288_v33, %s6517_s28  ;;  %v7706_v22 = vpack.c.bf16 %v1384_v20, %v1384_v20  ;;  %v1388_v61 = vadd.f32 %v1387_v58, %v7337_v63  ;;  %v7709_v51 = vpack.c.bf16 %v1577_v7, %v1577_v7  ;;  %v1581_v10 = vadd.f32 %v1580_v62, %v7340_v3 }
 0x1ee   : > { %1974 = vst.msk [vmem:[%s7371_s12 + $0x30] sm:$0xf] %vm1801_vm0, %v7698_v2  ;;  %v7715_v44 = vpack.c.bf16 %v1386_v14, %v1386_v14  ;;  %2134 = vst.msk [vmem:[%s7379_s11 + $0x30] sm:$0xf] %vm1801_vm0, %v7701_v40  ;;  %v7720_v33 = vpack.c.bf16 %v1579_v6, %v1579_v6 }
 0x1ef   : > { %9333 = vst [vmem:[#allocation22_spill] sm:$0xff] %v7709_v51  ;;  %2184 = vrot.lane.b32.xlu1 %v7305_v39, %s6517_s28  ;;  %v2155_v35 = vpop.permute.xlu0 %2154  ;;  %5683 = vst.msk [vmem:[%s7371_s12 + $0x130] sm:$0xf] %vm1801_vm0, %v7706_v22  ;;  %v7727_v20 = vpack.c.bf16 %v1388_v61, %v1388_v61  ;;  %v7732_v14 = vpack.c.bf16 %v1581_v10, %v1581_v10 }
 0x1f0   : > { %5747 = vst.msk [vmem:[%s7379_s11 + $0x130] sm:$0xf] %vm1801_vm0, %v7709_v51  ;;  %5479 = vst.msk [vmem:[%s6938_s30 + $0x80] sm:$0xf] %vm1801_vm0, %v2155_v35 }
 0x1f1   : > { %9334 = vst [vmem:[#allocation23_spill] sm:$0xff] %v7727_v20  ;;  %9335 = vst [vmem:[#allocation24_spill] sm:$0xff] %v7732_v14  ;;  %v2189_v39 = vpop.permute.xlu1 %2188  ;;  %2214 = vrot.lane.b32.xlu0 %v7291_v54, %s6517_s28  ;;  %v1391_v7 = vpop.f32.mrb[60].mxu1 }
 0x1f2   : > { %1975 = vst.msk [vmem:[%s7371_s12 + $0x34] sm:$0xf] %vm1801_vm0, %v7715_v44  ;;  %2135 = vst.msk [vmem:[%s7379_s11 + $0x34] sm:$0xf] %vm1801_vm0, %v7720_v33  ;;  %v1392_v58 = vadd.f32 %v1391_v7, %v7323_v41  ;;  %v1393_v6 = vpop.f32.mrb[61].mxu1  ;;  %v1584_v62 = vpop.f32.mrb[60].mxu0 }
 0x1f3   : > { %5684 = vst.msk [vmem:[%s7371_s12 + $0x134] sm:$0xf] %vm1801_vm0, %v7727_v20  ;;  %5748 = vst.msk [vmem:[%s7379_s11 + $0x134] sm:$0xf] %vm1801_vm0, %v7732_v14  ;;  %2216 = vrot.lane.b32.xlu1 %v7310_v60, %s6517_s28  ;;  %v2187_v61 = vpop.permute.xlu0 %2186  ;;  %v1394_v54 = vadd.f32 %v1393_v6, %v7337_v63  ;;  %v1395_v10 = vpop.f32.mrb[62].mxu1  ;;  %v1585_v35 = vadd.f32 %v1584_v62, %v7326_v1 }
 0x1f4   : > { %5496 = vst.msk [vmem:[%s6938_s30 + $0xc4] sm:$0xf] %vm1801_vm0, %v2189_v39  ;;  %5495 = vst.msk [vmem:[%s6938_s30 + $0xc0] sm:$0xf] %vm1801_vm0, %v2187_v61  ;;  %v7759_v14 = vpack.c.bf16 %v1392_v58, %v1392_v58  ;;  %v1396_v39 = vadd.f32 %v1395_v10, %v7323_v41  ;;  %v1397_v7 = vpop.f32.mrb[63].mxu1  ;;  %v1586_v51 = vpop.f32.mrb[61].mxu0 }
 0x1f5   : > { %v3027_v20 = vpop.permute.xlu1 %3026  ;;  %3052 = vrot.lane.b32.xlu0 %v7294_v56, %s6517_s28  ;;  %v7764_v60 = vpack.c.bf16 %v1394_v54, %v1394_v54  ;;  %v1398_v6 = vadd.f32 %v1397_v7, %v7337_v63  ;;  %v7767_v62 = vpack.c.bf16 %v1585_v35, %v1585_v35  ;;  %v1587_v58 = vadd.f32 %v1586_v51, %v7340_v3  ;;  %v1588_v61 = vpop.f32.mrb[62].mxu0 }
 0x1f6   : > { %5768 = vst.msk [vmem:[%s6938_s30 + $0x184] sm:$0xf] %vm1801_vm0, %v3027_v20  ;;  %1976 = vst.msk [vmem:[%s7371_s12 + $0x38] sm:$0xf] %vm1801_vm0, %v7759_v14  ;;  %v7775_v10 = vpack.c.bf16 %v1396_v39, %v1396_v39  ;;  %v1589_v56 = vadd.f32 %v1588_v61, %v7326_v1  ;;  %v1590_v54 = vpop.f32.mrb[63].mxu0 }
 0x1f7   : > { %9336 = vst [vmem:[#allocation25_spill] sm:$0xff] %v7764_v60  ;;  %3054 = vrot.lane.b32.xlu1 %v7315_v0, %s6517_s28  ;;  %v3025_v35 = vpop.permute.xlu0 %3024  ;;  %5685 = vst.msk [vmem:[%s7371_s12 + $0x138] sm:$0xf] %vm1801_vm0, %v7764_v60  ;;  %v7783_v51 = vpack.c.bf16 %v1398_v6, %v1398_v6  ;;  %v7788_v20 = vpack.c.bf16 %v1587_v58, %v1587_v58  ;;  %v1591_v39 = vadd.f32 %v1590_v54, %v7340_v3 }
 0x1f8   : > { %2136 = vst.msk [vmem:[%s7379_s11 + $0x38] sm:$0xf] %vm1801_vm0, %v7767_v62  ;;  %5767 = vst.msk [vmem:[%s6938_s30 + $0x180] sm:$0xf] %vm1801_vm0, %v3025_v35  ;;  %v7796_v0 = vpack.c.bf16 %v1589_v56, %v1589_v56 }
 0x1f9   : > { %9337 = vst [vmem:[#allocation26_spill] sm:$0xff] %v7783_v51  ;;  %9338 = vst [vmem:[#allocation27_spill] sm:$0xff] %v7788_v20  ;;  %v3059_v7 = vpop.permute.xlu1 %3058  ;;  %3084 = vrot.lane.b32.xlu0 %v7297_v57, %s6517_s28  ;;  %v7806_v6 = vpack.c.bf16 %v1591_v39, %v1591_v39  ;;  %v1401_v58 = vpop.f32.mrb[64].mxu1 }
 0x1fa   : > { %1977 = vst.msk [vmem:[%s7371_s12 + $0x3c] sm:$0xf] %vm1801_vm0, %v7775_v10  ;;  %5686 = vst.msk [vmem:[%s7371_s12 + $0x13c] sm:$0xf] %vm1801_vm0, %v7783_v51  ;;  %v1402_v61 = vadd.f32 %v1401_v58, %v7323_v41  ;;  %v1403_v56 = vpop.f32.mrb[65].mxu1  ;;  %v1594_v54 = vpop.f32.mrb[64].mxu0 }
 0x1fb   : > { %5749 = vst.msk [vmem:[%s7379_s11 + $0x138] sm:$0xf] %vm1801_vm0, %v7788_v20  ;;  %9339 = vst [vmem:[#allocation28_spill] sm:$0xff] %v7806_v6  ;;  %3086 = vrot.lane.b32.xlu1 %v7320_v46, %s6517_s28  ;;  %v3057_v57 = vpop.permute.xlu0 %3056  ;;  %v1404_v35 = vadd.f32 %v1403_v56, %v7337_v63  ;;  %v1405_v39 = vpop.f32.mrb[66].mxu1 }
 0x1fc   : > { %5784 = vst.msk [vmem:[%s6938_s30 + $0x1c4] sm:$0xf] %vm1801_vm0, %v3059_v7  ;;  %2137 = vst.msk [vmem:[%s7379_s11 + $0x3c] sm:$0xf] %vm1801_vm0, %v7796_v0  ;;  %v1595_v7 = vadd.f32 %v1594_v54, %v7326_v1  ;;  %v7823_v20 = vpack.c.bf16 %v1402_v61, %v1402_v61  ;;  %v1406_v58 = vadd.f32 %v1405_v39, %v7323_v41  ;;  %v1407_v51 = vpop.f32.mrb[67].mxu1  ;;  %v1596_v46 = vpop.f32.mrb[65].mxu0 }
 0x1fd   : > { %5750 = vst.msk [vmem:[%s7379_s11 + $0x13c] sm:$0xf] %vm1801_vm0, %v7806_v6  ;;  %5783 = vst.msk [vmem:[%s6938_s30 + $0x1c0] sm:$0xf] %vm1801_vm0, %v3057_v57  ;;  %v2159_v60 = vpop.permute.xlu1 %2158  ;;  %2283 = vrot.lane.b32.xlu0 %v7356_v43, %s6517_s28  ;;  %v7828_v6 = vpack.c.bf16 %v1404_v35, %v1404_v35  ;;  %v1408_v56 = vadd.f32 %v1407_v51, %v7337_v63  ;;  %v1597_v61 = vadd.f32 %v1596_v46, %v7340_v3  ;;  %v1598_v57 = vpop.f32.mrb[66].mxu0 }
 0x1fe   : > { %v7831_v54 = vpack.c.bf16 %v1595_v7, %v1595_v7  ;;  %5481 = vst.msk [vmem:[%s6938_s30 + $0x88] sm:$0xf] %vm1801_vm0, %v2159_v60  ;;  %1978 = vst.msk [vmem:[%s7371_s12 + $0x40] sm:$0xf] %vm1801_vm0, %v7823_v20  ;;  %v7839_v39 = vpack.c.bf16 %v1406_v58, %v1406_v58  ;;  %v1599_v43 = vadd.f32 %v1598_v57, %v7326_v1  ;;  %v1600_v35 = vpop.f32.mrb[67].mxu0 }
 0x1ff   : > { %2285 = vrot.lane.b32.xlu1 %v7376_v32, %s6517_s28  ;;  %v2157_v51 = vpop.permute.xlu0 %2156  ;;  %5687 = vst.msk [vmem:[%s7371_s12 + $0x140] sm:$0xf] %vm1801_vm0, %v7828_v6  ;;  %v7847_v60 = vpack.c.bf16 %v1408_v56, %v1408_v56  ;;  %v7852_v7 = vpack.c.bf16 %v1597_v61, %v1597_v61  ;;  %v1601_v58 = vadd.f32 %v1600_v35, %v7340_v3 }
 0x200   : > { %2138 = vst.msk [vmem:[%s7379_s11 + $0x40] sm:$0xf] %vm1801_vm0, %v7831_v54  ;;  %5480 = vst.msk [vmem:[%s6938_s30 + $0x84] sm:$0xf] %vm1801_vm0, %v2157_v51  ;;  %v7860_v32 = vpack.c.bf16 %v1599_v43, %v1599_v43 }
 0x201   : > { %1979 = vst.msk [vmem:[%s7371_s12 + $0x44] sm:$0xf] %vm1801_vm0, %v7839_v39  ;;  %v2161_v46 = vpop.permute.xlu1 %2160  ;;  %2412 = vrot.lane.b32.xlu0 %v7359_v23, %s6517_s28  ;;  %5688 = vst.msk [vmem:[%s7371_s12 + $0x144] sm:$0xf] %vm1801_vm0, %v7847_v60  ;;  %v7870_v56 = vpack.c.bf16 %v1601_v58, %v1601_v58  ;;  %v1411_v23 = vpop.f32.mrb[68].mxu1 }
 0x202   : > { %5751 = vst.msk [vmem:[%s7379_s11 + $0x140] sm:$0xf] %vm1801_vm0, %v7852_v7  ;;  %5482 = vst.msk [vmem:[%s6938_s30 + $0x8c] sm:$0xf] %vm1801_vm0, %v2161_v46  ;;  %v1412_v43 = vadd.f32 %v1411_v23, %v7323_v41  ;;  %v1413_v35 = vpop.f32.mrb[69].mxu1  ;;  %v1604_v23 = vpop.f32.mrb[68].mxu0 }
 0x203   : > { %9340 = vst [vmem:[#allocation29_spill] sm:$0xff] %v7870_v56  ;;  %2139 = vst.msk [vmem:[%s7379_s11 + $0x44] sm:$0xf] %vm1801_vm0, %v7860_v32  ;;  %2414 = vrot.lane.b32.xlu1 %v7384_v5, %s6517_s28  ;;  %v2191_v61 = vpop.permute.xlu0 %2190  ;;  %v1414_v58 = vadd.f32 %v1413_v35, %v7337_v63  ;;  %v1415_v46 = vpop.f32.mrb[70].mxu1 }
 0x204   : > { %5752 = vst.msk [vmem:[%s7379_s11 + $0x144] sm:$0xf] %vm1801_vm0, %v7870_v56  ;;  %5497 = vst.msk [vmem:[%s6938_s30 + $0xc8] sm:$0xf] %vm1801_vm0, %v2191_v61  ;;  %v7891_v51 = vpack.c.bf16 %v1412_v43, %v1412_v43  ;;  %v1417_v61 = vpop.f32.mrb[71].mxu1  ;;  %v1605_v43 = vadd.f32 %v1604_v23, %v7326_v1 }
 0x205   : > { %v2193_v57 = vpop.permute.xlu1 %2192  ;;  %3153 = vrot.lane.b32.xlu0 %v7364_v52, %s6517_s28  ;;  %v1416_v52 = vadd.f32 %v1415_v46, %v7323_v41 }
 0x206   : > { %5498 = vst.msk [vmem:[%s6938_s30 + $0xcc] sm:$0xf] %vm1801_vm0, %v2193_v57  ;;  %1980 = vst.msk [vmem:[%s7371_s12 + $0x48] sm:$0xf] %vm1801_vm0, %v7891_v51  ;;  %v1418_v57 = vadd.f32 %v1417_v61, %v7337_v63  ;;  %v7917_v46 = vpack.c.bf16 %v1605_v43, %v1605_v43 }
 0x207   : > { %3155 = vrot.lane.b32.xlu1 %v7391_v34, %s6517_s28  ;;  %v3029_v5 = vpop.permute.xlu0 %3028  ;;  %v7902_v34 = vpack.c.bf16 %v1414_v58, %v1414_v58  ;;  %v7908_v35 = vpack.c.bf16 %v1416_v52, %v1416_v52 }
 0x208   : > { %5769 = vst.msk [vmem:[%s6938_s30 + $0x188] sm:$0xf] %vm1801_vm0, %v3029_v5  ;;  %v1606_v5 = vpop.f32.mrb[69].mxu0  ;;  %v7915_v58 = vpack.c.bf16 %v1418_v57, %v1418_v57  ;;  %2140 = vst.msk [vmem:[%s7379_s11 + $0x48] sm:$0xf] %vm1801_vm0, %v7917_v46 }
 0x209   : > { %v3031_v56 = vpop.permute.xlu1 %3030  ;;  %3282 = vrot.lane.b32.xlu0 %v7367_v28, %s6517_s28  ;;  %5689 = vst.msk [vmem:[%s7371_s12 + $0x148] sm:$0xf] %vm1801_vm0, %v7902_v34  ;;  %v1607_v61 = vadd.f32 %v1606_v5, %v7340_v3  ;;  %1981 = vst.msk [vmem:[%s7371_s12 + $0x4c] sm:$0xf] %vm1801_vm0, %v7908_v35 }
 0x20a   : > { %5770 = vst.msk [vmem:[%s6938_s30 + $0x18c] sm:$0xf] %vm1801_vm0, %v3031_v56  ;;  %v1608_v56 = vpop.f32.mrb[70].mxu0  ;;  %5690 = vst.msk [vmem:[%s7371_s12 + $0x14c] sm:$0xf] %vm1801_vm0, %v7915_v58 }
 0x20b   : > { %3284 = vrot.lane.b32.xlu1 %v7396_v59, %s6517_s28  ;;  %v3061_v28 = vpop.permute.xlu0 %3060  ;;  %v1609_v59 = vadd.f32 %v1608_v56, %v7326_v1  ;;  %v1610_v52 = vpop.f32.mrb[71].mxu0  ;;  %v7934_v57 = vpack.c.bf16 %v1607_v61, %v1607_v61 }
 0x20c   : > { %5785 = vst.msk [vmem:[%s6938_s30 + $0x1c8] sm:$0xf] %vm1801_vm0, %v3061_v28  ;;  %v1611_v43 = vadd.f32 %v1610_v52, %v7340_v3  ;;  %v1421_v56 = vpop.f32.mrb[72].mxu1 }
 0x20d   : > { %v3063_v23 = vpop.permute.xlu1 %3062  ;;  %2287 = vrot.lane.b32.xlu0 %v7418_v17, %s6517_s28  ;;  %v7939_v5 = vpack.c.bf16 %v1609_v59, %v1609_v59  ;;  %5753 = vst.msk [vmem:[%s7379_s11 + $0x148] sm:$0xf] %vm1801_vm0, %v7934_v57  ;;  %v1423_v52 = vpop.f32.mrb[73].mxu1 }
 0x20e   : > { %5786 = vst.msk [vmem:[%s6938_s30 + $0x1cc] sm:$0xf] %vm1801_vm0, %v3063_v23  ;;  %v7946_v28 = vpack.c.bf16 %v1611_v43, %v1611_v43  ;;  %v1424_v43 = vadd.f32 %v1423_v52, %v7337_v63 }
 0x20f   : > { %2289 = vrot.lane.b32.xlu1 %v7435_v24, %s6517_s28  ;;  %v2163_v17 = vpop.permute.xlu0 %2162  ;;  %2141 = vst.msk [vmem:[%s7379_s11 + $0x4c] sm:$0xf] %vm1801_vm0, %v7939_v5 }
 0x210   : > { %5483 = vst.msk [vmem:[%s6938_s30 + $0x90] sm:$0xf] %vm1801_vm0, %v2163_v17  ;;  %5754 = vst.msk [vmem:[%s7379_s11 + $0x14c] sm:$0xf] %vm1801_vm0, %v7946_v28  ;;  %v1425_v17 = vpop.f32.mrb[74].mxu1 }
 0x211   : > { %v2165_v61 = vpop.permute.xlu1 %2164  ;;  %2416 = vrot.lane.b32.xlu0 %v7421_v37, %s6517_s28  ;;  %v1422_v37 = vadd.f32 %v1421_v56, %v7323_v41 }
 0x212   : > { %5484 = vst.msk [vmem:[%s6938_s30 + $0x94] sm:$0xf] %vm1801_vm0, %v2165_v61  ;;  %v1427_v61 = vpop.f32.mrb[75].mxu1 }
 0x213   : > { %2418 = vrot.lane.b32.xlu1 %v7440_v50, %s6517_s28  ;;  %v2195_v24 = vpop.permute.xlu0 %2194  ;;  %v7971_v50 = vpack.c.bf16 %v1422_v37, %v1422_v37 }
 0x214   : > { %5499 = vst.msk [vmem:[%s6938_s30 + $0xd0] sm:$0xf] %vm1801_vm0, %v2195_v24  ;;  %v1614_v24 = vpop.f32.mrb[72].mxu0 }
 0x215   : > { %v2197_v59 = vpop.permute.xlu1 %2196  ;;  %3157 = vrot.lane.b32.xlu0 %v7426_v9, %s6517_s28  ;;  %v1426_v9 = vadd.f32 %v1425_v17, %v7323_v41  ;;  %1982 = vst.msk [vmem:[%s7371_s12 + $0x50] sm:$0xf] %vm1801_vm0, %v7971_v50  ;;  %v1615_v37 = vadd.f32 %v1614_v24, %v7326_v1 }
 0x216   : > { %5500 = vst.msk [vmem:[%s6938_s30 + $0xd4] sm:$0xf] %vm1801_vm0, %v2197_v59  ;;  %v1428_v59 = vadd.f32 %v1427_v61, %v7337_v63 }
 0x217   : > { %3159 = vrot.lane.b32.xlu1 %v7447_v16, %s6517_s28  ;;  %v3033_v23 = vpop.permute.xlu0 %3032  ;;  %v7982_v16 = vpack.c.bf16 %v1424_v43, %v1424_v43  ;;  %v7988_v52 = vpack.c.bf16 %v1426_v9, %v1426_v9  ;;  %v7997_v17 = vpack.c.bf16 %v1615_v37, %v1615_v37 }
 0x218   : > { %5771 = vst.msk [vmem:[%s6938_s30 + $0x190] sm:$0xf] %vm1801_vm0, %v3033_v23  ;;  %v1616_v23 = vpop.f32.mrb[73].mxu0  ;;  %v7995_v43 = vpack.c.bf16 %v1428_v59, %v1428_v59 }
 0x219   : > { %v3035_v56 = vpop.permute.xlu1 %3034  ;;  %3286 = vrot.lane.b32.xlu0 %v7429_v21, %s6517_s28  ;;  %5691 = vst.msk [vmem:[%s7371_s12 + $0x150] sm:$0xf] %vm1801_vm0, %v7982_v16  ;;  %v1617_v61 = vadd.f32 %v1616_v23, %v7340_v3  ;;  %v1618_v24 = vpop.f32.mrb[74].mxu0  ;;  %1983 = vst.msk [vmem:[%s7371_s12 + $0x54] sm:$0xf] %vm1801_vm0, %v7988_v52 }
 0x21a   : > { %5772 = vst.msk [vmem:[%s6938_s30 + $0x194] sm:$0xf] %vm1801_vm0, %v3035_v56  ;;  %v1620_v9 = vpop.f32.mrb[75].mxu0  ;;  %5692 = vst.msk [vmem:[%s7371_s12 + $0x154] sm:$0xf] %vm1801_vm0, %v7995_v43 }
 0x21b   : > { %3288 = vrot.lane.b32.xlu1 %v7452_v26, %s6517_s28  ;;  %v3065_v21 = vpop.permute.xlu0 %3064  ;;  %v1619_v26 = vadd.f32 %v1618_v24, %v7326_v1  ;;  %2142 = vst.msk [vmem:[%s7379_s11 + $0x50] sm:$0xf] %vm1801_vm0, %v7997_v17  ;;  %v8014_v59 = vpack.c.bf16 %v1617_v61, %v1617_v61  ;;  %v1621_v37 = vadd.f32 %v1620_v9, %v7340_v3  ;;  %v1431_v24 = vpop.f32.mrb[76].mxu1 }
 0x21c   : > { %5787 = vst.msk [vmem:[%s6938_s30 + $0x1d0] sm:$0xf] %vm1801_vm0, %v3065_v21  ;;  %v1433_v9 = vpop.f32.mrb[77].mxu1 }
 0x21d   : > { %v3067_v56 = vpop.permute.xlu1 %3066  ;;  %2291 = vrot.lane.b32.xlu0 %v7474_v49, %s6517_s28  ;;  %v8019_v23 = vpack.c.bf16 %v1619_v26, %v1619_v26  ;;  %5755 = vst.msk [vmem:[%s7379_s11 + $0x150] sm:$0xf] %vm1801_vm0, %v8014_v59  ;;  %v8026_v21 = vpack.c.bf16 %v1621_v37, %v1621_v37  ;;  %v1434_v37 = vadd.f32 %v1433_v9, %v7337_v63 }
 0x21e   : > { %5788 = vst.msk [vmem:[%s6938_s30 + $0x1d4] sm:$0xf] %vm1801_vm0, %v3067_v56 }
 0x21f   : > { %2293 = vrot.lane.b32.xlu1 %v7491_v38, %s6517_s28  ;;  %v2167_v49 = vpop.permute.xlu0 %2166  ;;  %2143 = vst.msk [vmem:[%s7379_s11 + $0x54] sm:$0xf] %vm1801_vm0, %v8019_v23  ;;  %5756 = vst.msk [vmem:[%s7379_s11 + $0x154] sm:$0xf] %vm1801_vm0, %v8026_v21 }
 0x220   : > { %5485 = vst.msk [vmem:[%s6938_s30 + $0x98] sm:$0xf] %vm1801_vm0, %v2167_v49  ;;  %v1435_v49 = vpop.f32.mrb[78].mxu1 }
 0x221   : > { %v2169_v61 = vpop.permute.xlu1 %2168  ;;  %2420 = vrot.lane.b32.xlu0 %v7477_v18, %s6517_s28  ;;  %v1432_v18 = vadd.f32 %v1431_v24, %v7323_v41 }
 0x222   : > { %5486 = vst.msk [vmem:[%s6938_s30 + $0x9c] sm:$0xf] %vm1801_vm0, %v2169_v61  ;;  %v1437_v61 = vpop.f32.mrb[79].mxu1 }
 0x223   : > { %2422 = vrot.lane.b32.xlu1 %v7496_v29, %s6517_s28  ;;  %v2199_v38 = vpop.permute.xlu0 %2198  ;;  %v8051_v29 = vpack.c.bf16 %v1432_v18, %v1432_v18 }
 0x224   : > { %5501 = vst.msk [vmem:[%s6938_s30 + $0xd8] sm:$0xf] %vm1801_vm0, %v2199_v38  ;;  %v1624_v38 = vpop.f32.mrb[76].mxu0 }
 0x225   : > { %v2201_v26 = vpop.permute.xlu1 %2200  ;;  %3161 = vrot.lane.b32.xlu0 %v7482_v8, %s6517_s28  ;;  %v1436_v8 = vadd.f32 %v1435_v49, %v7323_v41  ;;  %1984 = vst.msk [vmem:[%s7371_s12 + $0x58] sm:$0xf] %vm1801_vm0, %v8051_v29  ;;  %v1625_v18 = vadd.f32 %v1624_v38, %v7326_v1 }
 0x226   : > { %5502 = vst.msk [vmem:[%s6938_s30 + $0xdc] sm:$0xf] %vm1801_vm0, %v2201_v26  ;;  %v1438_v26 = vadd.f32 %v1437_v61, %v7337_v63 }
 0x227   : > { %3163 = vrot.lane.b32.xlu1 %v7503_v25, %s6517_s28  ;;  %v3037_v56 = vpop.permute.xlu0 %3036  ;;  %v8062_v25 = vpack.c.bf16 %v1434_v37, %v1434_v37  ;;  %v8068_v9 = vpack.c.bf16 %v1436_v8, %v1436_v8  ;;  %v8077_v49 = vpack.c.bf16 %v1625_v18, %v1625_v18 }
 0x228   : > { %5773 = vst.msk [vmem:[%s6938_s30 + $0x198] sm:$0xf] %vm1801_vm0, %v3037_v56  ;;  %v1626_v56 = vpop.f32.mrb[77].mxu0  ;;  %v8075_v37 = vpack.c.bf16 %v1438_v26, %v1438_v26 }
 0x229   : > { %v3039_v24 = vpop.permute.xlu1 %3038  ;;  %3290 = vrot.lane.b32.xlu0 %v7485_v45, %s6517_s28  ;;  %5693 = vst.msk [vmem:[%s7371_s12 + $0x158] sm:$0xf] %vm1801_vm0, %v8062_v25  ;;  %v1627_v61 = vadd.f32 %v1626_v56, %v7340_v3  ;;  %v1628_v38 = vpop.f32.mrb[78].mxu0  ;;  %1985 = vst.msk [vmem:[%s7371_s12 + $0x5c] sm:$0xf] %vm1801_vm0, %v8068_v9 }
 0x22a   : > { %5774 = vst.msk [vmem:[%s6938_s30 + $0x19c] sm:$0xf] %vm1801_vm0, %v3039_v24  ;;  %v1630_v8 = vpop.f32.mrb[79].mxu0  ;;  %5694 = vst.msk [vmem:[%s7371_s12 + $0x15c] sm:$0xf] %vm1801_vm0, %v8075_v37 }
 0x22b   : > { %3292 = vrot.lane.b32.xlu1 %v7508_v19, %s6517_s28  ;;  %v3069_v45 = vpop.permute.xlu0 %3068  ;;  %v1629_v19 = vadd.f32 %v1628_v38, %v7326_v1  ;;  %2144 = vst.msk [vmem:[%s7379_s11 + $0x58] sm:$0xf] %vm1801_vm0, %v8077_v49  ;;  %v8094_v26 = vpack.c.bf16 %v1627_v61, %v1627_v61  ;;  %v1631_v18 = vadd.f32 %v1630_v8, %v7340_v3  ;;  %v1441_v38 = vpop.f32.mrb[80].mxu1 }
 0x22c   : > { %5789 = vst.msk [vmem:[%s6938_s30 + $0x1d8] sm:$0xf] %vm1801_vm0, %v3069_v45  ;;  %v1443_v8 = vpop.f32.mrb[81].mxu1 }
 0x22d   : > { %v3071_v24 = vpop.permute.xlu1 %3070  ;;  %2295 = vrot.lane.b32.xlu0 %v7530_v12, %s6517_s28  ;;  %v8099_v56 = vpack.c.bf16 %v1629_v19, %v1629_v19  ;;  %5757 = vst.msk [vmem:[%s7379_s11 + $0x158] sm:$0xf] %vm1801_vm0, %v8094_v26  ;;  %v8106_v45 = vpack.c.bf16 %v1631_v18, %v1631_v18  ;;  %v1444_v18 = vadd.f32 %v1443_v8, %v7337_v63 }
 0x22e   : > { %5790 = vst.msk [vmem:[%s6938_s30 + $0x1dc] sm:$0xf] %vm1801_vm0, %v3071_v24 }
 0x22f   : > { %2297 = vrot.lane.b32.xlu1 %v7547_v4, %s6517_s28  ;;  %v2171_v12 = vpop.permute.xlu0 %2170  ;;  %9341 = vst [vmem:[#allocation30_spill] sm:$0xff] %v8106_v45  ;;  %2145 = vst.msk [vmem:[%s7379_s11 + $0x5c] sm:$0xf] %vm1801_vm0, %v8099_v56 }
 0x230   : > { %5487 = vst.msk [vmem:[%s6938_s30 + $0xa0] sm:$0xf] %vm1801_vm0, %v2171_v12  ;;  %5758 = vst.msk [vmem:[%s7379_s11 + $0x15c] sm:$0xf] %vm1801_vm0, %v8106_v45  ;;  %v1445_v12 = vpop.f32.mrb[82].mxu1  ;;  %v9344_v45 = vld [vmem:[#allocation13_spill] sm:$0xff] }
 0x231   : > { %v2173_v61 = vpop.permute.xlu1 %2172  ;;  %2424 = vrot.lane.b32.xlu0 %v7533_v13, %s6517_s28  ;;  %v1442_v13 = vadd.f32 %v1441_v38, %v7323_v41 }
 0x232   : > { %5488 = vst.msk [vmem:[%s6938_s30 + $0xa4] sm:$0xf] %vm1801_vm0, %v2173_v61  ;;  %v1447_v61 = vpop.f32.mrb[83].mxu1 }
 0x233   : > { %2426 = vrot.lane.b32.xlu1 %v7552_v15, %s6517_s28  ;;  %v2203_v4 = vpop.permute.xlu0 %2202  ;;  %v8131_v15 = vpack.c.bf16 %v1442_v13, %v1442_v13  ;;  %v1448_v13 = vadd.f32 %v1447_v61, %v7337_v63 }
 0x234   : > { %5503 = vst.msk [vmem:[%s6938_s30 + $0xe0] sm:$0xf] %vm1801_vm0, %v2203_v4  ;;  %v1634_v4 = vpop.f32.mrb[80].mxu0 }
 0x235   : > { %v2205_v19 = vpop.permute.xlu1 %2204  ;;  %3165 = vrot.lane.b32.xlu0 %v7538_v36, %s6517_s28  ;;  %9342 = vst [vmem:[#allocation31_spill] sm:$0xff] %v8131_v15  ;;  %v1446_v36 = vadd.f32 %v1445_v12, %v7323_v41  ;;  %1986 = vst.msk [vmem:[%s7371_s12 + $0x60] sm:$0xf] %vm1801_vm0, %v8131_v15  ;;  %v1635_v8 = vadd.f32 %v1634_v4, %v7326_v1  ;;  %v1636_v12 = vpop.f32.mrb[81].mxu0 }
 0x236   : > { %5504 = vst.msk [vmem:[%s6938_s30 + $0xe4] sm:$0xf] %vm1801_vm0, %v2205_v19  ;;  %v9343_v19 = vld [vmem:[#allocation12_spill] sm:$0xff]  ;;  %v1637_v4 = vadd.f32 %v1636_v12, %v7340_v3 }
 0x237   : > { %3167 = vrot.lane.b32.xlu1 %v7559_v30, %s6517_s28  ;;  %v3041_v24 = vpop.permute.xlu0 %3040  ;;  %v8142_v30 = vpack.c.bf16 %v1444_v18, %v1444_v18  ;;  %v8155_v18 = vpack.c.bf16 %v1448_v13, %v1448_v13  ;;  %v8157_v61 = vpack.c.bf16 %v1635_v8, %v1635_v8 }
 0x238   : > { %5775 = vst.msk [vmem:[%s6938_s30 + $0x1a0] sm:$0xf] %vm1801_vm0, %v3041_v24  ;;  %v8148_v24 = vpack.c.bf16 %v1446_v36, %v1446_v36  ;;  %v8174_v13 = vpack.c.bf16 %v1637_v4, %v1637_v4 }
 0x239   : > { %v3043_v38 = vpop.permute.xlu1 %3042  ;;  %3294 = vrot.lane.b32.xlu0 %v9343_v19, %s6517_s28  ;;  %5695 = vst.msk [vmem:[%s7371_s12 + $0x160] sm:$0xf] %vm1801_vm0, %v8142_v30  ;;  %9345 = vst [vmem:[#allocation12_spill] sm:$0xff] %v8155_v18 }
 0x23a   : > { %5776 = vst.msk [vmem:[%s6938_s30 + $0x1a4] sm:$0xf] %vm1801_vm0, %v3043_v38  ;;  %v1638_v38 = vpop.f32.mrb[82].mxu0  ;;  %1987 = vst.msk [vmem:[%s7371_s12 + $0x64] sm:$0xf] %vm1801_vm0, %v8148_v24 }
 0x23b   : > { %3296 = vrot.lane.b32.xlu1 %v9344_v45, %s6517_s28  ;;  %v3073_v19 = vpop.permute.xlu0 %3072  ;;  %v1639_v45 = vadd.f32 %v1638_v38, %v7326_v1  ;;  %v1640_v36 = vpop.f32.mrb[83].mxu0  ;;  %5696 = vst.msk [vmem:[%s7371_s12 + $0x164] sm:$0xf] %vm1801_vm0, %v8155_v18  ;;  %2146 = vst.msk [vmem:[%s7379_s11 + $0x60] sm:$0xf] %vm1801_vm0, %v8157_v61  ;;  %v9352_v18 = vld [vmem:[#allocation17_spill] sm:$0xff] }
 0x23c   : > { %5791 = vst.msk [vmem:[%s6938_s30 + $0x1e0] sm:$0xf] %vm1801_vm0, %v3073_v19  ;;  %9346 = vst [vmem:[#allocation13_spill] sm:$0xff] %v8174_v13  ;;  %v1641_v8 = vadd.f32 %v1640_v36, %v7340_v3 }
 0x23d   : > { %v3075_v15 = vpop.permute.xlu1 %3074  ;;  %2299 = vrot.lane.b32.xlu0 %v7586_v55, %s6517_s28  ;;  %v8179_v12 = vpack.c.bf16 %v1639_v45, %v1639_v45  ;;  %5759 = vst.msk [vmem:[%s7379_s11 + $0x160] sm:$0xf] %vm1801_vm0, %v8174_v13  ;;  %v9348_v45 = vld [vmem:[#allocation14_spill] sm:$0xff] }
 0x23e   : > { %5792 = vst.msk [vmem:[%s6938_s30 + $0x1e4] sm:$0xf] %vm1801_vm0, %v3075_v15  ;;  %v8186_v19 = vpack.c.bf16 %v1641_v8, %v1641_v8  ;;  %v1451_v15 = vpop.f32.mrb[84].mxu1  ;;  %v9349_v8 = vld [vmem:[#allocation16_spill] sm:$0xff] }
 0x23f   : > { %2301 = vrot.lane.b32.xlu1 %v7603_v31, %s6517_s28  ;;  %v2175_v55 = vpop.permute.xlu0 %2174  ;;  %2147 = vst.msk [vmem:[%s7379_s11 + $0x64] sm:$0xf] %vm1801_vm0, %v8179_v12  ;;  %v1453_v36 = vpop.f32.mrb[85].mxu1 }
 0x240   : > { %9347 = vst [vmem:[#allocation32_spill] sm:$0xff] %v8186_v19  ;;  %5489 = vst.msk [vmem:[%s6938_s30 + $0xa8] sm:$0xf] %vm1801_vm0, %v2175_v55 }
 0x241   : > { %v2177_v4 = vpop.permute.xlu1 %2176  ;;  %2428 = vrot.lane.b32.xlu0 %v7589_v48, %s6517_s28  ;;  %5760 = vst.msk [vmem:[%s7379_s11 + $0x164] sm:$0xf] %vm1801_vm0, %v8186_v19  ;;  %v1452_v48 = vadd.f32 %v1451_v15, %v7323_v41  ;;  %v1644_v15 = vpop.f32.mrb[84].mxu0 }
 0x242   : > { %5490 = vst.msk [vmem:[%s6938_s30 + $0xac] sm:$0xf] %vm1801_vm0, %v2177_v4  ;;  %v1454_v4 = vadd.f32 %v1453_v36, %v7337_v63 }
 0x243   : > { %2430 = vrot.lane.b32.xlu1 %v7608_v53, %s6517_s28  ;;  %v2207_v31 = vpop.permute.xlu0 %2206  ;;  %v8211_v53 = vpack.c.bf16 %v1452_v48, %v1452_v48 }
 0x244   : > { %5505 = vst.msk [vmem:[%s6938_s30 + $0xe8] sm:$0xf] %vm1801_vm0, %v2207_v31  ;;  %v1455_v31 = vpop.f32.mrb[86].mxu1  ;;  %v8222_v48 = vpack.c.bf16 %v1454_v4, %v1454_v4 }
 0x245   : > { %v2209_v38 = vpop.permute.xlu1 %2208  ;;  %3169 = vrot.lane.b32.xlu0 %v9348_v45, %s6517_s28  ;;  %9350 = vst [vmem:[#allocation14_spill] sm:$0xff] %v8211_v53  ;;  %v1456_v45 = vadd.f32 %v1455_v31, %v7323_v41  ;;  %v1457_v19 = vpop.f32.mrb[87].mxu1  ;;  %1988 = vst.msk [vmem:[%s7371_s12 + $0x68] sm:$0xf] %vm1801_vm0, %v8211_v53 }
 0x246   : > { %5506 = vst.msk [vmem:[%s6938_s30 + $0xec] sm:$0xf] %vm1801_vm0, %v2209_v38  ;;  %v9351_v38 = vld [vmem:[#allocation15_spill] sm:$0xff]  ;;  %v1458_v36 = vadd.f32 %v1457_v19, %v7337_v63  ;;  %v1646_v31 = vpop.f32.mrb[85].mxu0  ;;  %5697 = vst.msk [vmem:[%s7371_s12 + $0x168] sm:$0xf] %vm1801_vm0, %v8222_v48 }
 0x247   : > { %3171 = vrot.lane.b32.xlu1 %v9349_v8, %s6517_s28  ;;  %v3045_v55 = vpop.permute.xlu0 %3044  ;;  %v1645_v8 = vadd.f32 %v1644_v15, %v7326_v1  ;;  %v1647_v15 = vadd.f32 %v1646_v31, %v7340_v3 }
 0x248   : > { %5777 = vst.msk [vmem:[%s6938_s30 + $0x1a8] sm:$0xf] %vm1801_vm0, %v3045_v55  ;;  %v8228_v55 = vpack.c.bf16 %v1456_v45, %v1456_v45  ;;  %v8235_v4 = vpack.c.bf16 %v1458_v36, %v1458_v36 }
 0x249   : > { %v3047_v13 = vpop.permute.xlu1 %3046  ;;  %3298 = vrot.lane.b32.xlu0 %v9351_v38, %s6517_s28  ;;  %v8237_v19 = vpack.c.bf16 %v1645_v8, %v1645_v8  ;;  %v8254_v36 = vpack.c.bf16 %v1647_v15, %v1647_v15 }
 0x24a   : > { %5778 = vst.msk [vmem:[%s6938_s30 + $0x1ac] sm:$0xf] %vm1801_vm0, %v3047_v13  ;;  %9353 = vst [vmem:[#allocation16_spill] sm:$0xff] %v8235_v4  ;;  %v1648_v13 = vpop.f32.mrb[86].mxu0 }
 0x24b   : > { %3300 = vrot.lane.b32.xlu1 %v9352_v18, %s6517_s28  ;;  %v3077_v38 = vpop.permute.xlu0 %3076  ;;  %1989 = vst.msk [vmem:[%s7371_s12 + $0x6c] sm:$0xf] %vm1801_vm0, %v8228_v55  ;;  %v1649_v18 = vadd.f32 %v1648_v13, %v7326_v1  ;;  %v1650_v45 = vpop.f32.mrb[87].mxu0  ;;  %5698 = vst.msk [vmem:[%s7371_s12 + $0x16c] sm:$0xf] %vm1801_vm0, %v8235_v4  ;;  %v9360_v4 = vld [vmem:[#allocation21_spill] sm:$0xff] }
 0x24c   : > { %5793 = vst.msk [vmem:[%s6938_s30 + $0x1e8] sm:$0xf] %vm1801_vm0, %v3077_v38  ;;  %2148 = vst.msk [vmem:[%s7379_s11 + $0x68] sm:$0xf] %vm1801_vm0, %v8237_v19  ;;  %v1651_v8 = vadd.f32 %v1650_v45, %v7340_v3 }
 0x24d   : > { %v3079_v53 = vpop.permute.xlu1 %3078  ;;  %2303 = vrot.lane.b32.xlu0 %v7642_v27, %s6517_s28  ;;  %9354 = vst [vmem:[#allocation15_spill] sm:$0xff] %v8254_v36  ;;  %v8259_v31 = vpack.c.bf16 %v1649_v18, %v1649_v18  ;;  %5761 = vst.msk [vmem:[%s7379_s11 + $0x168] sm:$0xf] %vm1801_vm0, %v8254_v36  ;;  %v9356_v18 = vld [vmem:[#allocation18_spill] sm:$0xff] }
 0x24e   : > { %5794 = vst.msk [vmem:[%s6938_s30 + $0x1ec] sm:$0xf] %vm1801_vm0, %v3079_v53  ;;  %v8266_v38 = vpack.c.bf16 %v1651_v8, %v1651_v8  ;;  %v1461_v53 = vpop.f32.mrb[88].mxu1  ;;  %v9357_v8 = vld [vmem:[#allocation20_spill] sm:$0xff] }
 0x24f   : > { %2305 = vrot.lane.b32.xlu1 %v7659_v47, %s6517_s28  ;;  %v2179_v27 = vpop.permute.xlu0 %2178  ;;  %2149 = vst.msk [vmem:[%s7379_s11 + $0x6c] sm:$0xf] %vm1801_vm0, %v8259_v31  ;;  %v1463_v45 = vpop.f32.mrb[89].mxu1 }
 0x250   : > { %9355 = vst [vmem:[#allocation17_spill] sm:$0xff] %v8266_v38  ;;  %5491 = vst.msk [vmem:[%s6938_s30 + $0xb0] sm:$0xf] %vm1801_vm0, %v2179_v27 }
 0x251   : > { %v2181_v15 = vpop.permute.xlu1 %2180  ;;  %2432 = vrot.lane.b32.xlu0 %v7645_v11, %s6517_s28  ;;  %5762 = vst.msk [vmem:[%s7379_s11 + $0x16c] sm:$0xf] %vm1801_vm0, %v8266_v38  ;;  %v1462_v11 = vadd.f32 %v1461_v53, %v7323_v41  ;;  %v1654_v53 = vpop.f32.mrb[88].mxu0 }
 0x252   : > { %5492 = vst.msk [vmem:[%s6938_s30 + $0xb4] sm:$0xf] %vm1801_vm0, %v2181_v15  ;;  %v1464_v15 = vadd.f32 %v1463_v45, %v7337_v63 }
 0x253   : > { %2434 = vrot.lane.b32.xlu1 %v7664_v42, %s6517_s28  ;;  %v2211_v47 = vpop.permute.xlu0 %2210  ;;  %v8291_v42 = vpack.c.bf16 %v1462_v11, %v1462_v11 }
 0x254   : > { %5507 = vst.msk [vmem:[%s6938_s30 + $0xf0] sm:$0xf] %vm1801_vm0, %v2211_v47  ;;  %v1465_v47 = vpop.f32.mrb[90].mxu1  ;;  %v8302_v11 = vpack.c.bf16 %v1464_v15, %v1464_v15 }
 0x255   : > { %v2213_v13 = vpop.permute.xlu1 %2212  ;;  %3173 = vrot.lane.b32.xlu0 %v9356_v18, %s6517_s28  ;;  %9358 = vst [vmem:[#allocation18_spill] sm:$0xff] %v8291_v42  ;;  %v1466_v18 = vadd.f32 %v1465_v47, %v7323_v41  ;;  %v1467_v38 = vpop.f32.mrb[91].mxu1  ;;  %1990 = vst.msk [vmem:[%s7371_s12 + $0x70] sm:$0xf] %vm1801_vm0, %v8291_v42 }
 0x256   : > { %5508 = vst.msk [vmem:[%s6938_s30 + $0xf4] sm:$0xf] %vm1801_vm0, %v2213_v13  ;;  %v9359_v13 = vld [vmem:[#allocation19_spill] sm:$0xff]  ;;  %v1468_v45 = vadd.f32 %v1467_v38, %v7337_v63  ;;  %v1656_v47 = vpop.f32.mrb[89].mxu0  ;;  %5699 = vst.msk [vmem:[%s7371_s12 + $0x170] sm:$0xf] %vm1801_vm0, %v8302_v11 }
 0x257   : > { %3175 = vrot.lane.b32.xlu1 %v9357_v8, %s6517_s28  ;;  %v3049_v27 = vpop.permute.xlu0 %3048  ;;  %v1655_v8 = vadd.f32 %v1654_v53, %v7326_v1  ;;  %v1657_v53 = vadd.f32 %v1656_v47, %v7340_v3 }
 0x258   : > { %5779 = vst.msk [vmem:[%s6938_s30 + $0x1b0] sm:$0xf] %vm1801_vm0, %v3049_v27  ;;  %v8308_v27 = vpack.c.bf16 %v1466_v18, %v1466_v18  ;;  %v8315_v15 = vpack.c.bf16 %v1468_v45, %v1468_v45 }
 0x259   : > { %v3051_v36 = vpop.permute.xlu1 %3050  ;;  %3302 = vrot.lane.b32.xlu0 %v9359_v13, %s6517_s28  ;;  %v8317_v38 = vpack.c.bf16 %v1655_v8, %v1655_v8  ;;  %v8334_v45 = vpack.c.bf16 %v1657_v53, %v1657_v53 }
 0x25a   : > { %5780 = vst.msk [vmem:[%s6938_s30 + $0x1b4] sm:$0xf] %vm1801_vm0, %v3051_v36  ;;  %v1658_v36 = vpop.f32.mrb[90].mxu0  ;;  %1991 = vst.msk [vmem:[%s7371_s12 + $0x74] sm:$0xf] %vm1801_vm0, %v8308_v27 }
 0x25b   : > { %3304 = vrot.lane.b32.xlu1 %v9360_v4, %s6517_s28  ;;  %v3081_v13 = vpop.permute.xlu0 %3080  ;;  %v1659_v4 = vadd.f32 %v1658_v36, %v7326_v1  ;;  %v1660_v18 = vpop.f32.mrb[91].mxu0  ;;  %5700 = vst.msk [vmem:[%s7371_s12 + $0x174] sm:$0xf] %vm1801_vm0, %v8315_v15  ;;  %2150 = vst.msk [vmem:[%s7379_s11 + $0x70] sm:$0xf] %vm1801_vm0, %v8317_v38 }
 0x25c   : > { %5795 = vst.msk [vmem:[%s6938_s30 + $0x1f0] sm:$0xf] %vm1801_vm0, %v3081_v13  ;;  %v1661_v8 = vadd.f32 %v1660_v18, %v7340_v3  ;;  %5763 = vst.msk [vmem:[%s7379_s11 + $0x170] sm:$0xf] %vm1801_vm0, %v8334_v45  ;;  %v9362_v18 = vld [vmem:[#allocation23_spill] sm:$0xff] }
 0x25d   : > { %v3083_v42 = vpop.permute.xlu1 %3082  ;;  %2307 = vrot.lane.b32.xlu0 %v7698_v2, %s6517_s28  ;;  %v8339_v47 = vpack.c.bf16 %v1659_v4, %v1659_v4 }
 0x25e   : > { %5796 = vst.msk [vmem:[%s6938_s30 + $0x1f4] sm:$0xf] %vm1801_vm0, %v3083_v42  ;;  %v8346_v13 = vpack.c.bf16 %v1661_v8, %v1661_v8  ;;  %v1471_v42 = vpop.f32.mrb[92].mxu1 }
 0x25f   : > { %2309 = vrot.lane.b32.xlu1 %v7715_v44, %s6517_s28  ;;  %v2183_v2 = vpop.permute.xlu0 %2182  ;;  %2151 = vst.msk [vmem:[%s7379_s11 + $0x74] sm:$0xf] %vm1801_vm0, %v8339_v47  ;;  %v1473_v4 = vpop.f32.mrb[93].mxu1 }
 0x260   : > { %9361 = vst [vmem:[#allocation20_spill] sm:$0xff] %v8346_v13  ;;  %5493 = vst.msk [vmem:[%s6938_s30 + $0xb8] sm:$0xf] %vm1801_vm0, %v2183_v2  ;;  %v1474_v2 = vadd.f32 %v1473_v4, %v7337_v63 }
 0x261   : > { %v2185_v53 = vpop.permute.xlu1 %2184  ;;  %2436 = vrot.lane.b32.xlu0 %v7701_v40, %s6517_s28  ;;  %5764 = vst.msk [vmem:[%s7379_s11 + $0x174] sm:$0xf] %vm1801_vm0, %v8346_v13  ;;  %v1472_v40 = vadd.f32 %v1471_v42, %v7323_v41  ;;  %v1664_v42 = vpop.f32.mrb[92].mxu0 }
 0x262   : > { %5494 = vst.msk [vmem:[%s6938_s30 + $0xbc] sm:$0xf] %vm1801_vm0, %v2185_v53  ;;  %v1475_v53 = vpop.f32.mrb[94].mxu1 }
 0x263   : > { %2438 = vrot.lane.b32.xlu1 %v7720_v33, %s6517_s28  ;;  %v2215_v44 = vpop.permute.xlu0 %2214  ;;  %v8371_v33 = vpack.c.bf16 %v1472_v40, %v1472_v40  ;;  %v8382_v40 = vpack.c.bf16 %v1474_v2, %v1474_v2 }
 0x264   : > { %5509 = vst.msk [vmem:[%s6938_s30 + $0xf8] sm:$0xf] %vm1801_vm0, %v2215_v44  ;;  %v1477_v44 = vpop.f32.mrb[95].mxu1 }
 0x265   : > { %v2217_v36 = vpop.permute.xlu1 %2216  ;;  %3177 = vrot.lane.b32.xlu0 %v7706_v22, %s6517_s28  ;;  %v1476_v22 = vadd.f32 %v1475_v53, %v7323_v41  ;;  %1992 = vst.msk [vmem:[%s7371_s12 + $0x78] sm:$0xf] %vm1801_vm0, %v8371_v33  ;;  %v1478_v4 = vadd.f32 %v1477_v44, %v7337_v63  ;;  %v9364_v53 = vld [vmem:[#allocation24_spill] sm:$0xff]  ;;  %5701 = vst.msk [vmem:[%s7371_s12 + $0x178] sm:$0xf] %vm1801_vm0, %v8382_v40 }
 0x266   : > { %5510 = vst.msk [vmem:[%s6938_s30 + $0xfc] sm:$0xf] %vm1801_vm0, %v2217_v36  ;;  %v9363_v36 = vld [vmem:[#allocation22_spill] sm:$0xff] }
 0x267   : > { %3179 = vrot.lane.b32.xlu1 %v9362_v18, %s6517_s28  ;;  %v3053_v8 = vpop.permute.xlu0 %3052  ;;  %v1665_v18 = vadd.f32 %v1664_v42, %v7326_v1  ;;  %v8388_v41 = vpack.c.bf16 %v1476_v22, %v1476_v22  ;;  %v8395_v2 = vpack.c.bf16 %v1478_v4, %v1478_v4 }
 0x268   : > { %5781 = vst.msk [vmem:[%s6938_s30 + $0x1b8] sm:$0xf] %vm1801_vm0, %v3053_v8  ;;  %v1666_v8 = vpop.f32.mrb[93].mxu0 }
 0x269   : > { %v3055_v13 = vpop.permute.xlu1 %3054  ;;  %3306 = vrot.lane.b32.xlu0 %v9363_v36, %s6517_s28  ;;  %v8397_v63 = vpack.c.bf16 %v1665_v18, %v1665_v18  ;;  %v1667_v44 = vadd.f32 %v1666_v8, %v7340_v3  ;;  %1993 = vst.msk [vmem:[%s7371_s12 + $0x7c] sm:$0xf] %vm1801_vm0, %v8388_v41  ;;  %5702 = vst.msk [vmem:[%s7371_s12 + $0x17c] sm:$0xf] %vm1801_vm0, %v8395_v2 }
 0x26a   : > { %5782 = vst.msk [vmem:[%s6938_s30 + $0x1bc] sm:$0xf] %vm1801_vm0, %v3055_v13  ;;  %v1668_v13 = vpop.f32.mrb[94].mxu0 }
 0x26b   : > { %3308 = vrot.lane.b32.xlu1 %v9364_v53, %s6517_s28  ;;  %v3085_v36 = vpop.permute.xlu0 %3084  ;;  %v1669_v22 = vadd.f32 %v1668_v13, %v7326_v1  ;;  %v1670_v42 = vpop.f32.mrb[95].mxu0  ;;  %2152 = vst.msk [vmem:[%s7379_s11 + $0x78] sm:$0xf] %vm1801_vm0, %v8397_v63  ;;  %v8414_v4 = vpack.c.bf16 %v1667_v44, %v1667_v44  ;;  %v9365_v44 = vld [vmem:[#allocation25_spill] sm:$0xff] }
 0x26c   : > { %5797 = vst.msk [vmem:[%s6938_s30 + $0x1f8] sm:$0xf] %vm1801_vm0, %v3085_v36  ;;  %v1671_v18 = vadd.f32 %v1670_v42, %v7340_v3  ;;  %v9368_v42 = vld [vmem:[#allocation28_spill] sm:$0xff] }
 0x26d   : > { %v3087_v53 = vpop.permute.xlu1 %3086  ;;  %2311 = vrot.lane.b32.xlu0 %v7759_v14, %s6517_s28  ;;  %v8419_v1 = vpack.c.bf16 %v1669_v22, %v1669_v22  ;;  %5765 = vst.msk [vmem:[%s7379_s11 + $0x178] sm:$0xf] %vm1801_vm0, %v8414_v4 }
 0x26e   : > { %5798 = vst.msk [vmem:[%s6938_s30 + $0x1fc] sm:$0xf] %vm1801_vm0, %v3087_v53  ;;  %v8426_v8 = vpack.c.bf16 %v1671_v18, %v1671_v18 }
 0x26f   : > { %2313 = vrot.lane.b32.xlu1 %v7775_v10, %s6517_s28  ;;  %v2284_v14 = vpop.permute.xlu0 %2283  ;;  %2153 = vst.msk [vmem:[%s7379_s11 + $0x7c] sm:$0xf] %vm1801_vm0, %v8419_v1 }
 0x270   : > { %5511 = vst.msk [vmem:[%s7371_s12 + $0x80] sm:$0xf] %vm1801_vm0, %v2284_v14  ;;  %5766 = vst.msk [vmem:[%s7379_s11 + $0x17c] sm:$0xf] %vm1801_vm0, %v8426_v8 }
 0x271   : > { %v2286_v3 = vpop.permute.xlu1 %2285  ;;  %2440 = vrot.lane.b32.xlu0 %v7767_v62, %s6517_s28  ;;  %v9366_v62 = vld [vmem:[#allocation26_spill] sm:$0xff] }
 0x272   : > { %5512 = vst.msk [vmem:[%s7371_s12 + $0x84] sm:$0xf] %vm1801_vm0, %v2286_v3 }
 0x273   : > { %2442 = vrot.lane.b32.xlu1 %v7796_v0, %s6517_s28  ;;  %v2413_v10 = vpop.permute.xlu0 %2412  ;;  %v9367_v0 = vld [vmem:[#allocation27_spill] sm:$0xff] }
 0x274   : > { %5543 = vst.msk [vmem:[%s7379_s11 + $0x80] sm:$0xf] %vm1801_vm0, %v2413_v10 }
 0x275   : > { %v2415_v36 = vpop.permute.xlu1 %2414  ;;  %3181 = vrot.lane.b32.xlu0 %v9365_v44, %s6517_s28 }
 0x276   : > { %5544 = vst.msk [vmem:[%s7379_s11 + $0x84] sm:$0xf] %vm1801_vm0, %v2415_v36 }
 0x277   : > { %3183 = vrot.lane.b32.xlu1 %v9366_v62, %s6517_s28  ;;  %v3154_v13 = vpop.permute.xlu0 %3153 }
 0x278   : > { %5799 = vst.msk [vmem:[%s7371_s12 + $0x180] sm:$0xf] %vm1801_vm0, %v3154_v13 }
 0x279   : > { %v3156_v22 = vpop.permute.xlu1 %3155  ;;  %3310 = vrot.lane.b32.xlu0 %v9367_v0, %s6517_s28 }
 0x27a   : > { %5800 = vst.msk [vmem:[%s7371_s12 + $0x184] sm:$0xf] %vm1801_vm0, %v3156_v22 }
 0x27b   : > { %3312 = vrot.lane.b32.xlu1 %v9368_v42, %s6517_s28  ;;  %v3283_v53 = vpop.permute.xlu0 %3282 }
 0x27c   : > { %5831 = vst.msk [vmem:[%s7379_s11 + $0x180] sm:$0xf] %vm1801_vm0, %v3283_v53  ;;  %v9374_v53 = vld [vmem:[#allocation32_spill] sm:$0xff] }
 0x27d   : > { %v3285_v18 = vpop.permute.xlu1 %3284  ;;  %2315 = vrot.lane.b32.xlu0 %v7823_v20, %s6517_s28 }
 0x27e   : > { %5832 = vst.msk [vmem:[%s7379_s11 + $0x184] sm:$0xf] %vm1801_vm0, %v3285_v18 }
 0x27f   : > { %2317 = vrot.lane.b32.xlu1 %v7839_v39, %s6517_s28  ;;  %v2288_v14 = vpop.permute.xlu0 %2287 }
 0x280   : > { %5513 = vst.msk [vmem:[%s7371_s12 + $0x88] sm:$0xf] %vm1801_vm0, %v2288_v14  ;;  %v9375_v14 = vld [vmem:[#allocation14_spill] sm:$0xff] }
 0x281   : > { %v2290_v3 = vpop.permute.xlu1 %2289  ;;  %2444 = vrot.lane.b32.xlu0 %v7831_v54, %s6517_s28 }
 0x282   : > { %5514 = vst.msk [vmem:[%s7371_s12 + $0x8c] sm:$0xf] %vm1801_vm0, %v2290_v3 }
 0x283   : > { %2446 = vrot.lane.b32.xlu1 %v7860_v32, %s6517_s28  ;;  %v2417_v20 = vpop.permute.xlu0 %2416  ;;  %v9369_v32 = vld [vmem:[#allocation29_spill] sm:$0xff] }
 0x284   : > { %5545 = vst.msk [vmem:[%s7379_s11 + $0x88] sm:$0xf] %vm1801_vm0, %v2417_v20 }
 0x285   : > { %v2419_v10 = vpop.permute.xlu1 %2418  ;;  %3185 = vrot.lane.b32.xlu0 %v7828_v6, %s6517_s28 }
 0x286   : > { %5546 = vst.msk [vmem:[%s7379_s11 + $0x8c] sm:$0xf] %vm1801_vm0, %v2419_v10 }
 0x287   : > { %3187 = vrot.lane.b32.xlu1 %v7847_v60, %s6517_s28  ;;  %v3158_v54 = vpop.permute.xlu0 %3157 }
 0x288   : > { %5801 = vst.msk [vmem:[%s7371_s12 + $0x188] sm:$0xf] %vm1801_vm0, %v3158_v54 }
 0x289   : > { %v3160_v39 = vpop.permute.xlu1 %3159  ;;  %3314 = vrot.lane.b32.xlu0 %v7852_v7, %s6517_s28 }
 0x28a   : > { %5802 = vst.msk [vmem:[%s7371_s12 + $0x18c] sm:$0xf] %vm1801_vm0, %v3160_v39 }
 0x28b   : > { %3316 = vrot.lane.b32.xlu1 %v9369_v32, %s6517_s28  ;;  %v3287_v6 = vpop.permute.xlu0 %3286  ;;  %v9378_v32 = vld [vmem:[#allocation17_spill] sm:$0xff] }
 0x28c   : > { %5833 = vst.msk [vmem:[%s7379_s11 + $0x188] sm:$0xf] %vm1801_vm0, %v3287_v6 }
 0x28d   : > { %v3289_v36 = vpop.permute.xlu1 %3288  ;;  %2319 = vrot.lane.b32.xlu0 %v7891_v51, %s6517_s28 }
 0x28e   : > { %5834 = vst.msk [vmem:[%s7379_s11 + $0x18c] sm:$0xf] %vm1801_vm0, %v3289_v36  ;;  %v9379_v36 = vld [vmem:[#allocation18_spill] sm:$0xff] }
 0x28f   : > { %2321 = vrot.lane.b32.xlu1 %v7908_v35, %s6517_s28  ;;  %v2292_v60 = vpop.permute.xlu0 %2291 }
 0x290   : > { %5515 = vst.msk [vmem:[%s7371_s12 + $0x90] sm:$0xf] %vm1801_vm0, %v2292_v60 }
 0x291   : > { %v2294_v7 = vpop.permute.xlu1 %2293  ;;  %2448 = vrot.lane.b32.xlu0 %v7917_v46, %s6517_s28 }
 0x292   : > { %5516 = vst.msk [vmem:[%s7371_s12 + $0x94] sm:$0xf] %vm1801_vm0, %v2294_v7 }
 0x293   : > { %2450 = vrot.lane.b32.xlu1 %v7939_v5, %s6517_s28  ;;  %v2421_v51 = vpop.permute.xlu0 %2420 }
 0x294   : > { %5547 = vst.msk [vmem:[%s7379_s11 + $0x90] sm:$0xf] %vm1801_vm0, %v2421_v51 }
 0x295   : > { %v2423_v44 = vpop.permute.xlu1 %2422  ;;  %3189 = vrot.lane.b32.xlu0 %v7902_v34, %s6517_s28 }
 0x296   : > { %5548 = vst.msk [vmem:[%s7379_s11 + $0x94] sm:$0xf] %vm1801_vm0, %v2423_v44 }
 0x297   : > { %3191 = vrot.lane.b32.xlu1 %v7915_v58, %s6517_s28  ;;  %v3162_v35 = vpop.permute.xlu0 %3161 }
 0x298   : > { %5803 = vst.msk [vmem:[%s7371_s12 + $0x190] sm:$0xf] %vm1801_vm0, %v3162_v35 }
 0x299   : > { %v3164_v46 = vpop.permute.xlu1 %3163  ;;  %3318 = vrot.lane.b32.xlu0 %v7934_v57, %s6517_s28 }
 0x29a   : > { %5804 = vst.msk [vmem:[%s7371_s12 + $0x194] sm:$0xf] %vm1801_vm0, %v3164_v46 }
 0x29b   : > { %3320 = vrot.lane.b32.xlu1 %v7946_v28, %s6517_s28  ;;  %v3291_v34 = vpop.permute.xlu0 %3290 }
 0x29c   : > { %5835 = vst.msk [vmem:[%s7379_s11 + $0x190] sm:$0xf] %vm1801_vm0, %v3291_v34 }
 0x29d   : > { %v3293_v5 = vpop.permute.xlu1 %3292  ;;  %2323 = vrot.lane.b32.xlu0 %v7971_v50, %s6517_s28 }
 0x29e   : > { %5836 = vst.msk [vmem:[%s7379_s11 + $0x194] sm:$0xf] %vm1801_vm0, %v3293_v5 }
 0x29f   : > { %2325 = vrot.lane.b32.xlu1 %v7988_v52, %s6517_s28  ;;  %v2296_v58 = vpop.permute.xlu0 %2295 }
 0x2a0   : > { %5517 = vst.msk [vmem:[%s7371_s12 + $0x98] sm:$0xf] %vm1801_vm0, %v2296_v58 }
 0x2a1   : > { %v2298_v57 = vpop.permute.xlu1 %2297  ;;  %2452 = vrot.lane.b32.xlu0 %v7997_v17, %s6517_s28 }
 0x2a2   : > { %5518 = vst.msk [vmem:[%s7371_s12 + $0x9c] sm:$0xf] %vm1801_vm0, %v2298_v57 }
 0x2a3   : > { %2454 = vrot.lane.b32.xlu1 %v8019_v23, %s6517_s28  ;;  %v2425_v28 = vpop.permute.xlu0 %2424 }
 0x2a4   : > { %5549 = vst.msk [vmem:[%s7379_s11 + $0x98] sm:$0xf] %vm1801_vm0, %v2425_v28 }
 0x2a5   : > { %v2427_v50 = vpop.permute.xlu1 %2426  ;;  %3193 = vrot.lane.b32.xlu0 %v7982_v16, %s6517_s28 }
 0x2a6   : > { %5550 = vst.msk [vmem:[%s7379_s11 + $0x9c] sm:$0xf] %vm1801_vm0, %v2427_v50 }
 0x2a7   : > { %3195 = vrot.lane.b32.xlu1 %v7995_v43, %s6517_s28  ;;  %v3166_v52 = vpop.permute.xlu0 %3165 }
 0x2a8   : > { %5805 = vst.msk [vmem:[%s7371_s12 + $0x198] sm:$0xf] %vm1801_vm0, %v3166_v52 }
 0x2a9   : > { %v3168_v17 = vpop.permute.xlu1 %3167  ;;  %3322 = vrot.lane.b32.xlu0 %v8014_v59, %s6517_s28 }
 0x2aa   : > { %5806 = vst.msk [vmem:[%s7371_s12 + $0x19c] sm:$0xf] %vm1801_vm0, %v3168_v17 }
 0x2ab   : > { %3324 = vrot.lane.b32.xlu1 %v8026_v21, %s6517_s28  ;;  %v3295_v16 = vpop.permute.xlu0 %3294 }
 0x2ac   : > { %5837 = vst.msk [vmem:[%s7379_s11 + $0x198] sm:$0xf] %vm1801_vm0, %v3295_v16 }
 0x2ad   : > { %v3297_v23 = vpop.permute.xlu1 %3296  ;;  %2327 = vrot.lane.b32.xlu0 %v8051_v29, %s6517_s28 }
 0x2ae   : > { %5838 = vst.msk [vmem:[%s7379_s11 + $0x19c] sm:$0xf] %vm1801_vm0, %v3297_v23 }
 0x2af   : > { %2329 = vrot.lane.b32.xlu1 %v8068_v9, %s6517_s28  ;;  %v2300_v43 = vpop.permute.xlu0 %2299 }
 0x2b0   : > { %5519 = vst.msk [vmem:[%s7371_s12 + $0xa0] sm:$0xf] %vm1801_vm0, %v2300_v43 }
 0x2b1   : > { %v2302_v59 = vpop.permute.xlu1 %2301  ;;  %2456 = vrot.lane.b32.xlu0 %v8077_v49, %s6517_s28 }
 0x2b2   : > { %5520 = vst.msk [vmem:[%s7371_s12 + $0xa4] sm:$0xf] %vm1801_vm0, %v2302_v59 }
 0x2b3   : > { %2458 = vrot.lane.b32.xlu1 %v8099_v56, %s6517_s28  ;;  %v2429_v21 = vpop.permute.xlu0 %2428  ;;  %v9370_v56 = vld [vmem:[#allocation30_spill] sm:$0xff] }
 0x2b4   : > { %5551 = vst.msk [vmem:[%s7379_s11 + $0xa0] sm:$0xf] %vm1801_vm0, %v2429_v21 }
 0x2b5   : > { %v2431_v29 = vpop.permute.xlu1 %2430  ;;  %3197 = vrot.lane.b32.xlu0 %v8062_v25, %s6517_s28 }
 0x2b6   : > { %5552 = vst.msk [vmem:[%s7379_s11 + $0xa4] sm:$0xf] %vm1801_vm0, %v2431_v29 }
 0x2b7   : > { %3199 = vrot.lane.b32.xlu1 %v8075_v37, %s6517_s28  ;;  %v3170_v9 = vpop.permute.xlu0 %3169  ;;  %v9371_v37 = vld [vmem:[#allocation31_spill] sm:$0xff] }
 0x2b8   : > { %5807 = vst.msk [vmem:[%s7371_s12 + $0x1a0] sm:$0xf] %vm1801_vm0, %v3170_v9 }
 0x2b9   : > { %v3172_v49 = vpop.permute.xlu1 %3171  ;;  %3326 = vrot.lane.b32.xlu0 %v8094_v26, %s6517_s28 }
 0x2ba   : > { %5808 = vst.msk [vmem:[%s7371_s12 + $0x1a4] sm:$0xf] %vm1801_vm0, %v3172_v49 }
 0x2bb   : > { %3328 = vrot.lane.b32.xlu1 %v9370_v56, %s6517_s28  ;;  %v3299_v25 = vpop.permute.xlu0 %3298 }
 0x2bc   : > { %5839 = vst.msk [vmem:[%s7379_s11 + $0x1a0] sm:$0xf] %vm1801_vm0, %v3299_v25 }
 0x2bd   : > { %v3301_v62 = vpop.permute.xlu1 %3300  ;;  %2331 = vrot.lane.b32.xlu0 %v9371_v37, %s6517_s28 }
 0x2be   : > { %5840 = vst.msk [vmem:[%s7379_s11 + $0x1a4] sm:$0xf] %vm1801_vm0, %v3301_v62 }
 0x2bf   : > { %2333 = vrot.lane.b32.xlu1 %v8148_v24, %s6517_s28  ;;  %v2304_v26 = vpop.permute.xlu0 %2303  ;;  %v9372_v24 = vld [vmem:[#allocation12_spill] sm:$0xff] }
 0x2c0   : > { %5521 = vst.msk [vmem:[%s7371_s12 + $0xa8] sm:$0xf] %vm1801_vm0, %v2304_v26 }
 0x2c1   : > { %v2306_v13 = vpop.permute.xlu1 %2305  ;;  %2460 = vrot.lane.b32.xlu0 %v8157_v61, %s6517_s28 }
 0x2c2   : > { %5522 = vst.msk [vmem:[%s7371_s12 + $0xac] sm:$0xf] %vm1801_vm0, %v2306_v13 }
 0x2c3   : > { %2462 = vrot.lane.b32.xlu1 %v8179_v12, %s6517_s28  ;;  %v2433_v22 = vpop.permute.xlu0 %2432  ;;  %v9373_v12 = vld [vmem:[#allocation13_spill] sm:$0xff] }
 0x2c4   : > { %5553 = vst.msk [vmem:[%s7379_s11 + $0xa8] sm:$0xf] %vm1801_vm0, %v2433_v22 }
 0x2c5   : > { %v2435_v0 = vpop.permute.xlu1 %2434  ;;  %3201 = vrot.lane.b32.xlu0 %v8142_v30, %s6517_s28 }
 0x2c6   : > { %5554 = vst.msk [vmem:[%s7379_s11 + $0xac] sm:$0xf] %vm1801_vm0, %v2435_v0 }
 0x2c7   : > { %3203 = vrot.lane.b32.xlu1 %v9372_v24, %s6517_s28  ;;  %v3174_v61 = vpop.permute.xlu0 %3173 }
 0x2c8   : > { %5809 = vst.msk [vmem:[%s7371_s12 + $0x1a8] sm:$0xf] %vm1801_vm0, %v3174_v61 }
 0x2c9   : > { %v3176_v42 = vpop.permute.xlu1 %3175  ;;  %3330 = vrot.lane.b32.xlu0 %v9373_v12, %s6517_s28 }
 0x2ca   : > { %5810 = vst.msk [vmem:[%s7371_s12 + $0x1ac] sm:$0xf] %vm1801_vm0, %v3176_v42 }
 0x2cb   : > { %3332 = vrot.lane.b32.xlu1 %v9374_v53, %s6517_s28  ;;  %v3303_v30 = vpop.permute.xlu0 %3302 }
 0x2cc   : > { %5841 = vst.msk [vmem:[%s7379_s11 + $0x1a8] sm:$0xf] %vm1801_vm0, %v3303_v30 }
 0x2cd   : > { %v3305_v18 = vpop.permute.xlu1 %3304  ;;  %2335 = vrot.lane.b32.xlu0 %v9375_v14, %s6517_s28 }
 0x2ce   : > { %5842 = vst.msk [vmem:[%s7379_s11 + $0x1ac] sm:$0xf] %vm1801_vm0, %v3305_v18 }
 0x2cf   : > { %2337 = vrot.lane.b32.xlu1 %v8228_v55, %s6517_s28  ;;  %v2308_v3 = vpop.permute.xlu0 %2307  ;;  %v9376_v55 = vld [vmem:[#allocation16_spill] sm:$0xff] }
 0x2d0   : > { %5523 = vst.msk [vmem:[%s7371_s12 + $0xb0] sm:$0xf] %vm1801_vm0, %v2308_v3 }
 0x2d1   : > { %v2310_v20 = vpop.permute.xlu1 %2309  ;;  %2464 = vrot.lane.b32.xlu0 %v8237_v19, %s6517_s28 }
 0x2d2   : > { %5524 = vst.msk [vmem:[%s7371_s12 + $0xb4] sm:$0xf] %vm1801_vm0, %v2310_v20 }
 0x2d3   : > { %2466 = vrot.lane.b32.xlu1 %v8259_v31, %s6517_s28  ;;  %v2437_v10 = vpop.permute.xlu0 %2436  ;;  %v9377_v31 = vld [vmem:[#allocation15_spill] sm:$0xff] }
 0x2d4   : > { %5555 = vst.msk [vmem:[%s7379_s11 + $0xb0] sm:$0xf] %vm1801_vm0, %v2437_v10 }
 0x2d5   : > { %v2439_v54 = vpop.permute.xlu1 %2438  ;;  %3205 = vrot.lane.b32.xlu0 %v8222_v48, %s6517_s28 }
 0x2d6   : > { %5556 = vst.msk [vmem:[%s7379_s11 + $0xb4] sm:$0xf] %vm1801_vm0, %v2439_v54 }
 0x2d7   : > { %3207 = vrot.lane.b32.xlu1 %v9376_v55, %s6517_s28  ;;  %v3178_v19 = vpop.permute.xlu0 %3177 }
 0x2d8   : > { %5811 = vst.msk [vmem:[%s7371_s12 + $0x1b0] sm:$0xf] %vm1801_vm0, %v3178_v19 }
 0x2d9   : > { %v3180_v39 = vpop.permute.xlu1 %3179  ;;  %3334 = vrot.lane.b32.xlu0 %v9377_v31, %s6517_s28 }
 0x2da   : > { %5812 = vst.msk [vmem:[%s7371_s12 + $0x1b4] sm:$0xf] %vm1801_vm0, %v3180_v39 }
 0x2db   : > { %3336 = vrot.lane.b32.xlu1 %v9378_v32, %s6517_s28  ;;  %v3307_v48 = vpop.permute.xlu0 %3306 }
 0x2dc   : > { %5843 = vst.msk [vmem:[%s7379_s11 + $0x1b0] sm:$0xf] %vm1801_vm0, %v3307_v48 }
 0x2dd   : > { %v3309_v6 = vpop.permute.xlu1 %3308  ;;  %2339 = vrot.lane.b32.xlu0 %v9379_v36, %s6517_s28 }
 0x2de   : > { %5844 = vst.msk [vmem:[%s7379_s11 + $0x1b4] sm:$0xf] %vm1801_vm0, %v3309_v6 }
 0x2df   : > { %2341 = vrot.lane.b32.xlu1 %v8308_v27, %s6517_s28  ;;  %v2312_v60 = vpop.permute.xlu0 %2311 }
 0x2e0   : > { %5525 = vst.msk [vmem:[%s7371_s12 + $0xb8] sm:$0xf] %vm1801_vm0, %v2312_v60 }
 0x2e1   : > { %v2314_v7 = vpop.permute.xlu1 %2313  ;;  %2468 = vrot.lane.b32.xlu0 %v8317_v38, %s6517_s28 }
 0x2e2   : > { %5526 = vst.msk [vmem:[%s7371_s12 + $0xbc] sm:$0xf] %vm1801_vm0, %v2314_v7 }
 0x2e3   : > { %2470 = vrot.lane.b32.xlu1 %v8339_v47, %s6517_s28  ;;  %v2441_v51 = vpop.permute.xlu0 %2440  ;;  %v9380_v47 = vld [vmem:[#allocation20_spill] sm:$0xff] }
 0x2e4   : > { %5557 = vst.msk [vmem:[%s7379_s11 + $0xb8] sm:$0xf] %vm1801_vm0, %v2441_v51 }
 0x2e5   : > { %v2443_v44 = vpop.permute.xlu1 %2442  ;;  %3209 = vrot.lane.b32.xlu0 %v8302_v11, %s6517_s28 }
 0x2e6   : > { %5558 = vst.msk [vmem:[%s7379_s11 + $0xbc] sm:$0xf] %vm1801_vm0, %v2443_v44 }
 0x2e7   : > { %3211 = vrot.lane.b32.xlu1 %v8315_v15, %s6517_s28  ;;  %v3182_v27 = vpop.permute.xlu0 %3181 }
 0x2e8   : > { %5813 = vst.msk [vmem:[%s7371_s12 + $0x1b8] sm:$0xf] %vm1801_vm0, %v3182_v27 }
 0x2e9   : > { %v3184_v38 = vpop.permute.xlu1 %3183  ;;  %3338 = vrot.lane.b32.xlu0 %v8334_v45, %s6517_s28 }
 0x2ea   : > { %5814 = vst.msk [vmem:[%s7371_s12 + $0x1bc] sm:$0xf] %vm1801_vm0, %v3184_v38 }
 0x2eb   : > { %3340 = vrot.lane.b32.xlu1 %v9380_v47, %s6517_s28  ;;  %v3311_v11 = vpop.permute.xlu0 %3310 }
 0x2ec   : > { %5845 = vst.msk [vmem:[%s7379_s11 + $0x1b8] sm:$0xf] %vm1801_vm0, %v3311_v11 }
 0x2ed   : > { %v3313_v35 = vpop.permute.xlu1 %3312  ;;  %2343 = vrot.lane.b32.xlu0 %v8371_v33, %s6517_s28 }
 0x2ee   : > { %5846 = vst.msk [vmem:[%s7379_s11 + $0x1bc] sm:$0xf] %vm1801_vm0, %v3313_v35 }
 0x2ef   : > { %2345 = vrot.lane.b32.xlu1 %v8388_v41, %s6517_s28  ;;  %v2316_v15 = vpop.permute.xlu0 %2315 }
 0x2f0   : > { %5527 = vst.msk [vmem:[%s7371_s12 + $0xc0] sm:$0xf] %vm1801_vm0, %v2316_v15  ;;  %v3446_v15 = vld [vmem:[%s6938_s30] sm:$0xff] (%p6649_p10)  }
 0x2f1   : > { %v2318_v45 = vpop.permute.xlu1 %2317  ;;  %2472 = vrot.lane.b32.xlu0 %v8397_v63, %s6517_s28  ;;  %3447 = vst [vmem:[%s8846_s6] sm:$0xff] (%p6649_p10), %v3446_v15  }
 0x2f2   : > { %5528 = vst.msk [vmem:[%s7371_s12 + $0xc4] sm:$0xf] %vm1801_vm0, %v2318_v45  ;;  %v3450_v45 = vld [vmem:[%s6938_s30 + $0x8] sm:$0xff] (%p6649_p10)  }
 0x2f3   : > { %2474 = vrot.lane.b32.xlu1 %v8419_v1, %s6517_s28  ;;  %v2445_v33 = vpop.permute.xlu0 %2444  ;;  %3451 = vst [vmem:[%s8846_s6 + $0x8] sm:$0xff] (%p6649_p10), %v3450_v45  }
 0x2f4   : > { %5559 = vst.msk [vmem:[%s7379_s11 + $0xc0] sm:$0xf] %vm1801_vm0, %v2445_v33  ;;  %v3454_v33 = vld [vmem:[%s6938_s30 + $0x10] sm:$0xff] (%p6649_p10)  }
 0x2f5   : > { %v2447_v41 = vpop.permute.xlu1 %2446  ;;  %3213 = vrot.lane.b32.xlu0 %v8382_v40, %s6517_s28  ;;  %3455 = vst [vmem:[%s8846_s6 + $0x10] sm:$0xff] (%p6649_p10), %v3454_v33  }
 0x2f6   : > { %5560 = vst.msk [vmem:[%s7379_s11 + $0xc4] sm:$0xf] %vm1801_vm0, %v2447_v41  ;;  %v3458_v41 = vld [vmem:[%s6938_s30 + $0x18] sm:$0xff] (%p6649_p10)  }
 0x2f7   : > { %3215 = vrot.lane.b32.xlu1 %v8395_v2, %s6517_s28  ;;  %v3186_v63 = vpop.permute.xlu0 %3185  ;;  %3459 = vst [vmem:[%s8846_s6 + $0x18] sm:$0xff] (%p6649_p10), %v3458_v41  }
 0x2f8   : > { %5815 = vst.msk [vmem:[%s7371_s12 + $0x1c0] sm:$0xf] %vm1801_vm0, %v3186_v63  ;;  %v3462_v63 = vld [vmem:[%s6938_s30 + $0x20] sm:$0xff] (%p6649_p10)  }
 0x2f9   : > { %v3188_v1 = vpop.permute.xlu1 %3187  ;;  %3342 = vrot.lane.b32.xlu0 %v8414_v4, %s6517_s28  ;;  %3463 = vst [vmem:[%s8846_s6 + $0x20] sm:$0xff] (%p6649_p10), %v3462_v63  }
 0x2fa   : > { %5816 = vst.msk [vmem:[%s7371_s12 + $0x1c4] sm:$0xf] %vm1801_vm0, %v3188_v1  ;;  %v3466_v1 = vld [vmem:[%s6938_s30 + $0x28] sm:$0xff] (%p6649_p10)  }
 0x2fb   : > { %3344 = vrot.lane.b32.xlu1 %v8426_v8, %s6517_s28  ;;  %v3315_v40 = vpop.permute.xlu0 %3314  ;;  %3467 = vst [vmem:[%s8846_s6 + $0x28] sm:$0xff] (%p6649_p10), %v3466_v1  }
 0x2fc   : > { %5847 = vst.msk [vmem:[%s7379_s11 + $0x1c0] sm:$0xf] %vm1801_vm0, %v3315_v40  ;;  %v3470_v40 = vld [vmem:[%s6938_s30 + $0x30] sm:$0xff] (%p6649_p10)  }
 0x2fd   : > { %v3317_v2 = vpop.permute.xlu1 %3316  ;;  %3471 = vst [vmem:[%s8846_s6 + $0x30] sm:$0xff] (%p6649_p10), %v3470_v40  }
 0x2fe   : > { %5848 = vst.msk [vmem:[%s7379_s11 + $0x1c4] sm:$0xf] %vm1801_vm0, %v3317_v2  ;;  %v3474_v2 = vld [vmem:[%s6938_s30 + $0x38] sm:$0xff] (%p6649_p10)  }
 0x2ff   : > { %v2320_v46 = vpop.permute.xlu0 %2319  ;;  %3475 = vst [vmem:[%s8846_s6 + $0x38] sm:$0xff] (%p6649_p10), %v3474_v2  }
 0x300   : > { %5529 = vst.msk [vmem:[%s7371_s12 + $0xc8] sm:$0xf] %vm1801_vm0, %v2320_v46  ;;  %v3478_v46 = vld [vmem:[%s6938_s30 + $0x40] sm:$0xff] (%p6649_p10)  }
 0x301   : > { %v2322_v4 = vpop.permute.xlu1 %2321  ;;  %3479 = vst [vmem:[%s8846_s6 + $0x40] sm:$0xff] (%p6649_p10), %v3478_v46  }
 0x302   : > { %5530 = vst.msk [vmem:[%s7371_s12 + $0xcc] sm:$0xf] %vm1801_vm0, %v2322_v4  ;;  %v3482_v4 = vld [vmem:[%s6938_s30 + $0x48] sm:$0xff] (%p6649_p10)  }
 0x303   : > { %v2449_v34 = vpop.permute.xlu0 %2448  ;;  %3483 = vst [vmem:[%s8846_s6 + $0x48] sm:$0xff] (%p6649_p10), %v3482_v4  }
 0x304   : > { %5561 = vst.msk [vmem:[%s7379_s11 + $0xc8] sm:$0xf] %vm1801_vm0, %v2449_v34  ;;  %v3486_v34 = vld [vmem:[%s6938_s30 + $0x50] sm:$0xff] (%p6649_p10)  }
 0x305   : > { %v2451_v8 = vpop.permute.xlu1 %2450  ;;  %3487 = vst [vmem:[%s8846_s6 + $0x50] sm:$0xff] (%p6649_p10), %v3486_v34  }
 0x306   : > { %5562 = vst.msk [vmem:[%s7379_s11 + $0xcc] sm:$0xf] %vm1801_vm0, %v2451_v8  ;;  %v3490_v8 = vld [vmem:[%s6938_s30 + $0x58] sm:$0xff] (%p6649_p10)  }
 0x307   : > { %v3190_v5 = vpop.permute.xlu0 %3189  ;;  %3491 = vst [vmem:[%s8846_s6 + $0x58] sm:$0xff] (%p6649_p10), %v3490_v8  }
 0x308   : > { %5817 = vst.msk [vmem:[%s7371_s12 + $0x1c8] sm:$0xf] %vm1801_vm0, %v3190_v5  ;;  %v3494_v5 = vld [vmem:[%s6938_s30 + $0x60] sm:$0xff] (%p6649_p10)  }
 0x309   : > { %v3192_v58 = vpop.permute.xlu1 %3191  ;;  %3495 = vst [vmem:[%s8846_s6 + $0x60] sm:$0xff] (%p6649_p10), %v3494_v5  }
 0x30a   : > { %5818 = vst.msk [vmem:[%s7371_s12 + $0x1cc] sm:$0xf] %vm1801_vm0, %v3192_v58  ;;  %v3498_v58 = vld [vmem:[%s6938_s30 + $0x68] sm:$0xff] (%p6649_p10)  }
 0x30b   : > { %v3319_v57 = vpop.permute.xlu0 %3318  ;;  %3499 = vst [vmem:[%s8846_s6 + $0x68] sm:$0xff] (%p6649_p10), %v3498_v58  }
 0x30c   : > { %5849 = vst.msk [vmem:[%s7379_s11 + $0x1c8] sm:$0xf] %vm1801_vm0, %v3319_v57  ;;  %v3502_v57 = vld [vmem:[%s6938_s30 + $0x70] sm:$0xff] (%p6649_p10)  }
 0x30d   : > { %v3321_v28 = vpop.permute.xlu1 %3320  ;;  %3503 = vst [vmem:[%s8846_s6 + $0x70] sm:$0xff] (%p6649_p10), %v3502_v57  }
 0x30e   : > { %5850 = vst.msk [vmem:[%s7379_s11 + $0x1cc] sm:$0xf] %vm1801_vm0, %v3321_v28  ;;  %v3506_v28 = vld [vmem:[%s6938_s30 + $0x78] sm:$0xff] (%p6649_p10)  }
 0x30f   : > { %v2324_v50 = vpop.permute.xlu0 %2323  ;;  %3507 = vst [vmem:[%s8846_s6 + $0x78] sm:$0xff] (%p6649_p10), %v3506_v28  }
 0x310   : > { %5531 = vst.msk [vmem:[%s7371_s12 + $0xd0] sm:$0xf] %vm1801_vm0, %v2324_v50  ;;  %v3510_v50 = vld [vmem:[%s6938_s30 + $0x80] sm:$0xff] (%p6649_p10)  }
 0x311   : > { %v2326_v52 = vpop.permute.xlu1 %2325  ;;  %3511 = vst [vmem:[%s8846_s6 + $0x100] sm:$0xff] (%p6649_p10), %v3510_v50  }
 0x312   : > { %5532 = vst.msk [vmem:[%s7371_s12 + $0xd4] sm:$0xf] %vm1801_vm0, %v2326_v52  ;;  %v3514_v52 = vld [vmem:[%s6938_s30 + $0x88] sm:$0xff] (%p6649_p10)  }
 0x313   : > { %v2453_v17 = vpop.permute.xlu0 %2452  ;;  %3515 = vst [vmem:[%s8846_s6 + $0x108] sm:$0xff] (%p6649_p10), %v3514_v52  }
 0x314   : > { %5563 = vst.msk [vmem:[%s7379_s11 + $0xd0] sm:$0xf] %vm1801_vm0, %v2453_v17  ;;  %v3518_v17 = vld [vmem:[%s6938_s30 + $0x90] sm:$0xff] (%p6649_p10)  }
 0x315   : > { %v2455_v16 = vpop.permute.xlu1 %2454  ;;  %3519 = vst [vmem:[%s8846_s6 + $0x110] sm:$0xff] (%p6649_p10), %v3518_v17  }
 0x316   : > { %5564 = vst.msk [vmem:[%s7379_s11 + $0xd4] sm:$0xf] %vm1801_vm0, %v2455_v16  ;;  %v3522_v16 = vld [vmem:[%s6938_s30 + $0x98] sm:$0xff] (%p6649_p10)  }
 0x317   : > { %v3194_v23 = vpop.permute.xlu0 %3193  ;;  %3523 = vst [vmem:[%s8846_s6 + $0x118] sm:$0xff] (%p6649_p10), %v3522_v16  }
 0x318   : > { %5819 = vst.msk [vmem:[%s7371_s12 + $0x1d0] sm:$0xf] %vm1801_vm0, %v3194_v23  ;;  %v3526_v23 = vld [vmem:[%s6938_s30 + $0xa0] sm:$0xff] (%p6649_p10)  }
 0x319   : > { %v3196_v43 = vpop.permute.xlu1 %3195  ;;  %3527 = vst [vmem:[%s8846_s6 + $0x120] sm:$0xff] (%p6649_p10), %v3526_v23  }
 0x31a   : > { %5820 = vst.msk [vmem:[%s7371_s12 + $0x1d4] sm:$0xf] %vm1801_vm0, %v3196_v43  ;;  %v3530_v43 = vld [vmem:[%s6938_s30 + $0xa8] sm:$0xff] (%p6649_p10)  }
 0x31b   : > { %v3323_v59 = vpop.permute.xlu0 %3322  ;;  %3531 = vst [vmem:[%s8846_s6 + $0x128] sm:$0xff] (%p6649_p10), %v3530_v43  }
 0x31c   : > { %5851 = vst.msk [vmem:[%s7379_s11 + $0x1d0] sm:$0xf] %vm1801_vm0, %v3323_v59  ;;  %v3534_v59 = vld [vmem:[%s6938_s30 + $0xb0] sm:$0xff] (%p6649_p10)  }
 0x31d   : > { %v3325_v21 = vpop.permute.xlu1 %3324  ;;  %3535 = vst [vmem:[%s8846_s6 + $0x130] sm:$0xff] (%p6649_p10), %v3534_v59  }
 0x31e   : > { %5852 = vst.msk [vmem:[%s7379_s11 + $0x1d4] sm:$0xf] %vm1801_vm0, %v3325_v21  ;;  %v3538_v21 = vld [vmem:[%s6938_s30 + $0xb8] sm:$0xff] (%p6649_p10)  }
 0x31f   : > { %v2328_v29 = vpop.permute.xlu0 %2327  ;;  %3539 = vst [vmem:[%s8846_s6 + $0x138] sm:$0xff] (%p6649_p10), %v3538_v21  }
 0x320   : > { %5533 = vst.msk [vmem:[%s7371_s12 + $0xd8] sm:$0xf] %vm1801_vm0, %v2328_v29  ;;  %v3542_v29 = vld [vmem:[%s6938_s30 + $0xc0] sm:$0xff] (%p6649_p10)  }
 0x321   : > { %v2330_v9 = vpop.permute.xlu1 %2329  ;;  %3543 = vst [vmem:[%s8846_s6 + $0x140] sm:$0xff] (%p6649_p10), %v3542_v29  }
 0x322   : > { %5534 = vst.msk [vmem:[%s7371_s12 + $0xdc] sm:$0xf] %vm1801_vm0, %v2330_v9  ;;  %v3546_v9 = vld [vmem:[%s6938_s30 + $0xc8] sm:$0xff] (%p6649_p10)  }
 0x323   : > { %v2457_v49 = vpop.permute.xlu0 %2456  ;;  %3547 = vst [vmem:[%s8846_s6 + $0x148] sm:$0xff] (%p6649_p10), %v3546_v9  }
 0x324   : > { %5565 = vst.msk [vmem:[%s7379_s11 + $0xd8] sm:$0xf] %vm1801_vm0, %v2457_v49  ;;  %v3550_v49 = vld [vmem:[%s6938_s30 + $0xd0] sm:$0xff] (%p6649_p10)  }
 0x325   : > { %v2459_v56 = vpop.permute.xlu1 %2458  ;;  %3551 = vst [vmem:[%s8846_s6 + $0x150] sm:$0xff] (%p6649_p10), %v3550_v49  }
 0x326   : > { %5566 = vst.msk [vmem:[%s7379_s11 + $0xdc] sm:$0xf] %vm1801_vm0, %v2459_v56  ;;  %v3554_v56 = vld [vmem:[%s6938_s30 + $0xd8] sm:$0xff] (%p6649_p10)  }
 0x327   : > { %v3198_v25 = vpop.permute.xlu0 %3197  ;;  %3555 = vst [vmem:[%s8846_s6 + $0x158] sm:$0xff] (%p6649_p10), %v3554_v56  }
 0x328   : > { %5821 = vst.msk [vmem:[%s7371_s12 + $0x1d8] sm:$0xf] %vm1801_vm0, %v3198_v25  ;;  %v3558_v25 = vld [vmem:[%s6938_s30 + $0xe0] sm:$0xff] (%p6649_p10)  }
 0x329   : > { %v3200_v62 = vpop.permute.xlu1 %3199  ;;  %3559 = vst [vmem:[%s8846_s6 + $0x160] sm:$0xff] (%p6649_p10), %v3558_v25  }
 0x32a   : > { %5822 = vst.msk [vmem:[%s7371_s12 + $0x1dc] sm:$0xf] %vm1801_vm0, %v3200_v62  ;;  %v3562_v62 = vld [vmem:[%s6938_s30 + $0xe8] sm:$0xff] (%p6649_p10)  }
 0x32b   : > { %v3327_v37 = vpop.permute.xlu0 %3326  ;;  %3563 = vst [vmem:[%s8846_s6 + $0x168] sm:$0xff] (%p6649_p10), %v3562_v62  }
 0x32c   : > { %5853 = vst.msk [vmem:[%s7379_s11 + $0x1d8] sm:$0xf] %vm1801_vm0, %v3327_v37  ;;  %v3566_v37 = vld [vmem:[%s6938_s30 + $0xf0] sm:$0xff] (%p6649_p10)  }
 0x32d   : > { %v3329_v26 = vpop.permute.xlu1 %3328  ;;  %3567 = vst [vmem:[%s8846_s6 + $0x170] sm:$0xff] (%p6649_p10), %v3566_v37  }
 0x32e   : > { %5854 = vst.msk [vmem:[%s7379_s11 + $0x1dc] sm:$0xf] %vm1801_vm0, %v3329_v26  ;;  %v3570_v26 = vld [vmem:[%s6938_s30 + $0xf8] sm:$0xff] (%p6649_p10)  }
 0x32f   : > { %v2332_v13 = vpop.permute.xlu0 %2331  ;;  %3571 = vst [vmem:[%s8846_s6 + $0x178] sm:$0xff] (%p6649_p10), %v3570_v26  }
 0x330   : > { %5535 = vst.msk [vmem:[%s7371_s12 + $0xe0] sm:$0xf] %vm1801_vm0, %v2332_v13  ;;  %v3574_v13 = vld [vmem:[%s6938_s30 + $0x100] sm:$0xff] (%p6649_p10)  }
 0x331   : > { %v2334_v22 = vpop.permute.xlu1 %2333  ;;  %3575 = vst [vmem:[%s8846_s6 + $0x200] sm:$0xff] (%p6649_p10), %v3574_v13  }
 0x332   : > { %5536 = vst.msk [vmem:[%s7371_s12 + $0xe4] sm:$0xf] %vm1801_vm0, %v2334_v22  ;;  %v3578_v22 = vld [vmem:[%s6938_s30 + $0x108] sm:$0xff] (%p6649_p10)  }
 0x333   : > { %v2461_v0 = vpop.permute.xlu0 %2460  ;;  %3579 = vst [vmem:[%s8846_s6 + $0x208] sm:$0xff] (%p6649_p10), %v3578_v22  }
 0x334   : > { %5567 = vst.msk [vmem:[%s7379_s11 + $0xe0] sm:$0xf] %vm1801_vm0, %v2461_v0  ;;  %v3582_v0 = vld [vmem:[%s6938_s30 + $0x110] sm:$0xff] (%p6649_p10)  }
 0x335   : > { %v2463_v24 = vpop.permute.xlu1 %2462  ;;  %3583 = vst [vmem:[%s8846_s6 + $0x210] sm:$0xff] (%p6649_p10), %v3582_v0  }
 0x336   : > { %5568 = vst.msk [vmem:[%s7379_s11 + $0xe4] sm:$0xf] %vm1801_vm0, %v2463_v24  ;;  %v3586_v24 = vld [vmem:[%s6938_s30 + $0x118] sm:$0xff] (%p6649_p10)  }
 0x337   : > { %v3202_v61 = vpop.permute.xlu0 %3201  ;;  %3587 = vst [vmem:[%s8846_s6 + $0x218] sm:$0xff] (%p6649_p10), %v3586_v24  }
 0x338   : > { %5823 = vst.msk [vmem:[%s7371_s12 + $0x1e0] sm:$0xf] %vm1801_vm0, %v3202_v61  ;;  %v3590_v61 = vld [vmem:[%s6938_s30 + $0x120] sm:$0xff] (%p6649_p10)  }
 0x339   : > { %v3204_v42 = vpop.permute.xlu1 %3203  ;;  %3591 = vst [vmem:[%s8846_s6 + $0x220] sm:$0xff] (%p6649_p10), %v3590_v61  }
 0x33a   : > { %5824 = vst.msk [vmem:[%s7371_s12 + $0x1e4] sm:$0xf] %vm1801_vm0, %v3204_v42  ;;  %v3594_v42 = vld [vmem:[%s6938_s30 + $0x128] sm:$0xff] (%p6649_p10)  }
 0x33b   : > { %v3331_v12 = vpop.permute.xlu0 %3330  ;;  %3595 = vst [vmem:[%s8846_s6 + $0x228] sm:$0xff] (%p6649_p10), %v3594_v42  }
 0x33c   : > { %5855 = vst.msk [vmem:[%s7379_s11 + $0x1e0] sm:$0xf] %vm1801_vm0, %v3331_v12  ;;  %v3598_v12 = vld [vmem:[%s6938_s30 + $0x130] sm:$0xff] (%p6649_p10)  }
 0x33d   : > { %v3333_v53 = vpop.permute.xlu1 %3332  ;;  %3599 = vst [vmem:[%s8846_s6 + $0x230] sm:$0xff] (%p6649_p10), %v3598_v12  }
 0x33e   : > { %5856 = vst.msk [vmem:[%s7379_s11 + $0x1e4] sm:$0xf] %vm1801_vm0, %v3333_v53  ;;  %v3602_v53 = vld [vmem:[%s6938_s30 + $0x138] sm:$0xff] (%p6649_p10)  }
 0x33f   : > { %v2336_v30 = vpop.permute.xlu0 %2335  ;;  %3603 = vst [vmem:[%s8846_s6 + $0x238] sm:$0xff] (%p6649_p10), %v3602_v53  }
 0x340   : > { %5537 = vst.msk [vmem:[%s7371_s12 + $0xe8] sm:$0xf] %vm1801_vm0, %v2336_v30  ;;  %v3606_v30 = vld [vmem:[%s6938_s30 + $0x140] sm:$0xff] (%p6649_p10)  }
 0x341   : > { %v2338_v18 = vpop.permute.xlu1 %2337  ;;  %3607 = vst [vmem:[%s8846_s6 + $0x240] sm:$0xff] (%p6649_p10), %v3606_v30  }
 0x342   : > { %5538 = vst.msk [vmem:[%s7371_s12 + $0xec] sm:$0xf] %vm1801_vm0, %v2338_v18  ;;  %v3610_v18 = vld [vmem:[%s6938_s30 + $0x148] sm:$0xff] (%p6649_p10)  }
 0x343   : > { %v2465_v14 = vpop.permute.xlu0 %2464  ;;  %3611 = vst [vmem:[%s8846_s6 + $0x248] sm:$0xff] (%p6649_p10), %v3610_v18  }
 0x344   : > { %5569 = vst.msk [vmem:[%s7379_s11 + $0xe8] sm:$0xf] %vm1801_vm0, %v2465_v14  ;;  %v3614_v14 = vld [vmem:[%s6938_s30 + $0x150] sm:$0xff] (%p6649_p10)  }
 0x345   : > { %v2467_v3 = vpop.permute.xlu1 %2466  ;;  %3615 = vst [vmem:[%s8846_s6 + $0x250] sm:$0xff] (%p6649_p10), %v3614_v14  }
 0x346   : > { %5570 = vst.msk [vmem:[%s7379_s11 + $0xec] sm:$0xf] %vm1801_vm0, %v2467_v3  ;;  %v3618_v3 = vld [vmem:[%s6938_s30 + $0x158] sm:$0xff] (%p6649_p10)  }
 0x347   : > { %v3206_v20 = vpop.permute.xlu0 %3205  ;;  %3619 = vst [vmem:[%s8846_s6 + $0x258] sm:$0xff] (%p6649_p10), %v3618_v3  }
 0x348   : > { %5825 = vst.msk [vmem:[%s7371_s12 + $0x1e8] sm:$0xf] %vm1801_vm0, %v3206_v20  ;;  %v3622_v20 = vld [vmem:[%s6938_s30 + $0x160] sm:$0xff] (%p6649_p10)  }
 0x349   : > { %v3208_v10 = vpop.permute.xlu1 %3207  ;;  %3623 = vst [vmem:[%s8846_s6 + $0x260] sm:$0xff] (%p6649_p10), %v3622_v20  }
 0x34a   : > { %5826 = vst.msk [vmem:[%s7371_s12 + $0x1ec] sm:$0xf] %vm1801_vm0, %v3208_v10  ;;  %v3626_v10 = vld [vmem:[%s6938_s30 + $0x168] sm:$0xff] (%p6649_p10)  }
 0x34b   : > { %v3335_v54 = vpop.permute.xlu0 %3334  ;;  %3627 = vst [vmem:[%s8846_s6 + $0x268] sm:$0xff] (%p6649_p10), %v3626_v10  }
 0x34c   : > { %5857 = vst.msk [vmem:[%s7379_s11 + $0x1e8] sm:$0xf] %vm1801_vm0, %v3335_v54  ;;  %v3630_v54 = vld [vmem:[%s6938_s30 + $0x170] sm:$0xff] (%p6649_p10)  }
 0x34d   : > { %v3337_v55 = vpop.permute.xlu1 %3336  ;;  %3631 = vst [vmem:[%s8846_s6 + $0x270] sm:$0xff] (%p6649_p10), %v3630_v54  }
 0x34e   : > { %5858 = vst.msk [vmem:[%s7379_s11 + $0x1ec] sm:$0xf] %vm1801_vm0, %v3337_v55  ;;  %v3634_v55 = vld [vmem:[%s6938_s30 + $0x178] sm:$0xff] (%p6649_p10)  }
 0x34f   : > { %v2340_v19 = vpop.permute.xlu0 %2339  ;;  %3635 = vst [vmem:[%s8846_s6 + $0x278] sm:$0xff] (%p6649_p10), %v3634_v55  }
 0x350   : > { %5539 = vst.msk [vmem:[%s7371_s12 + $0xf0] sm:$0xf] %vm1801_vm0, %v2340_v19  ;;  %v3638_v19 = vld [vmem:[%s6938_s30 + $0x180] sm:$0xff] (%p6649_p10)  }
 0x351   : > { %v2342_v39 = vpop.permute.xlu1 %2341  ;;  %3639 = vst [vmem:[%s8846_s6 + $0x300] sm:$0xff] (%p6649_p10), %v3638_v19  }
 0x352   : > { %5540 = vst.msk [vmem:[%s7371_s12 + $0xf4] sm:$0xf] %vm1801_vm0, %v2342_v39  ;;  %v3642_v39 = vld [vmem:[%s6938_s30 + $0x188] sm:$0xff] (%p6649_p10)  }
 0x353   : > { %v2469_v31 = vpop.permute.xlu0 %2468  ;;  %3643 = vst [vmem:[%s8846_s6 + $0x308] sm:$0xff] (%p6649_p10), %v3642_v39  }
 0x354   : > { %5571 = vst.msk [vmem:[%s7379_s11 + $0xf0] sm:$0xf] %vm1801_vm0, %v2469_v31  ;;  %v3646_v31 = vld [vmem:[%s6938_s30 + $0x190] sm:$0xff] (%p6649_p10)  }
 0x355   : > { %v2471_v32 = vpop.permute.xlu1 %2470  ;;  %3647 = vst [vmem:[%s8846_s6 + $0x310] sm:$0xff] (%p6649_p10), %v3646_v31  }
 0x356   : > { %5572 = vst.msk [vmem:[%s7379_s11 + $0xf4] sm:$0xf] %vm1801_vm0, %v2471_v32  ;;  %v3650_v32 = vld [vmem:[%s6938_s30 + $0x198] sm:$0xff] (%p6649_p10)  }
 0x357   : > { %v3210_v48 = vpop.permute.xlu0 %3209  ;;  %3651 = vst [vmem:[%s8846_s6 + $0x318] sm:$0xff] (%p6649_p10), %v3650_v32  }
 0x358   : > { %5827 = vst.msk [vmem:[%s7371_s12 + $0x1f0] sm:$0xf] %vm1801_vm0, %v3210_v48  ;;  %v3654_v48 = vld [vmem:[%s6938_s30 + $0x1a0] sm:$0xff] (%p6649_p10)  }
 0x359   : > { %v3212_v6 = vpop.permute.xlu1 %3211  ;;  %3655 = vst [vmem:[%s8846_s6 + $0x320] sm:$0xff] (%p6649_p10), %v3654_v48  }
 0x35a   : > { %5828 = vst.msk [vmem:[%s7371_s12 + $0x1f4] sm:$0xf] %vm1801_vm0, %v3212_v6  ;;  %v3658_v6 = vld [vmem:[%s6938_s30 + $0x1a8] sm:$0xff] (%p6649_p10)  }
 0x35b   : > { %v3339_v36 = vpop.permute.xlu0 %3338  ;;  %3659 = vst [vmem:[%s8846_s6 + $0x328] sm:$0xff] (%p6649_p10), %v3658_v6  }
 0x35c   : > { %5859 = vst.msk [vmem:[%s7379_s11 + $0x1f0] sm:$0xf] %vm1801_vm0, %v3339_v36  ;;  %v3662_v36 = vld [vmem:[%s6938_s30 + $0x1b0] sm:$0xff] (%p6649_p10)  }
 0x35d   : > { %v3341_v60 = vpop.permute.xlu1 %3340  ;;  %3663 = vst [vmem:[%s8846_s6 + $0x330] sm:$0xff] (%p6649_p10), %v3662_v36  }
 0x35e   : > { %5860 = vst.msk [vmem:[%s7379_s11 + $0x1f4] sm:$0xf] %vm1801_vm0, %v3341_v60  ;;  %v3666_v60 = vld [vmem:[%s6938_s30 + $0x1b8] sm:$0xff] (%p6649_p10)  }
 0x35f   : > { %v2344_v7 = vpop.permute.xlu0 %2343  ;;  %3667 = vst [vmem:[%s8846_s6 + $0x338] sm:$0xff] (%p6649_p10), %v3666_v60  }
 0x360   : > { %5541 = vst.msk [vmem:[%s7371_s12 + $0xf8] sm:$0xf] %vm1801_vm0, %v2344_v7  ;;  %v3670_v7 = vld [vmem:[%s6938_s30 + $0x1c0] sm:$0xff] (%p6649_p10)  }
 0x361   : > { %v2346_v51 = vpop.permute.xlu1 %2345  ;;  %3671 = vst [vmem:[%s8846_s6 + $0x340] sm:$0xff] (%p6649_p10), %v3670_v7  }
 0x362   : > { %5542 = vst.msk [vmem:[%s7371_s12 + $0xfc] sm:$0xf] %vm1801_vm0, %v2346_v51  ;;  %v3674_v51 = vld [vmem:[%s6938_s30 + $0x1c8] sm:$0xff] (%p6649_p10)  }
 0x363   : > { %v2473_v44 = vpop.permute.xlu0 %2472  ;;  %3675 = vst [vmem:[%s8846_s6 + $0x348] sm:$0xff] (%p6649_p10), %v3674_v51  }
 0x364   : > { %5573 = vst.msk [vmem:[%s7379_s11 + $0xf8] sm:$0xf] %vm1801_vm0, %v2473_v44  ;;  %v3678_v44 = vld [vmem:[%s6938_s30 + $0x1d0] sm:$0xff] (%p6649_p10)  }
 0x365   : > { %v2475_v27 = vpop.permute.xlu1 %2474  ;;  %3679 = vst [vmem:[%s8846_s6 + $0x350] sm:$0xff] (%p6649_p10), %v3678_v44  }
 0x366   : > { %5574 = vst.msk [vmem:[%s7379_s11 + $0xfc] sm:$0xf] %vm1801_vm0, %v2475_v27  ;;  %v3682_v27 = vld [vmem:[%s6938_s30 + $0x1d8] sm:$0xff] (%p6649_p10)  }
 0x367   : > { %v3214_v38 = vpop.permute.xlu0 %3213  ;;  %3683 = vst [vmem:[%s8846_s6 + $0x358] sm:$0xff] (%p6649_p10), %v3682_v27  }
 0x368   : > { %5829 = vst.msk [vmem:[%s7371_s12 + $0x1f8] sm:$0xf] %vm1801_vm0, %v3214_v38  ;;  %3425 = sbr.rel (!%p6649_p10) target bundleno = 880 (0x370), region = 44  ;;  %v3686_v38 = vld [vmem:[%s6938_s30 + $0x1e0] sm:$0xff] (%p6649_p10)  }
 0x369   : > { %v3216_v47 = vpop.permute.xlu1 %3215  ;;  %3687 = vst [vmem:[%s8846_s6 + $0x360] sm:$0xff] (%p6649_p10), %v3686_v38  }
 0x36a   : > { %5830 = vst.msk [vmem:[%s7371_s12 + $0x1fc] sm:$0xf] %vm1801_vm0, %v3216_v47  ;;  %v3690_v47 = vld [vmem:[%s6938_s30 + $0x1e8] sm:$0xff] (%p6649_p10)  }
 0x36b   : > { %v3343_v11 = vpop.permute.xlu0 %3342  ;;  %3691 = vst [vmem:[%s8846_s6 + $0x368] sm:$0xff] (%p6649_p10), %v3690_v47  }
 0x36c   : > { %5861 = vst.msk [vmem:[%s7379_s11 + $0x1f8] sm:$0xf] %vm1801_vm0, %v3343_v11  ;;  %v3694_v11 = vld [vmem:[%s6938_s30 + $0x1f0] sm:$0xff] (%p6649_p10)  }
 0x36d   : > { %v3345_v35 = vpop.permute.xlu1 %3344  ;;  %3695 = vst [vmem:[%s8846_s6 + $0x370] sm:$0xff] (%p6649_p10), %v3694_v11  }
 0x36e   : > { %5862 = vst.msk [vmem:[%s7379_s11 + $0x1fc] sm:$0xf] %vm1801_vm0, %v3345_v35  ;;  %v3698_v35 = vld [vmem:[%s6938_s30 + $0x1f8] sm:$0xff] (%p6649_p10)  }
 0x36f   : > { %3699 = vst [vmem:[%s8846_s6 + $0x378] sm:$0xff] %v3698_v35  }
 0x370 PF: > { %3980 = sbr.rel (!%p6649_p10) target bundleno = 920 (0x398), region = 85  ;;  %s5869_s14 = sshll.u32 (%p6649_p10), %s6493_s21, 5  ;;  %v4001_v15 = vld [vmem:[%s7371_s12] sm:$0xff] (%p6649_p10)   ;;  %v4005_v45 = vld [vmem:[%s7371_s12 + $0x8] sm:$0xff] (%p6649_p10)   ;;  %v4009_v33 = vld [vmem:[%s7371_s12 + $0x10] sm:$0xff] (%p6649_p10)  }
 0x371   : > { %s5870_s4 = sshll.u32 (%p6649_p10), %s6497_s22, 8  ;;  %v4013_v41 = vld [vmem:[%s7371_s12 + $0x18] sm:$0xff] (%p6649_p10)   ;;  %v4017_v63 = vld [vmem:[%s7371_s12 + $0x20] sm:$0xff] (%p6649_p10)   ;;  %v4021_v1 = vld [vmem:[%s7371_s12 + $0x28] sm:$0xff] (%p6649_p10)   ;;  %s9382_s29 = sld [smem:[#allocation35_spill]] (%p6649_p10) }
 0x372   : > { %s3983_s5 = sadd.s32 (%p6649_p10), %s5870_s4, %s5869_s14  ;;  %v4025_v40 = vld [vmem:[%s7371_s12 + $0x30] sm:$0xff] (%p6649_p10)   ;;  %v4029_v2 = vld [vmem:[%s7371_s12 + $0x38] sm:$0xff] (%p6649_p10)   ;;  %v4033_v46 = vld [vmem:[%s7371_s12 + $0x40] sm:$0xff] (%p6649_p10)  }
 0x373   : > { %s5871_s9 = sshll.u32 (%p6649_p10), %s3983_s5, 2  ;;  %v4037_v4 = vld [vmem:[%s7371_s12 + $0x48] sm:$0xff] (%p6649_p10)   ;;  %v4041_v34 = vld [vmem:[%s7371_s12 + $0x50] sm:$0xff] (%p6649_p10)   ;;  %v4045_v8 = vld [vmem:[%s7371_s12 + $0x58] sm:$0xff] (%p6649_p10)  }
 0x374   : > { %v4049_v5 = vld [vmem:[%s7371_s12 + $0x60] sm:$0xff] (%p6649_p10)   ;;  %v4053_v58 = vld [vmem:[%s7371_s12 + $0x68] sm:$0xff] (%p6649_p10)   ;;  %v4057_v57 = vld [vmem:[%s7371_s12 + $0x70] sm:$0xff] (%p6649_p10)  }
 0x375   : > { %v4061_v28 = vld [vmem:[%s7371_s12 + $0x78] sm:$0xff] (%p6649_p10)   ;;  %v4065_v50 = vld [vmem:[%s7371_s12 + $0x80] sm:$0xff] (%p6649_p10)   ;;  %v4069_v52 = vld [vmem:[%s7371_s12 + $0x88] sm:$0xff] (%p6649_p10)  }
 0x376   : > { %v4073_v17 = vld [vmem:[%s7371_s12 + $0x90] sm:$0xff] (%p6649_p10)   ;;  %v4077_v16 = vld [vmem:[%s7371_s12 + $0x98] sm:$0xff] (%p6649_p10)   ;;  %v4081_v23 = vld [vmem:[%s7371_s12 + $0xa0] sm:$0xff] (%p6649_p10)  }
 0x377   : > { %s8983_s30 = scalar_lea.vmem %s9382_s29, %s5871_s9  ;;  %v4085_v43 = vld [vmem:[%s7371_s12 + $0xa8] sm:$0xff]   ;;  %v4089_v59 = vld [vmem:[%s7371_s12 + $0xb0] sm:$0xff]   ;;  %v4093_v21 = vld [vmem:[%s7371_s12 + $0xb8] sm:$0xff]  }
 0x378   : > { %4002 = vst [vmem:[%s8983_s30] sm:$0xff] %v4001_v15   ;;  %4006 = vst [vmem:[%s8983_s30 + $0x8] sm:$0xff] %v4005_v45   ;;  %v4097_v29 = vld [vmem:[%s7371_s12 + $0xc0] sm:$0xff]   ;;  %v4101_v9 = vld [vmem:[%s7371_s12 + $0xc8] sm:$0xff]  }
 0x379   : > { %4010 = vst [vmem:[%s8983_s30 + $0x10] sm:$0xff] %v4009_v33   ;;  %4014 = vst [vmem:[%s8983_s30 + $0x18] sm:$0xff] %v4013_v41   ;;  %v4105_v49 = vld [vmem:[%s7371_s12 + $0xd0] sm:$0xff]   ;;  %v4109_v56 = vld [vmem:[%s7371_s12 + $0xd8] sm:$0xff]  }
 0x37a   : > { %4018 = vst [vmem:[%s8983_s30 + $0x20] sm:$0xff] %v4017_v63   ;;  %4022 = vst [vmem:[%s8983_s30 + $0x28] sm:$0xff] %v4021_v1   ;;  %v4113_v25 = vld [vmem:[%s7371_s12 + $0xe0] sm:$0xff]   ;;  %v4117_v62 = vld [vmem:[%s7371_s12 + $0xe8] sm:$0xff]  }
 0x37b   : > { %4026 = vst [vmem:[%s8983_s30 + $0x30] sm:$0xff] %v4025_v40   ;;  %4030 = vst [vmem:[%s8983_s30 + $0x38] sm:$0xff] %v4029_v2   ;;  %v4121_v37 = vld [vmem:[%s7371_s12 + $0xf0] sm:$0xff]   ;;  %v4125_v26 = vld [vmem:[%s7371_s12 + $0xf8] sm:$0xff]  }
 0x37c   : > { %4034 = vst [vmem:[%s8983_s30 + $0x40] sm:$0xff] %v4033_v46   ;;  %4038 = vst [vmem:[%s8983_s30 + $0x48] sm:$0xff] %v4037_v4   ;;  %v4129_v13 = vld [vmem:[%s7371_s12 + $0x100] sm:$0xff]   ;;  %v4133_v22 = vld [vmem:[%s7371_s12 + $0x108] sm:$0xff]  }
 0x37d   : > { %4042 = vst [vmem:[%s8983_s30 + $0x50] sm:$0xff] %v4041_v34   ;;  %4046 = vst [vmem:[%s8983_s30 + $0x58] sm:$0xff] %v4045_v8   ;;  %v4137_v0 = vld [vmem:[%s7371_s12 + $0x110] sm:$0xff]   ;;  %v4141_v24 = vld [vmem:[%s7371_s12 + $0x118] sm:$0xff]  }
 0x37e   : > { %4050 = vst [vmem:[%s8983_s30 + $0x60] sm:$0xff] %v4049_v5   ;;  %4054 = vst [vmem:[%s8983_s30 + $0x68] sm:$0xff] %v4053_v58   ;;  %v4145_v61 = vld [vmem:[%s7371_s12 + $0x120] sm:$0xff]   ;;  %v4149_v42 = vld [vmem:[%s7371_s12 + $0x128] sm:$0xff]  }
 0x37f   : > { %4058 = vst [vmem:[%s8983_s30 + $0x70] sm:$0xff] %v4057_v57   ;;  %4062 = vst [vmem:[%s8983_s30 + $0x78] sm:$0xff] %v4061_v28   ;;  %v4153_v12 = vld [vmem:[%s7371_s12 + $0x130] sm:$0xff]   ;;  %v4157_v53 = vld [vmem:[%s7371_s12 + $0x138] sm:$0xff]  }
 0x380   : > { %4066 = vst [vmem:[%s8983_s30 + $0x100] sm:$0xff] %v4065_v50   ;;  %4070 = vst [vmem:[%s8983_s30 + $0x108] sm:$0xff] %v4069_v52   ;;  %v4161_v30 = vld [vmem:[%s7371_s12 + $0x140] sm:$0xff]   ;;  %v4165_v18 = vld [vmem:[%s7371_s12 + $0x148] sm:$0xff]  }
 0x381   : > { %4074 = vst [vmem:[%s8983_s30 + $0x110] sm:$0xff] %v4073_v17   ;;  %4078 = vst [vmem:[%s8983_s30 + $0x118] sm:$0xff] %v4077_v16   ;;  %v4169_v14 = vld [vmem:[%s7371_s12 + $0x150] sm:$0xff]   ;;  %v4173_v3 = vld [vmem:[%s7371_s12 + $0x158] sm:$0xff]  }
 0x382   : > { %4082 = vst [vmem:[%s8983_s30 + $0x120] sm:$0xff] %v4081_v23   ;;  %4086 = vst [vmem:[%s8983_s30 + $0x128] sm:$0xff] %v4085_v43   ;;  %v4177_v20 = vld [vmem:[%s7371_s12 + $0x160] sm:$0xff]   ;;  %v4181_v10 = vld [vmem:[%s7371_s12 + $0x168] sm:$0xff]  }
 0x383   : > { %4090 = vst [vmem:[%s8983_s30 + $0x130] sm:$0xff] %v4089_v59   ;;  %4094 = vst [vmem:[%s8983_s30 + $0x138] sm:$0xff] %v4093_v21   ;;  %v4185_v54 = vld [vmem:[%s7371_s12 + $0x170] sm:$0xff]   ;;  %v4189_v55 = vld [vmem:[%s7371_s12 + $0x178] sm:$0xff]  }
 0x384   : > { %4098 = vst [vmem:[%s8983_s30 + $0x140] sm:$0xff] %v4097_v29   ;;  %4102 = vst [vmem:[%s8983_s30 + $0x148] sm:$0xff] %v4101_v9   ;;  %v4193_v19 = vld [vmem:[%s7371_s12 + $0x180] sm:$0xff]   ;;  %v4197_v39 = vld [vmem:[%s7371_s12 + $0x188] sm:$0xff]  }
 0x385   : > { %4106 = vst [vmem:[%s8983_s30 + $0x150] sm:$0xff] %v4105_v49   ;;  %4110 = vst [vmem:[%s8983_s30 + $0x158] sm:$0xff] %v4109_v56   ;;  %v4201_v31 = vld [vmem:[%s7371_s12 + $0x190] sm:$0xff]   ;;  %v4205_v32 = vld [vmem:[%s7371_s12 + $0x198] sm:$0xff]  }
 0x386   : > { %4114 = vst [vmem:[%s8983_s30 + $0x160] sm:$0xff] %v4113_v25   ;;  %4118 = vst [vmem:[%s8983_s30 + $0x168] sm:$0xff] %v4117_v62   ;;  %v4209_v48 = vld [vmem:[%s7371_s12 + $0x1a0] sm:$0xff]   ;;  %v4213_v6 = vld [vmem:[%s7371_s12 + $0x1a8] sm:$0xff]  }
 0x387   : > { %4122 = vst [vmem:[%s8983_s30 + $0x170] sm:$0xff] %v4121_v37   ;;  %4126 = vst [vmem:[%s8983_s30 + $0x178] sm:$0xff] %v4125_v26   ;;  %v4217_v36 = vld [vmem:[%s7371_s12 + $0x1b0] sm:$0xff]   ;;  %v4221_v60 = vld [vmem:[%s7371_s12 + $0x1b8] sm:$0xff]  }
 0x388   : > { %4130 = vst [vmem:[%s8983_s30 + $0x200] sm:$0xff] %v4129_v13   ;;  %4134 = vst [vmem:[%s8983_s30 + $0x208] sm:$0xff] %v4133_v22   ;;  %v4225_v7 = vld [vmem:[%s7371_s12 + $0x1c0] sm:$0xff]   ;;  %v4229_v51 = vld [vmem:[%s7371_s12 + $0x1c8] sm:$0xff]  }
 0x389   : > { %4138 = vst [vmem:[%s8983_s30 + $0x210] sm:$0xff] %v4137_v0   ;;  %4142 = vst [vmem:[%s8983_s30 + $0x218] sm:$0xff] %v4141_v24   ;;  %v4233_v44 = vld [vmem:[%s7371_s12 + $0x1d0] sm:$0xff]   ;;  %v4237_v27 = vld [vmem:[%s7371_s12 + $0x1d8] sm:$0xff]  }
 0x38a   : > { %4146 = vst [vmem:[%s8983_s30 + $0x220] sm:$0xff] %v4145_v61   ;;  %4150 = vst [vmem:[%s8983_s30 + $0x228] sm:$0xff] %v4149_v42   ;;  %v4241_v38 = vld [vmem:[%s7371_s12 + $0x1e0] sm:$0xff]   ;;  %v4245_v47 = vld [vmem:[%s7371_s12 + $0x1e8] sm:$0xff]  }
 0x38b   : > { %4154 = vst [vmem:[%s8983_s30 + $0x230] sm:$0xff] %v4153_v12   ;;  %4158 = vst [vmem:[%s8983_s30 + $0x238] sm:$0xff] %v4157_v53   ;;  %v4249_v11 = vld [vmem:[%s7371_s12 + $0x1f0] sm:$0xff]   ;;  %v4253_v35 = vld [vmem:[%s7371_s12 + $0x1f8] sm:$0xff]  }
 0x38c   : > { %4162 = vst [vmem:[%s8983_s30 + $0x240] sm:$0xff] %v4161_v30   ;;  %4166 = vst [vmem:[%s8983_s30 + $0x248] sm:$0xff] %v4165_v18  }
 0x38d   : > { %4170 = vst [vmem:[%s8983_s30 + $0x250] sm:$0xff] %v4169_v14   ;;  %4174 = vst [vmem:[%s8983_s30 + $0x258] sm:$0xff] %v4173_v3  }
 0x38e   : > { %4178 = vst [vmem:[%s8983_s30 + $0x260] sm:$0xff] %v4177_v20   ;;  %4182 = vst [vmem:[%s8983_s30 + $0x268] sm:$0xff] %v4181_v10  }
 0x38f   : > { %4186 = vst [vmem:[%s8983_s30 + $0x270] sm:$0xff] %v4185_v54   ;;  %4190 = vst [vmem:[%s8983_s30 + $0x278] sm:$0xff] %v4189_v55  }
 0x390   : > { %4194 = vst [vmem:[%s8983_s30 + $0x300] sm:$0xff] %v4193_v19   ;;  %4198 = vst [vmem:[%s8983_s30 + $0x308] sm:$0xff] %v4197_v39  }
 0x391   : > { %4202 = vst [vmem:[%s8983_s30 + $0x310] sm:$0xff] %v4201_v31   ;;  %4206 = vst [vmem:[%s8983_s30 + $0x318] sm:$0xff] %v4205_v32  }
 0x392   : > { %4210 = vst [vmem:[%s8983_s30 + $0x320] sm:$0xff] %v4209_v48   ;;  %4214 = vst [vmem:[%s8983_s30 + $0x328] sm:$0xff] %v4213_v6  }
 0x393   : > { %4218 = vst [vmem:[%s8983_s30 + $0x330] sm:$0xff] %v4217_v36   ;;  %4222 = vst [vmem:[%s8983_s30 + $0x338] sm:$0xff] %v4221_v60  }
 0x394   : > { %4226 = vst [vmem:[%s8983_s30 + $0x340] sm:$0xff] %v4225_v7   ;;  %4230 = vst [vmem:[%s8983_s30 + $0x348] sm:$0xff] %v4229_v51  }
 0x395   : > { %4234 = vst [vmem:[%s8983_s30 + $0x350] sm:$0xff] %v4233_v44   ;;  %4238 = vst [vmem:[%s8983_s30 + $0x358] sm:$0xff] %v4237_v27  }
 0x396   : > { %4242 = vst [vmem:[%s8983_s30 + $0x360] sm:$0xff] %v4241_v38   ;;  %4246 = vst [vmem:[%s8983_s30 + $0x368] sm:$0xff] %v4245_v47  }
 0x397   : > { %4250 = vst [vmem:[%s8983_s30 + $0x370] sm:$0xff] %v4249_v11   ;;  %4254 = vst [vmem:[%s8983_s30 + $0x378] sm:$0xff] %v4253_v35  }
 0x398 PF: > { %4535 = sbr.rel (!%p6649_p10) target bundleno = 960 (0x3c0), region = 126  ;;  %s5872_s28 = sshll.u32 (%p6649_p10), %s6493_s21, 5  ;;  %v4556_v15 = vld [vmem:[%s7379_s11] sm:$0xff] (%p6649_p10)   ;;  %v4560_v45 = vld [vmem:[%s7379_s11 + $0x8] sm:$0xff] (%p6649_p10)   ;;  %v4564_v33 = vld [vmem:[%s7379_s11 + $0x10] sm:$0xff] (%p6649_p10)  }
 0x399   : > { %s5873_s12 = sshll.u32 (%p6649_p10), %s6497_s22, 8  ;;  %v4568_v41 = vld [vmem:[%s7379_s11 + $0x18] sm:$0xff] (%p6649_p10)   ;;  %v4572_v63 = vld [vmem:[%s7379_s11 + $0x20] sm:$0xff] (%p6649_p10)   ;;  %v4576_v1 = vld [vmem:[%s7379_s11 + $0x28] sm:$0xff] (%p6649_p10)   ;;  %s9383_s16 = sld [smem:[#allocation36_spill]] (%p6649_p10) }
 0x39a   : > { %s4538_s7 = sadd.s32 (%p6649_p10), %s5873_s12, %s5872_s28  ;;  %v4580_v40 = vld [vmem:[%s7379_s11 + $0x30] sm:$0xff] (%p6649_p10)   ;;  %v4584_v2 = vld [vmem:[%s7379_s11 + $0x38] sm:$0xff] (%p6649_p10)   ;;  %v4588_v46 = vld [vmem:[%s7379_s11 + $0x40] sm:$0xff] (%p6649_p10)  }
 0x39b   : > { %s5874_s8 = sshll.u32 (%p6649_p10), %s4538_s7, 2  ;;  %v4592_v4 = vld [vmem:[%s7379_s11 + $0x48] sm:$0xff] (%p6649_p10)   ;;  %v4596_v34 = vld [vmem:[%s7379_s11 + $0x50] sm:$0xff] (%p6649_p10)   ;;  %v4600_v8 = vld [vmem:[%s7379_s11 + $0x58] sm:$0xff] (%p6649_p10)  }
 0x39c   : > { %v4604_v5 = vld [vmem:[%s7379_s11 + $0x60] sm:$0xff] (%p6649_p10)   ;;  %v4608_v58 = vld [vmem:[%s7379_s11 + $0x68] sm:$0xff] (%p6649_p10)   ;;  %v4612_v57 = vld [vmem:[%s7379_s11 + $0x70] sm:$0xff] (%p6649_p10)  }
 0x39d   : > { %v4616_v28 = vld [vmem:[%s7379_s11 + $0x78] sm:$0xff] (%p6649_p10)   ;;  %v4620_v50 = vld [vmem:[%s7379_s11 + $0x80] sm:$0xff] (%p6649_p10)   ;;  %v4624_v52 = vld [vmem:[%s7379_s11 + $0x88] sm:$0xff] (%p6649_p10)  }
 0x39e   : > { %v4628_v17 = vld [vmem:[%s7379_s11 + $0x90] sm:$0xff] (%p6649_p10)   ;;  %v4632_v16 = vld [vmem:[%s7379_s11 + $0x98] sm:$0xff] (%p6649_p10)   ;;  %v4636_v23 = vld [vmem:[%s7379_s11 + $0xa0] sm:$0xff] (%p6649_p10)  }
 0x39f   : > { %s9120_s17 = scalar_lea.vmem %s9383_s16, %s5874_s8  ;;  %v4640_v43 = vld [vmem:[%s7379_s11 + $0xa8] sm:$0xff]   ;;  %v4644_v59 = vld [vmem:[%s7379_s11 + $0xb0] sm:$0xff]   ;;  %v4648_v21 = vld [vmem:[%s7379_s11 + $0xb8] sm:$0xff]  }
 0x3a0   : > { %4557 = vst [vmem:[%s9120_s17] sm:$0xff] %v4556_v15   ;;  %4561 = vst [vmem:[%s9120_s17 + $0x8] sm:$0xff] %v4560_v45   ;;  %v4652_v29 = vld [vmem:[%s7379_s11 + $0xc0] sm:$0xff]   ;;  %v4656_v9 = vld [vmem:[%s7379_s11 + $0xc8] sm:$0xff]  }
 0x3a1   : > { %4565 = vst [vmem:[%s9120_s17 + $0x10] sm:$0xff] %v4564_v33   ;;  %4569 = vst [vmem:[%s9120_s17 + $0x18] sm:$0xff] %v4568_v41   ;;  %v4660_v49 = vld [vmem:[%s7379_s11 + $0xd0] sm:$0xff]   ;;  %v4664_v56 = vld [vmem:[%s7379_s11 + $0xd8] sm:$0xff]  }
 0x3a2   : > { %4573 = vst [vmem:[%s9120_s17 + $0x20] sm:$0xff] %v4572_v63   ;;  %4577 = vst [vmem:[%s9120_s17 + $0x28] sm:$0xff] %v4576_v1   ;;  %v4668_v25 = vld [vmem:[%s7379_s11 + $0xe0] sm:$0xff]   ;;  %v4672_v62 = vld [vmem:[%s7379_s11 + $0xe8] sm:$0xff]  }
 0x3a3   : > { %4581 = vst [vmem:[%s9120_s17 + $0x30] sm:$0xff] %v4580_v40   ;;  %4585 = vst [vmem:[%s9120_s17 + $0x38] sm:$0xff] %v4584_v2   ;;  %v4676_v37 = vld [vmem:[%s7379_s11 + $0xf0] sm:$0xff]   ;;  %v4680_v26 = vld [vmem:[%s7379_s11 + $0xf8] sm:$0xff]  }
 0x3a4   : > { %4589 = vst [vmem:[%s9120_s17 + $0x40] sm:$0xff] %v4588_v46   ;;  %4593 = vst [vmem:[%s9120_s17 + $0x48] sm:$0xff] %v4592_v4   ;;  %v4684_v13 = vld [vmem:[%s7379_s11 + $0x100] sm:$0xff]   ;;  %v4688_v22 = vld [vmem:[%s7379_s11 + $0x108] sm:$0xff]  }
 0x3a5   : > { %4597 = vst [vmem:[%s9120_s17 + $0x50] sm:$0xff] %v4596_v34   ;;  %4601 = vst [vmem:[%s9120_s17 + $0x58] sm:$0xff] %v4600_v8   ;;  %v4692_v0 = vld [vmem:[%s7379_s11 + $0x110] sm:$0xff]   ;;  %v4696_v24 = vld [vmem:[%s7379_s11 + $0x118] sm:$0xff]  }
 0x3a6   : > { %4605 = vst [vmem:[%s9120_s17 + $0x60] sm:$0xff] %v4604_v5   ;;  %4609 = vst [vmem:[%s9120_s17 + $0x68] sm:$0xff] %v4608_v58   ;;  %v4700_v61 = vld [vmem:[%s7379_s11 + $0x120] sm:$0xff]   ;;  %v4704_v42 = vld [vmem:[%s7379_s11 + $0x128] sm:$0xff]  }
 0x3a7   : > { %4613 = vst [vmem:[%s9120_s17 + $0x70] sm:$0xff] %v4612_v57   ;;  %4617 = vst [vmem:[%s9120_s17 + $0x78] sm:$0xff] %v4616_v28   ;;  %v4708_v12 = vld [vmem:[%s7379_s11 + $0x130] sm:$0xff]   ;;  %v4712_v53 = vld [vmem:[%s7379_s11 + $0x138] sm:$0xff]  }
 0x3a8   : > { %4621 = vst [vmem:[%s9120_s17 + $0x100] sm:$0xff] %v4620_v50   ;;  %4625 = vst [vmem:[%s9120_s17 + $0x108] sm:$0xff] %v4624_v52   ;;  %v4716_v30 = vld [vmem:[%s7379_s11 + $0x140] sm:$0xff]   ;;  %v4720_v18 = vld [vmem:[%s7379_s11 + $0x148] sm:$0xff]  }
 0x3a9   : > { %4629 = vst [vmem:[%s9120_s17 + $0x110] sm:$0xff] %v4628_v17   ;;  %4633 = vst [vmem:[%s9120_s17 + $0x118] sm:$0xff] %v4632_v16   ;;  %v4724_v14 = vld [vmem:[%s7379_s11 + $0x150] sm:$0xff]   ;;  %v4728_v3 = vld [vmem:[%s7379_s11 + $0x158] sm:$0xff]  }
 0x3aa   : > { %4637 = vst [vmem:[%s9120_s17 + $0x120] sm:$0xff] %v4636_v23   ;;  %4641 = vst [vmem:[%s9120_s17 + $0x128] sm:$0xff] %v4640_v43   ;;  %v4732_v20 = vld [vmem:[%s7379_s11 + $0x160] sm:$0xff]   ;;  %v4736_v10 = vld [vmem:[%s7379_s11 + $0x168] sm:$0xff]  }
 0x3ab   : > { %4645 = vst [vmem:[%s9120_s17 + $0x130] sm:$0xff] %v4644_v59   ;;  %4649 = vst [vmem:[%s9120_s17 + $0x138] sm:$0xff] %v4648_v21   ;;  %v4740_v54 = vld [vmem:[%s7379_s11 + $0x170] sm:$0xff]   ;;  %v4744_v55 = vld [vmem:[%s7379_s11 + $0x178] sm:$0xff]  }
 0x3ac   : > { %4653 = vst [vmem:[%s9120_s17 + $0x140] sm:$0xff] %v4652_v29   ;;  %4657 = vst [vmem:[%s9120_s17 + $0x148] sm:$0xff] %v4656_v9   ;;  %v4748_v19 = vld [vmem:[%s7379_s11 + $0x180] sm:$0xff]   ;;  %v4752_v39 = vld [vmem:[%s7379_s11 + $0x188] sm:$0xff]  }
 0x3ad   : > { %4661 = vst [vmem:[%s9120_s17 + $0x150] sm:$0xff] %v4660_v49   ;;  %4665 = vst [vmem:[%s9120_s17 + $0x158] sm:$0xff] %v4664_v56   ;;  %v4756_v31 = vld [vmem:[%s7379_s11 + $0x190] sm:$0xff]   ;;  %v4760_v32 = vld [vmem:[%s7379_s11 + $0x198] sm:$0xff]  }
 0x3ae   : > { %4669 = vst [vmem:[%s9120_s17 + $0x160] sm:$0xff] %v4668_v25   ;;  %4673 = vst [vmem:[%s9120_s17 + $0x168] sm:$0xff] %v4672_v62   ;;  %v4764_v48 = vld [vmem:[%s7379_s11 + $0x1a0] sm:$0xff]   ;;  %v4768_v6 = vld [vmem:[%s7379_s11 + $0x1a8] sm:$0xff]  }
 0x3af   : > { %4677 = vst [vmem:[%s9120_s17 + $0x170] sm:$0xff] %v4676_v37   ;;  %4681 = vst [vmem:[%s9120_s17 + $0x178] sm:$0xff] %v4680_v26   ;;  %v4772_v36 = vld [vmem:[%s7379_s11 + $0x1b0] sm:$0xff]   ;;  %v4776_v60 = vld [vmem:[%s7379_s11 + $0x1b8] sm:$0xff]  }
 0x3b0   : > { %4685 = vst [vmem:[%s9120_s17 + $0x200] sm:$0xff] %v4684_v13   ;;  %4689 = vst [vmem:[%s9120_s17 + $0x208] sm:$0xff] %v4688_v22   ;;  %v4780_v7 = vld [vmem:[%s7379_s11 + $0x1c0] sm:$0xff]   ;;  %v4784_v51 = vld [vmem:[%s7379_s11 + $0x1c8] sm:$0xff]  }
 0x3b1   : > { %4693 = vst [vmem:[%s9120_s17 + $0x210] sm:$0xff] %v4692_v0   ;;  %4697 = vst [vmem:[%s9120_s17 + $0x218] sm:$0xff] %v4696_v24   ;;  %v4788_v44 = vld [vmem:[%s7379_s11 + $0x1d0] sm:$0xff]   ;;  %v4792_v27 = vld [vmem:[%s7379_s11 + $0x1d8] sm:$0xff]  }
 0x3b2   : > { %4701 = vst [vmem:[%s9120_s17 + $0x220] sm:$0xff] %v4700_v61   ;;  %4705 = vst [vmem:[%s9120_s17 + $0x228] sm:$0xff] %v4704_v42   ;;  %v4796_v38 = vld [vmem:[%s7379_s11 + $0x1e0] sm:$0xff]   ;;  %v4800_v47 = vld [vmem:[%s7379_s11 + $0x1e8] sm:$0xff]  }
 0x3b3   : > { %4709 = vst [vmem:[%s9120_s17 + $0x230] sm:$0xff] %v4708_v12   ;;  %4713 = vst [vmem:[%s9120_s17 + $0x238] sm:$0xff] %v4712_v53   ;;  %v4804_v11 = vld [vmem:[%s7379_s11 + $0x1f0] sm:$0xff]   ;;  %v4808_v35 = vld [vmem:[%s7379_s11 + $0x1f8] sm:$0xff]  }
 0x3b4   : > { %4717 = vst [vmem:[%s9120_s17 + $0x240] sm:$0xff] %v4716_v30   ;;  %4721 = vst [vmem:[%s9120_s17 + $0x248] sm:$0xff] %v4720_v18  }
 0x3b5   : > { %4725 = vst [vmem:[%s9120_s17 + $0x250] sm:$0xff] %v4724_v14   ;;  %4729 = vst [vmem:[%s9120_s17 + $0x258] sm:$0xff] %v4728_v3  }
 0x3b6   : > { %4733 = vst [vmem:[%s9120_s17 + $0x260] sm:$0xff] %v4732_v20   ;;  %4737 = vst [vmem:[%s9120_s17 + $0x268] sm:$0xff] %v4736_v10  }
 0x3b7   : > { %4741 = vst [vmem:[%s9120_s17 + $0x270] sm:$0xff] %v4740_v54   ;;  %4745 = vst [vmem:[%s9120_s17 + $0x278] sm:$0xff] %v4744_v55  }
 0x3b8   : > { %4749 = vst [vmem:[%s9120_s17 + $0x300] sm:$0xff] %v4748_v19   ;;  %4753 = vst [vmem:[%s9120_s17 + $0x308] sm:$0xff] %v4752_v39  }
 0x3b9   : > { %4757 = vst [vmem:[%s9120_s17 + $0x310] sm:$0xff] %v4756_v31   ;;  %4761 = vst [vmem:[%s9120_s17 + $0x318] sm:$0xff] %v4760_v32  }
 0x3ba   : > { %4765 = vst [vmem:[%s9120_s17 + $0x320] sm:$0xff] %v4764_v48   ;;  %4769 = vst [vmem:[%s9120_s17 + $0x328] sm:$0xff] %v4768_v6  }
 0x3bb   : > { %4773 = vst [vmem:[%s9120_s17 + $0x330] sm:$0xff] %v4772_v36   ;;  %4777 = vst [vmem:[%s9120_s17 + $0x338] sm:$0xff] %v4776_v60  }
 0x3bc   : > { %4781 = vst [vmem:[%s9120_s17 + $0x340] sm:$0xff] %v4780_v7   ;;  %4785 = vst [vmem:[%s9120_s17 + $0x348] sm:$0xff] %v4784_v51  }
 0x3bd   : > { %4789 = vst [vmem:[%s9120_s17 + $0x350] sm:$0xff] %v4788_v44   ;;  %4793 = vst [vmem:[%s9120_s17 + $0x358] sm:$0xff] %v4792_v27  }
 0x3be   : > { %4797 = vst [vmem:[%s9120_s17 + $0x360] sm:$0xff] %v4796_v38   ;;  %4801 = vst [vmem:[%s9120_s17 + $0x368] sm:$0xff] %v4800_v47  }
 0x3bf   : > { %4805 = vst [vmem:[%s9120_s17 + $0x370] sm:$0xff] %v4804_v11   ;;  %4809 = vst [vmem:[%s9120_s17 + $0x378] sm:$0xff] %v4808_v35  }
 0x3c0 PF: > { %s20_s25 = sadd.s32 1, %s6509_s25   ;;  %s9384_s26 = sld [smem:[#allocation11_spill]] }
 0x3c1   : > { %p17_p10 = scmp.ge.s32.totalorder %s20_s25, 6   ;;  %s9385_s18 = smov %s6485_s19 }
 0x3c2   : > { %s9386_s19 = smov %s6489_s20  ;;  %s9387_s20 = smov %s6662_s1 }
 0x3c3   : > { %s9388_s21 = smov %s6501_s23  ;;  %s9389_s22 = smov %s6505_s24 }
 0x3c4   : > { %s9391_s24 = smov %s9397_s10  ;;  %19 = sbr.rel (!%p17_p10) target bundleno = 11 (0xb), region = 232 }
 0x3c6   : > { %s9390_s23 = smov %s9384_s26 }
 0x3cb   :  { %5114 = vsyncpa [#allocation3], 1 }
 0x3cc   :  { %5116 = vsyncpa [#allocation3 + $0x1], 1 }
 0x3cd   :  { %5117 = vsyncpa [#allocation5], 1 }

</bundles_post_ra>
